<compile_context>
chip_gen: v6e
topology: v6e:2x2x1
jax: 0.10.0
libtpu: 0.0.40
codegen_flags: <defaults>
</compile_context>

<pallas_src>
import functools

import jax
import jax.numpy as jnp
from jax.experimental import pallas as pl
from jax.experimental.pallas import tpu as pltpu

EPS = 1e-5
NEG_SLOPE = 0.01
LANE = 128


# --------------------------------- helpers ----------------------------------

def _round_up(x, m):
    return (x + m - 1) // m * m


def _largest_divisor_leq(n, target):
    target = max(1, min(n, int(target)))
    for d in range(target, 0, -1):
        if n % d == 0:
            return d
    return 1


def _leaky(z):
    return jnp.where(z >= 0, z, NEG_SLOPE * z)


def _vmem_limit_bytes():
    cap = 64 * 1024 * 1024
    try:
        cap = int(getattr(pltpu.get_tpu_info(), "vmem_capacity_bytes", cap))
    except Exception:
        pass
    return int(min(max(cap * 3 // 4, 32 * 1024 * 1024), 96 * 1024 * 1024))


def _pick_conv2_rows(ho, wp, cp, user_rows=None, budget=12 * 1024 * 1024):
    """Largest divisor of ho whose conv2 slab working set fits the budget."""
    cands = [d for d in range(ho, 0, -1) if ho % d == 0]
    if user_rows is not None:
        cands = [d for d in cands if d <= user_rows] or [1]
    for tr in cands:
        q = tr * wp
        s_slab = (tr + 3) * wp
        est = (q * cp * 4              # f32 accumulator
               + 2 * s_slab * cp * 2   # double-buffered input slab (bf16)
               + 2 * q * cp * 2        # double-buffered bf16 output
               + 2 * 9 * cp * cp * 2   # resident per-tap weights (2 buffers)
               + 9 * q * cp * 2)       # per-tap shifted-slice copies (upper bound)
        if est <= budget:
            return tr
    return 1


# ------------------------------ Pallas kernels -------------------------------

def _convA_kernel(p_ref, w_ref, y_ref, st_ref):
    # Fused conv1 | downsample-conv as one matmul: (tm, K1p) @ (K1p, 2*cp).
    y = jnp.dot(p_ref[...], w_ref[...], preferred_element_type=jnp.float32)
    y_ref[...] = y.astype(y_ref.dtype)                       # bf16 intermediate
    # per-tile BN partial sums (f32, taken before the bf16 cast)
    st_ref[0, 0:1, :] = jnp.sum(y, axis=0, keepdims=True)
    st_ref[0, 1:2, :] = jnp.sum(y * y, axis=0, keepdims=True)


def _conv2_kernel(slab_ref, w_ref, mask_ref, y_ref, st_ref, *, q, wp):
    # 3x3 / stride-1 conv as 9 shifted matmuls on a flat row-slab; no HBM im2col.
    # slab_ref: (1, (tr+3)*wp, cp) bf16   w_ref: (9, cp, cp) bf16
    # y_ref:    (1, q=tr*wp, cp)   bf16   st_ref: (1, 2, cp) f32
    acc = None
    for dy in range(3):
        for dx in range(3):
            off = dy * wp + dx                                # static per-tap offset
            lhs = slab_ref[0, off:off + q, :]
            t = dy * 3 + dx
            part = jnp.dot(lhs, w_ref[t], preferred_element_type=jnp.float32)
            acc = part if acc is None else acc + part
    acc = acc * mask_ref[...]        # zero the wrap-around (dead) columns
    y_ref[0] = acc.astype(y_ref.dtype)
    st_ref[0, 0:1, :] = jnp.sum(acc, axis=0, keepdims=True)
    st_ref[0, 1:2, :] = jnp.sum(acc * acc, axis=0, keepdims=True)


def _affine_from_stats(s0, s1, gamma, beta, inv_m):
    # training-mode BN folded into one per-channel scale/shift
    mean = s0 * inv_m
    var = jnp.maximum(s1 * inv_m - mean * mean, 0.0)
    scale = gamma * jax.lax.rsqrt(var + EPS)
    shift = beta - mean * scale
    return scale, shift


def _bn_act_kernel(y_ref, st_ref, g_ref, b_ref, o_ref, *, inv_m):
    st = st_ref[...]
    scale, shift = _affine_from_stats(st[0:1, :], st[1:2, :],
                                      g_ref[...], b_ref[...], inv_m)
    z = y_ref[...].astype(jnp.float32) * scale + shift
    o_ref[...] = _leaky(z).astype(o_ref.dtype)


def _bn_res_act_kernel(y2_ref, yd_ref, st2_ref, g2_ref, b2_ref,
                       std_ref, gd_ref, bd_ref, o_ref, *, inv_m):
    st2 = st2_ref[...]
    std = std_ref[...]
    sc2, sh2 = _affine_from_stats(st2[0:1, :], st2[1:2, :],
                                  g2_ref[...], b2_ref[...], inv_m)
    scd, shd = _affine_from_stats(std[0:1, :], std[1:2, :],
                                  gd_ref[...], bd_ref[...], inv_m)
    z = (y2_ref[...].astype(jnp.float32) * sc2 + sh2) \
        + (yd_ref[...].astype(jnp.float32) * scd + shd)
    o_ref[...] = _leaky(z).astype(o_ref.dtype)


# ---------------------------- pallas_call wrappers ----------------------------

def _convA(p, w, tm, vmem_limit):
    m, kp = p.shape
    n_out = w.shape[1]
    t = m // tm
    flops = int(2 * m * kp * n_out)
    bytes_accessed = int(p.size * 2 + w.size * 2 + m * n_out * 2 + t * 2 * n_out * 4)
    return pl.pallas_call(
        _convA_kernel,
        grid=(t,),
        in_specs=[
            pl.BlockSpec((tm, kp), lambda i: (i, 0)),          # patch tile
            pl.BlockSpec((kp, n_out), lambda i: (0, 0)),       # [w1|wd]: resident
        ],
        out_specs=(
            pl.BlockSpec((tm, n_out), lambda i: (i, 0)),       # y1|yd tile (bf16)
            pl.BlockSpec((1, 2, n_out), lambda i: (i, 0, 0)),  # partial BN stats
        ),
        out_shape=(
            jax.ShapeDtypeStruct((m, n_out), jnp.bfloat16),
            jax.ShapeDtypeStruct((t, 2, n_out), jnp.float32),
        ),
        compiler_params=pltpu.CompilerParams(
            dimension_semantics=("parallel",), vmem_limit_bytes=vmem_limit),
        cost_estimate=pl.CostEstimate(flops=flops, transcendentals=0,
                                      bytes_accessed=bytes_accessed),
    )(p, w)


def _conv2(slabs, w_taps, mask, q, wp, vmem_limit):
    ns, s_slab, cp = slabs.shape
    flops = int(2 * ns * q * 9 * cp * cp)
    bytes_accessed = int(slabs.size * 2 + w_taps.size * 2 + mask.size * 4
                         + ns * q * cp * 2 + ns * 2 * cp * 4)
    kern = functools.partial(_conv2_kernel, q=q, wp=wp)
    return pl.pallas_call(
        kern,
        grid=(ns,),
        in_specs=[
            pl.BlockSpec((1, s_slab, cp), lambda i: (i, 0, 0)),   # activation slab
            pl.BlockSpec((9, cp, cp), lambda i: (0, 0, 0)),       # tap weights: resident
            pl.BlockSpec((q, 1), lambda i: (0, 0)),               # dead-column mask
        ],
        out_specs=(
            pl.BlockSpec((1, q, cp), lambda i: (i, 0, 0)),
            pl.BlockSpec((1, 2, cp), lambda i: (i, 0, 0)),
        ),
        out_shape=(
            jax.ShapeDtypeStruct((ns, q, cp), jnp.bfloat16),
            jax.ShapeDtypeStruct((ns, 2, cp), jnp.float32),
        ),
        compiler_params=pltpu.CompilerParams(
            dimension_semantics=("parallel",), vmem_limit_bytes=vmem_limit),
        cost_estimate=pl.CostEstimate(flops=flops, transcendentals=0,
                                      bytes_accessed=bytes_accessed),
    )(slabs, w_taps, mask)


def _bn_act(y, col, stats, gamma, beta, inv_m, tm, vmem_limit):
    m = y.shape[0]
    cp = stats.shape[1]
    t = m // tm
    bytes_accessed = int(m * cp * (2 + 2) + stats.size * 4 + 2 * cp * 4)
    return pl.pallas_call(
        functools.partial(_bn_act_kernel, inv_m=inv_m),
        grid=(t,),
        in_specs=[
            pl.BlockSpec((tm, cp), lambda i, c=col: (i, c)),   # column half of y1|yd
            pl.BlockSpec((2, cp), lambda i: (0, 0)),
            pl.BlockSpec((1, cp), lambda i: (0, 0)),
            pl.BlockSpec((1, cp), lambda i: (0, 0)),
        ],
        out_specs=pl.BlockSpec((tm, cp), lambda i: (i, 0)),
        out_shape=jax.ShapeDtypeStruct((m, cp), jnp.bfloat16),
        compiler_params=pltpu.CompilerParams(
            dimension_semantics=("parallel",), vmem_limit_bytes=vmem_limit),
        cost_estimate=pl.CostEstimate(flops=int(4 * m * cp), transcendentals=0,
                                      bytes_accessed=bytes_accessed),
    )(y, stats, gamma, beta)


def _bn_res_act(y2, y1d, st2, g2, b2, std, gd, bd, inv_m, tm, vmem_limit):
    m, cp = y2.shape
    t = m // tm
    bytes_accessed = int(m * cp * (2 + 2 + 4) + (st2.size + std.size) * 4 + 4 * cp * 4)
    return pl.pallas_call(
        functools.partial(_bn_res_act_kernel, inv_m=inv_m),
        grid=(t,),
        in_specs=[
            pl.BlockSpec((tm, cp), lambda i: (i, 0)),          # y2
            pl.BlockSpec((tm, cp), lambda i: (i, 1)),          # yd = 2nd half of y1|yd
            pl.BlockSpec((2, cp), lambda i: (0, 0)),
            pl.BlockSpec((1, cp), lambda i: (0, 0)),
            pl.BlockSpec((1, cp), lambda i: (0, 0)),
            pl.BlockSpec((2, cp), lambda i: (0, 0)),
            pl.BlockSpec((1, cp), lambda i: (0, 0)),
            pl.BlockSpec((1, cp), lambda i: (0, 0)),
        ],
        out_specs=pl.BlockSpec((tm, cp), lambda i: (i, 0)),
        out_shape=jax.ShapeDtypeStruct((m, cp), jnp.float32),
        compiler_params=pltpu.CompilerParams(
            dimension_semantics=("parallel",), vmem_limit_bytes=vmem_limit),
        cost_estimate=pl.CostEstimate(flops=int(8 * m * cp), transcendentals=0,
                                      bytes_accessed=bytes_accessed),
    )(y2, y1d, st2, g2, b2, std, gd, bd)


# ---------------------------------- JAX glue ----------------------------------

def _im2col_3x3_s2(x):
    """NHWC x -> (N, Ho, Wo, 9*C) stride-2 patches; tap order (kh, kw, c)."""
    n, h, w, c = x.shape
    ho = (h - 1) // 2 + 1
    wo = (w - 1) // 2 + 1
    xp = jnp.pad(x, ((0, 0), (1, 1), (1, 1), (0, 0)))
    cols = []
    for dy in range(3):
        for dx in range(3):
            cols.append(xp[:, dy:dy + 2 * (ho - 1) + 1:2,
                           dx:dx + 2 * (wo - 1) + 1:2, :])
    p = jnp.stack(cols, axis=3)                      # (N, Ho, Wo, 9, C)
    return p.reshape(n, ho, wo, 9 * c), ho, wo


def _weight_matrix(w_pt):
    """(Cout, Cin, 3, 3) -> (9*Cin, Cout), K order (kh, kw, cin)."""
    c_out, c_in = w_pt.shape[0], w_pt.shape[1]
    return jnp.transpose(w_pt, (2, 3, 1, 0)).reshape(9 * c_in, c_out)


def _pad2d(a, rows, cols):
    return jnp.pad(a, ((0, rows - a.shape[0]), (0, cols - a.shape[1])))


def _pad_channel_row(v, cols, fill):
    v = v.astype(jnp.float32)
    return jnp.pad(v, (0, cols - v.shape[0]), constant_values=fill).reshape(1, cols)


def init_params(key, in_channels, out_channels):
    ks = jax.random.split(key, 6)
    scale = 0.1
    return {
        "w1": jax.random.normal(ks[0], (out_channels, in_channels, 3, 3), jnp.float32) * scale,
        "b1": jax.random.normal(ks[1], (out_channels,), jnp.float32) * scale,
        "w2": jax.random.normal(ks[2], (out_channels, out_channels, 3, 3), jnp.float32) * scale,
        "b2": jax.random.normal(ks[3], (out_channels,), jnp.float32) * scale,
        "wd": jax.random.normal(ks[4], (out_channels, in_channels, 3, 3), jnp.float32) * scale,
        "bd": jax.random.normal(ks[5], (out_channels,), jnp.float32) * scale,
        # BatchNorm2d affine defaults (PyTorch init): gamma=1, beta=0
        "g1": jnp.ones((out_channels,), jnp.float32),
        "bt1": jnp.zeros((out_channels,), jnp.float32),
        "g2": jnp.ones((out_channels,), jnp.float32),
        "bt2": jnp.zeros((out_channels,), jnp.float32),
        "gd": jnp.ones((out_channels,), jnp.float32),
        "btd": jnp.zeros((out_channels,), jnp.float32),
    }


def res_block_downsample(x_nchw, params, *, block_m=1024, bn_block_m=2048,
                         conv2_rows=None):
    """Forward pass. x: (N, Cin, H, W) f32 -> (N, Cout, H//2, W//2) f32."""
    n, c_in, h, w = x_nchw.shape
    c_out = params["w1"].shape[0]
    vmem_limit = _vmem_limit_bytes()

    x = jnp.transpose(x_nchw, (0, 2, 3, 1))          # NHWC once, at the boundary

    # --- stride-2 patches of x (shared by conv1 and the downsample conv) ----
    p1, ho, wo = _im2col_3x3_s2(x)                   # (N, Ho, Wo, 9*Cin)
    wp = _round_up(wo + 2, 8)                        # extended row width (>= Wo+2)
    cp = _round_up(c_out, LANE)
    m_valid = n * ho * wo
    m_ext = n * ho * wp
    inv_m = 1.0 / m_valid                            # dead columns contribute 0

    k1 = 9 * c_in
    k1p = _round_up(k1, LANE)                        # lane-dense K
    p1 = jnp.pad(p1, ((0, 0), (0, 0), (0, wp - wo), (0, k1p - k1)))
    p1 = p1.reshape(m_ext, k1p).astype(jnp.bfloat16)

    # fused [w1 | wd] weight matrix (doubles matmul N -> fills 256-wide MXU)
    w1m = _pad2d(_weight_matrix(params["w1"]), k1p, cp)
    wdm = _pad2d(_weight_matrix(params["wd"]), k1p, cp)
    w1d = jnp.concatenate([w1m, wdm], axis=1).astype(jnp.bfloat16)   # (k1p, 2*cp)

    g1 = _pad_channel_row(params["g1"], cp, 1.0)
    bt1 = _pad_channel_row(params["bt1"], cp, 0.0)
    g2 = _pad_channel_row(params["g2"], cp, 1.0)
    bt2 = _pad_channel_row(params["bt2"], cp, 0.0)
    gd = _pad_channel_row(params["gd"], cp, 1.0)
    btd = _pad_channel_row(params["btd"], cp, 0.0)
    # Conv biases cancel exactly under training-mode BN -> not applied.

    # --- M tiles: multiples of wp that divide m_ext exactly (no M padding) ---
    rows = n * ho
    rpt_mm = _largest_divisor_leq(rows, max(1, block_m // wp))
    if rows >= 2 and rows // rpt_mm < 2:
        rpt_mm = _largest_divisor_leq(rows, max(1, rows // 2))
    tm_mm = rpt_mm * wp
    rpt_bn = _largest_divisor_leq(rows, max(1, bn_block_m // wp))
    if rows >= 2 and rows // rpt_bn < 2:
        rpt_bn = _largest_divisor_leq(rows, max(1, rows // 2))
    tm_bn = rpt_bn * wp

    # --- pass A: conv1 + downsample conv, one matmul + per-tile BN stats ----
    y1d, stA_part = _convA(p1, w1d, tm_mm, vmem_limit)
    stA = jnp.sum(stA_part, axis=0)                  # (2, 2*cp) tiny reduce
    st1 = stA[:, :cp]
    std = stA[:, cp:]

    # --- pass B: BN1 + LeakyReLU -> a1 (bf16, extended NHWC layout) ---------
    a1 = _bn_act(y1d, 0, st1, g1, bt1, inv_m, tm_bn, vmem_limit)

    # --- conv2 in-kernel (9 shifted matmuls over flat row slabs) ------------
    a1 = a1.reshape(n, ho, wp, cp)
    # padded input: zero col on the left, rows -1 / +2 below, right pad reused
    a1p = jnp.pad(a1[:, :, :wo, :], ((0, 0), (1, 2), (1, wp - wo - 1), (0, 0)))
    tr = _pick_conv2_rows(ho, wp, cp, conv2_rows)
    nb = ho // tr
    s_slab = (tr + 3) * wp
    q = tr * wp
    if nb == 1:
        slabs = a1p.reshape(n, s_slab, cp)
    else:
        slabs = jnp.stack([a1p[:, i * tr:i * tr + tr + 3] for i in range(nb)],
                          axis=1)
        slabs = slabs.reshape(n * nb, s_slab, cp)

    w2t = jnp.transpose(params["w2"], (2, 3, 1, 0)).reshape(9, c_out, c_out)
    w2t = jnp.pad(w2t, ((0, 0), (0, cp - c_out), (0, cp - c_out))).astype(jnp.bfloat16)

    col_idx = jnp.tile(jnp.arange(wp, dtype=jnp.int32), tr).reshape(q, 1)
    mask = (col_idx < wo).astype(jnp.float32)        # dead (wrap-around) columns

    y2, st2_part = _conv2(slabs, w2t, mask, q, wp, vmem_limit)
    st2 = jnp.sum(st2_part, axis=0)                  # (2, cp)
    y2 = y2.reshape(m_ext, cp)

    # --- pass C: BN2 + BNd + residual add + LeakyReLU (fused) ---------------
    out = _bn_res_act(y2, y1d, st2, g2, bt2, std, gd, btd, inv_m, tm_bn, vmem_limit)
    out = out.reshape(n, ho, wp, cp)[:, :, :wo, :c_out]
    return jnp.transpose(out, (0, 3, 1, 2))          # NCHW at the module boundary


# ---------------------------------- reference ----------------------------------

def _reference(x_nchw, params):
    """Pure-JAX mirror (bf16 conv operands / bf16 intermediates, f32 BN)."""
    x = jnp.transpose(x_nchw, (0, 2, 3, 1))

    def conv3x3(inp, w_pt, stride):
        return jax.lax.conv_general_dilated(
            inp.astype(jnp.bfloat16),
            jnp.transpose(w_pt, (2, 3, 1, 0)).astype(jnp.bfloat16),
            window_strides=(stride, stride), padding=((1, 1), (1, 1)),
            dimension_numbers=("NHWC", "HWIO", "NHWC"),
            preferred_element_type=jnp.float32)

    def bn(y, gamma, beta):
        yq = y.astype(jnp.bfloat16).astype(jnp.float32)   # kernel stores y in bf16
        mean = jnp.mean(yq, axis=(0, 1, 2), keepdims=True)
        var = jnp.maximum(jnp.mean(yq * yq, axis=(0, 1, 2), keepdims=True)
                          - mean * mean, 0.0)
        return gamma * (yq - mean) * jax.lax.rsqrt(var + EPS) + beta

    a1 = _leaky(bn(conv3x3(x, params["w1"], 2), params["g1"], params["bt1"]))
    a1 = a1.astype(jnp.bfloat16).astype(jnp.float32)
    y2 = conv3x3(a1, params["w2"], 1)
    yd = conv3x3(x, params["wd"], 2)
    out = _leaky(bn(y2, params["g2"], params["bt2"])
                 + bn(yd, params["gd"], params["btd"]))
    return jnp.transpose(out, (0, 3, 1, 2))


# ------------------------------------ main -------------------------------------

if __name__ == "__main__":
    key = jax.random.PRNGKey(0)
    k_param, k_x = jax.random.split(key)

    N, C_IN, C_OUT, H, W = 2, 4, 8, 16, 16
    x = jax.random.normal(k_x, (N, C_IN, H, W), jnp.float32)
    params = init_params(k_param, C_IN, C_OUT)

    fwd = jax.jit(functools.partial(res_block_downsample))
    y = jax.block_until_ready(fwd(x, params))

    assert y.shape == (N, C_OUT, H // 2, W // 2), y.shape
    assert bool(jnp.all(jnp.isfinite(y)))

    y_ref = _reference(x, params)
    assert bool(jnp.allclose(y, y_ref, atol=3e-2, rtol=3e-2)), \
        float(jnp.max(jnp.abs(y - y_ref)))

    print("KERNEL_OK")
</pallas_src>

<mosaic_0001>
module attributes {stable_mosaic.version = 11 : i64} {
  func.func @_convA_kernel(%arg0: i32, %arg1: memref<128x128xbf16, #tpu.memory_space<vmem>>, %arg2: memref<128x256xbf16, #tpu.memory_space<vmem>>, %arg3: memref<128x256xbf16, #tpu.memory_space<vmem>>, %arg4: memref<1x2x256xf32, #tpu.memory_space<vmem>>) attributes {dimension_semantics = [#tpu.dimension_semantics<parallel>], iteration_bounds = array<i64: 2>, scalar_prefetch = 0 : i64, scratch_operands = 0 : i64, tpu.core_type = #tpu.core_type<tc>, window_params = [{transform_indices = @transform_0, window_bounds = array<i64: 128, 128>}, {pipeline_mode = #tpu.pipeline_mode<synchronous>, transform_indices = @transform_1, window_bounds = array<i64: 128, 256>}, {transform_indices = @transform_2, window_bounds = array<i64: 128, 256>}, {transform_indices = @transform_3, window_bounds = array<i64: 1, 2, 256>}]} {
    %c0 = arith.constant 0 : index
    %c0_0 = arith.constant 0 : index
    %0 = vector.load %arg1[%c0, %c0_0] : memref<128x128xbf16, #tpu.memory_space<vmem>>, vector<128x128xbf16>
    %c0_1 = arith.constant 0 : index
    %c0_2 = arith.constant 0 : index
    %1 = vector.load %arg2[%c0_1, %c0_2] : memref<128x256xbf16, #tpu.memory_space<vmem>>, vector<128x256xbf16>
    %cst = arith.constant dense<0.000000e+00> : vector<128x256xf32>
    %2 = tpu.matmul %0, %1, %cst {dimension_numbers = #tpu.dot_dimension_numbers<[1], [0], [0], [1], [0, 0, 1, 1], [], []>} : vector<128x128xbf16>, vector<128x256xbf16>, vector<128x256xf32> -> vector<128x256xf32>
    %3 = arith.truncf %2 : vector<128x256xf32> to vector<128x256xbf16>
    %c0_3 = arith.constant 0 : index
    %c0_4 = arith.constant 0 : index
    %4 = vector.load %arg3[%c0_3, %c0_4] : memref<128x256xbf16, #tpu.memory_space<vmem>>, vector<128x256xbf16>
    tpu.vector_store %arg3[%c0_3, %c0_4], %3 {strides = array<i32>} : memref<128x256xbf16, #tpu.memory_space<vmem>>, vector<128x256xbf16>,
    %cst_5 = arith.constant dense<0.000000e+00> : vector<256xf32>
    %5 = vector.multi_reduction <add>, %2, %cst_5 [0] : vector<128x256xf32> to vector<256xf32>
    %6 = vector.shape_cast %5 : vector<256xf32> to vector<1x256xf32>
    %c0_6 = arith.constant 0 : index
    %c0_7 = arith.constant 0 : index
    %c0_8 = arith.constant 0 : index
    %7 = vector.load %arg4[%c0_6, %c0_7, %c0_8] : memref<1x2x256xf32, #tpu.memory_space<vmem>>, vector<1x1x256xf32>
    %8 = vector.shape_cast %7 : vector<1x1x256xf32> to vector<1x256xf32>
    %9 = vector.shape_cast %6 : vector<1x256xf32> to vector<1x1x256xf32>
    tpu.vector_store %arg4[%c0_6, %c0_7, %c0_8], %9 {strides = array<i32>} : memref<1x2x256xf32, #tpu.memory_space<vmem>>, vector<1x1x256xf32>,
    %10 = arith.mulf %2, %2 : vector<128x256xf32>
    %cst_9 = arith.constant dense<0.000000e+00> : vector<256xf32>
    %11 = vector.multi_reduction <add>, %10, %cst_9 [0] : vector<128x256xf32> to vector<256xf32>
    %12 = vector.shape_cast %11 : vector<256xf32> to vector<1x256xf32>
    %c0_10 = arith.constant 0 : index
    %c1 = arith.constant 1 : index
    %c0_11 = arith.constant 0 : index
    %13 = vector.load %arg4[%c0_10, %c1, %c0_11] : memref<1x2x256xf32, #tpu.memory_space<vmem>>, vector<1x1x256xf32>
    %14 = vector.shape_cast %13 : vector<1x1x256xf32> to vector<1x256xf32>
    %15 = vector.shape_cast %12 : vector<1x256xf32> to vector<1x1x256xf32>
    tpu.vector_store %arg4[%c0_10, %c1, %c0_11], %15 {strides = array<i32>} : memref<1x2x256xf32, #tpu.memory_space<vmem>>, vector<1x1x256xf32>,
    return
  }
  func.func @transform_0(%arg0: i32) -> (i32, i32) {
    %c0_i32 = arith.constant 0 : i32
    %c0_i32_0 = arith.constant 0 : i32
    return %arg0, %c0_i32 : i32, i32
  }
  func.func @transform_1(%arg0: i32) -> (i32, i32) {
    %c0_i32 = arith.constant 0 : i32
    %c0_i32_0 = arith.constant 0 : i32
    %c0_i32_1 = arith.constant 0 : i32
    return %c0_i32, %c0_i32_0 : i32, i32
  }
  func.func @transform_2(%arg0: i32) -> (i32, i32) {
    %c0_i32 = arith.constant 0 : i32
    %c0_i32_0 = arith.constant 0 : i32
    return %arg0, %c0_i32 : i32, i32
  }
  func.func @transform_3(%arg0: i32) -> (i32, i32, i32) {
    %c0_i32 = arith.constant 0 : i32
    %c0_i32_0 = arith.constant 0 : i32
    %c0_i32_1 = arith.constant 0 : i32
    return %arg0, %c0_i32, %c0_i32_0 : i32, i32, i32
  }
}

module attributes {stable_mosaic.version = 11 : i64} {
  func.func @_bn_act_kernel(%arg0: i32, %arg1: memref<128x128xbf16, #tpu.memory_space<vmem>>, %arg2: memref<2x128xf32, #tpu.memory_space<vmem>>, %arg3: memref<1x128xf32, #tpu.memory_space<vmem>>, %arg4: memref<1x128xf32, #tpu.memory_space<vmem>>, %arg5: memref<128x128xbf16, #tpu.memory_space<vmem>>) attributes {dimension_semantics = [#tpu.dimension_semantics<parallel>], iteration_bounds = array<i64: 2>, scalar_prefetch = 0 : i64, scratch_operands = 0 : i64, tpu.core_type = #tpu.core_type<tc>, window_params = [{transform_indices = @transform_0, window_bounds = array<i64: 128, 128>}, {pipeline_mode = #tpu.pipeline_mode<synchronous>, transform_indices = @transform_1, window_bounds = array<i64: 2, 128>}, {pipeline_mode = #tpu.pipeline_mode<synchronous>, transform_indices = @transform_2, window_bounds = array<i64: 1, 128>}, {pipeline_mode = #tpu.pipeline_mode<synchronous>, transform_indices = @transform_3, window_bounds = array<i64: 1, 128>}, {transform_indices = @transform_4, window_bounds = array<i64: 128, 128>}]} {
    %c0 = arith.constant 0 : index
    %c0_0 = arith.constant 0 : index
    %0 = vector.load %arg2[%c0, %c0_0] : memref<2x128xf32, #tpu.memory_space<vmem>>, vector<2x128xf32>
    %1 = vector.extract_strided_slice %0 {offsets = [0, 0], sizes = [1, 128], strides = [1, 1]} : vector<2x128xf32> to vector<1x128xf32>
    %2 = vector.extract_strided_slice %0 {offsets = [1, 0], sizes = [1, 128], strides = [1, 1]} : vector<2x128xf32> to vector<1x128xf32>
    %c0_1 = arith.constant 0 : index
    %c0_2 = arith.constant 0 : index
    %3 = vector.load %arg3[%c0_1, %c0_2] : memref<1x128xf32, #tpu.memory_space<vmem>>, vector<1x128xf32>
    %c0_3 = arith.constant 0 : index
    %c0_4 = arith.constant 0 : index
    %4 = vector.load %arg4[%c0_3, %c0_4] : memref<1x128xf32, #tpu.memory_space<vmem>>, vector<1x128xf32>
    %cst = arith.constant 7.812500e-03 : f32
    %5 = vector.broadcast %cst : f32 to vector<1x128xf32>
    %6 = arith.mulf %1, %5 : vector<1x128xf32>
    %cst_5 = arith.constant 7.812500e-03 : f32
    %7 = vector.broadcast %cst_5 : f32 to vector<1x128xf32>
    %8 = arith.mulf %2, %7 : vector<1x128xf32>
    %9 = arith.mulf %6, %6 : vector<1x128xf32>
    %10 = arith.subf %8, %9 : vector<1x128xf32>
    %cst_6 = arith.constant 0.000000e+00 : f32
    %11 = vector.broadcast %cst_6 : f32 to vector<1x128xf32>
    %12 = arith.maximumf %10, %11 : vector<1x128xf32>
    %cst_7 = arith.constant 9.99999974E-6 : f32
    %13 = vector.broadcast %cst_7 : f32 to vector<1x128xf32>
    %14 = arith.addf %12, %13 : vector<1x128xf32>
    %15 = math.rsqrt %14 : vector<1x128xf32>
    %16 = arith.mulf %3, %15 : vector<1x128xf32>
    %17 = arith.mulf %6, %16 : vector<1x128xf32>
    %18 = arith.subf %4, %17 : vector<1x128xf32>
    %c0_8 = arith.constant 0 : index
    %c0_9 = arith.constant 0 : index
    %19 = vector.load %arg1[%c0_8, %c0_9] : memref<128x128xbf16, #tpu.memory_space<vmem>>, vector<128x128xbf16>
    %20 = arith.extf %19 : vector<128x128xbf16> to vector<128x128xf32>
    %21 = vector.broadcast %16 : vector<1x128xf32> to vector<128x128xf32>
    %22 = arith.mulf %20, %21 : vector<128x128xf32>
    %23 = vector.broadcast %18 : vector<1x128xf32> to vector<128x128xf32>
    %24 = arith.addf %22, %23 : vector<128x128xf32>
    %cst_10 = arith.constant 0.000000e+00 : f32
    %25 = vector.broadcast %cst_10 : f32 to vector<128x128xf32>
    %26 = arith.cmpf oge, %24, %25 : vector<128x128xf32>
    %cst_11 = arith.constant 0.00999999977 : f32
    %27 = vector.broadcast %cst_11 : f32 to vector<128x128xf32>
    %28 = arith.mulf %27, %24 : vector<128x128xf32>
    %29 = arith.select %26, %24, %28 : vector<128x128xi1>, vector<128x128xf32>
    %30 = arith.truncf %29 : vector<128x128xf32> to vector<128x128xbf16>
    %c0_12 = arith.constant 0 : index
    %c0_13 = arith.constant 0 : index
    %31 = vector.load %arg5[%c0_12, %c0_13] : memref<128x128xbf16, #tpu.memory_space<vmem>>, vector<128x128xbf16>
    tpu.vector_store %arg5[%c0_12, %c0_13], %30 {strides = array<i32>} : memref<128x128xbf16, #tpu.memory_space<vmem>>, vector<128x128xbf16>,
    return
  }
  func.func @transform_0(%arg0: i32) -> (i32, i32) {
    %c0_i32 = arith.constant 0 : i32
    %c0_i32_0 = arith.constant 0 : i32
    return %arg0, %c0_i32 : i32, i32
  }
  func.func @transform_1(%arg0: i32) -> (i32, i32) {
    %c0_i32 = arith.constant 0 : i32
    %c0_i32_0 = arith.constant 0 : i32
    %c0_i32_1 = arith.constant 0 : i32
    return %c0_i32, %c0_i32_0 : i32, i32
  }
  func.func @transform_2(%arg0: i32) -> (i32, i32) {
    %c0_i32 = arith.constant 0 : i32
    %c0_i32_0 = arith.constant 0 : i32
    %c0_i32_1 = arith.constant 0 : i32
    return %c0_i32, %c0_i32_0 : i32, i32
  }
  func.func @transform_3(%arg0: i32) -> (i32, i32) {
    %c0_i32 = arith.constant 0 : i32
    %c0_i32_0 = arith.constant 0 : i32
    %c0_i32_1 = arith.constant 0 : i32
    return %c0_i32, %c0_i32_0 : i32, i32
  }
  func.func @transform_4(%arg0: i32) -> (i32, i32) {
    %c0_i32 = arith.constant 0 : i32
    %c0_i32_0 = arith.constant 0 : i32
    return %arg0, %c0_i32 : i32, i32
  }
}

module attributes {stable_mosaic.version = 11 : i64} {
  func.func @_conv2_kernel(%arg0: i32, %arg1: memref<1x176x128xbf16, #tpu.memory_space<vmem>>, %arg2: memref<9x128x128xbf16, #tpu.memory_space<vmem>>, %arg3: memref<128x1xf32, #tpu.memory_space<vmem>>, %arg4: memref<1x128x128xbf16, #tpu.memory_space<vmem>>, %arg5: memref<1x2x128xf32, #tpu.memory_space<vmem>>) attributes {dimension_semantics = [#tpu.dimension_semantics<parallel>], iteration_bounds = array<i64: 2>, scalar_prefetch = 0 : i64, scratch_operands = 0 : i64, tpu.core_type = #tpu.core_type<tc>, window_params = [{transform_indices = @transform_0, window_bounds = array<i64: 1, 176, 128>}, {pipeline_mode = #tpu.pipeline_mode<synchronous>, transform_indices = @transform_1, window_bounds = array<i64: 9, 128, 128>}, {pipeline_mode = #tpu.pipeline_mode<synchronous>, transform_indices = @transform_2, window_bounds = array<i64: 128, 1>}, {transform_indices = @transform_3, window_bounds = array<i64: 1, 128, 128>}, {transform_indices = @transform_4, window_bounds = array<i64: 1, 2, 128>}]} {
    %c0 = arith.constant 0 : index
    %c0_0 = arith.constant 0 : index
    %c0_1 = arith.constant 0 : index
    %0 = vector.load %arg1[%c0, %c0_0, %c0_1] : memref<1x176x128xbf16, #tpu.memory_space<vmem>>, vector<1x128x128xbf16>
    %1 = vector.shape_cast %0 : vector<1x128x128xbf16> to vector<128x128xbf16>
    %c0_2 = arith.constant 0 : index
    %c0_3 = arith.constant 0 : index
    %c0_4 = arith.constant 0 : index
    %2 = vector.load %arg2[%c0_2, %c0_3, %c0_4] : memref<9x128x128xbf16, #tpu.memory_space<vmem>>, vector<1x128x128xbf16>
    %3 = vector.shape_cast %2 : vector<1x128x128xbf16> to vector<128x128xbf16>
    %cst = arith.constant dense<0.000000e+00> : vector<128x128xf32>
    %4 = tpu.matmul %1, %3, %cst {dimension_numbers = #tpu.dot_dimension_numbers<[1], [0], [0], [1], [0, 0, 1, 1], [], []>} : vector<128x128xbf16>, vector<128x128xbf16>, vector<128x128xf32> -> vector<128x128xf32>
    %c0_5 = arith.constant 0 : index
    %c1 = arith.constant 1 : index
    %c0_6 = arith.constant 0 : index
    %5 = vector.load %arg1[%c0_5, %c1, %c0_6] : memref<1x176x128xbf16, #tpu.memory_space<vmem>>, vector<1x128x128xbf16>
    %6 = vector.shape_cast %5 : vector<1x128x128xbf16> to vector<128x128xbf16>
    %c1_7 = arith.constant 1 : index
    %c0_8 = arith.constant 0 : index
    %c0_9 = arith.constant 0 : index
    %7 = vector.load %arg2[%c1_7, %c0_8, %c0_9] : memref<9x128x128xbf16, #tpu.memory_space<vmem>>, vector<1x128x128xbf16>
    %8 = vector.shape_cast %7 : vector<1x128x128xbf16> to vector<128x128xbf16>
    %cst_10 = arith.constant dense<0.000000e+00> : vector<128x128xf32>
    %9 = tpu.matmul %6, %8, %cst_10 {dimension_numbers = #tpu.dot_dimension_numbers<[1], [0], [0], [1], [0, 0, 1, 1], [], []>} : vector<128x128xbf16>, vector<128x128xbf16>, vector<128x128xf32> -> vector<128x128xf32>
    %10 = arith.addf %4, %9 : vector<128x128xf32>
    %c0_11 = arith.constant 0 : index
    %c2 = arith.constant 2 : index
    %c0_12 = arith.constant 0 : index
    %11 = vector.load %arg1[%c0_11, %c2, %c0_12] : memref<1x176x128xbf16, #tpu.memory_space<vmem>>, vector<1x128x128xbf16>
    %12 = vector.shape_cast %11 : vector<1x128x128xbf16> to vector<128x128xbf16>
    %c2_13 = arith.constant 2 : index
    %c0_14 = arith.constant 0 : index
    %c0_15 = arith.constant 0 : index
    %13 = vector.load %arg2[%c2_13, %c0_14, %c0_15] : memref<9x128x128xbf16, #tpu.memory_space<vmem>>, vector<1x128x128xbf16>
    %14 = vector.shape_cast %13 : vector<1x128x128xbf16> to vector<128x128xbf16>
    %cst_16 = arith.constant dense<0.000000e+00> : vector<128x128xf32>
    %15 = tpu.matmul %12, %14, %cst_16 {dimension_numbers = #tpu.dot_dimension_numbers<[1], [0], [0], [1], [0, 0, 1, 1], [], []>} : vector<128x128xbf16>, vector<128x128xbf16>, vector<128x128xf32> -> vector<128x128xf32>
    %16 = arith.addf %10, %15 : vector<128x128xf32>
    %c0_17 = arith.constant 0 : index
    %c16 = arith.constant 16 : index
    %c0_18 = arith.constant 0 : index
    %17 = vector.load %arg1[%c0_17, %c16, %c0_18] : memref<1x176x128xbf16, #tpu.memory_space<vmem>>, vector<1x128x128xbf16>
    %18 = vector.shape_cast %17 : vector<1x128x128xbf16> to vector<128x128xbf16>
    %c3 = arith.constant 3 : index
    %c0_19 = arith.constant 0 : index
    %c0_20 = arith.constant 0 : index
    %19 = vector.load %arg2[%c3, %c0_19, %c0_20] : memref<9x128x128xbf16, #tpu.memory_space<vmem>>, vector<1x128x128xbf16>
    %20 = vector.shape_cast %19 : vector<1x128x128xbf16> to vector<128x128xbf16>
    %cst_21 = arith.constant dense<0.000000e+00> : vector<128x128xf32>
    %21 = tpu.matmul %18, %20, %cst_21 {dimension_numbers = #tpu.dot_dimension_numbers<[1], [0], [0], [1], [0, 0, 1, 1], [], []>} : vector<128x128xbf16>, vector<128x128xbf16>, vector<128x128xf32> -> vector<128x128xf32>
    %22 = arith.addf %16, %21 : vector<128x128xf32>
    %c0_22 = arith.constant 0 : index
    %c17 = arith.constant 17 : index
    %c0_23 = arith.constant 0 : index
    %23 = vector.load %arg1[%c0_22, %c17, %c0_23] : memref<1x176x128xbf16, #tpu.memory_space<vmem>>, vector<1x128x128xbf16>
    %24 = vector.shape_cast %23 : vector<1x128x128xbf16> to vector<128x128xbf16>
    %c4 = arith.constant 4 : index
    %c0_24 = arith.constant 0 : index
    %c0_25 = arith.constant 0 : index
    %25 = vector.load %arg2[%c4, %c0_24, %c0_25] : memref<9x128x128xbf16, #tpu.memory_space<vmem>>, vector<1x128x128xbf16>
    %26 = vector.shape_cast %25 : vector<1x128x128xbf16> to vector<128x128xbf16>
    %cst_26 = arith.constant dense<0.000000e+00> : vector<128x128xf32>
    %27 = tpu.matmul %24, %26, %cst_26 {dimension_numbers = #tpu.dot_dimension_numbers<[1], [0], [0], [1], [0, 0, 1, 1], [], []>} : vector<128x128xbf16>, vector<128x128xbf16>, vector<128x128xf32> -> vector<128x128xf32>
    %28 = arith.addf %22, %27 : vector<128x128xf32>
    %c0_27 = arith.constant 0 : index
    %c18 = arith.constant 18 : index
    %c0_28 = arith.constant 0 : index
    %29 = vector.load %arg1[%c0_27, %c18, %c0_28] : memref<1x176x128xbf16, #tpu.memory_space<vmem>>, vector<1x128x128xbf16>
    %30 = vector.shape_cast %29 : vector<1x128x128xbf16> to vector<128x128xbf16>
    %c5 = arith.constant 5 : index
    %c0_29 = arith.constant 0 : index
    %c0_30 = arith.constant 0 : index
    %31 = vector.load %arg2[%c5, %c0_29, %c0_30] : memref<9x128x128xbf16, #tpu.memory_space<vmem>>, vector<1x128x128xbf16>
    %32 = vector.shape_cast %31 : vector<1x128x128xbf16> to vector<128x128xbf16>
    %cst_31 = arith.constant dense<0.000000e+00> : vector<128x128xf32>
    %33 = tpu.matmul %30, %32, %cst_31 {dimension_numbers = #tpu.dot_dimension_numbers<[1], [0], [0], [1], [0, 0, 1, 1], [], []>} : vector<128x128xbf16>, vector<128x128xbf16>, vector<128x128xf32> -> vector<128x128xf32>
    %34 = arith.addf %28, %33 : vector<128x128xf32>
    %c0_32 = arith.constant 0 : index
    %c32 = arith.constant 32 : index
    %c0_33 = arith.constant 0 : index
    %35 = vector.load %arg1[%c0_32, %c32, %c0_33] : memref<1x176x128xbf16, #tpu.memory_space<vmem>>, vector<1x128x128xbf16>
    %36 = vector.shape_cast %35 : vector<1x128x128xbf16> to vector<128x128xbf16>
    %c6 = arith.constant 6 : index
    %c0_34 = arith.constant 0 : index
    %c0_35 = arith.constant 0 : index
    %37 = vector.load %arg2[%c6, %c0_34, %c0_35] : memref<9x128x128xbf16, #tpu.memory_space<vmem>>, vector<1x128x128xbf16>
    %38 = vector.shape_cast %37 : vector<1x128x128xbf16> to vector<128x128xbf16>
    %cst_36 = arith.constant dense<0.000000e+00> : vector<128x128xf32>
    %39 = tpu.matmul %36, %38, %cst_36 {dimension_numbers = #tpu.dot_dimension_numbers<[1], [0], [0], [1], [0, 0, 1, 1], [], []>} : vector<128x128xbf16>, vector<128x128xbf16>, vector<128x128xf32> -> vector<128x128xf32>
    %40 = arith.addf %34, %39 : vector<128x128xf32>
    %c0_37 = arith.constant 0 : index
    %c33 = arith.constant 33 : index
    %c0_38 = arith.constant 0 : index
    %41 = vector.load %arg1[%c0_37, %c33, %c0_38] : memref<1x176x128xbf16, #tpu.memory_space<vmem>>, vector<1x128x128xbf16>
    %42 = vector.shape_cast %41 : vector<1x128x128xbf16> to vector<128x128xbf16>
    %c7 = arith.constant 7 : index
    %c0_39 = arith.constant 0 : index
    %c0_40 = arith.constant 0 : index
    %43 = vector.load %arg2[%c7, %c0_39, %c0_40] : memref<9x128x128xbf16, #tpu.memory_space<vmem>>, vector<1x128x128xbf16>
    %44 = vector.shape_cast %43 : vector<1x128x128xbf16> to vector<128x128xbf16>
    %cst_41 = arith.constant dense<0.000000e+00> : vector<128x128xf32>
    %45 = tpu.matmul %42, %44, %cst_41 {dimension_numbers = #tpu.dot_dimension_numbers<[1], [0], [0], [1], [0, 0, 1, 1], [], []>} : vector<128x128xbf16>, vector<128x128xbf16>, vector<128x128xf32> -> vector<128x128xf32>
    %46 = arith.addf %40, %45 : vector<128x128xf32>
    %c0_42 = arith.constant 0 : index
    %c34 = arith.constant 34 : index
    %c0_43 = arith.constant 0 : index
    %47 = vector.load %arg1[%c0_42, %c34, %c0_43] : memref<1x176x128xbf16, #tpu.memory_space<vmem>>, vector<1x128x128xbf16>
    %48 = vector.shape_cast %47 : vector<1x128x128xbf16> to vector<128x128xbf16>
    %c8 = arith.constant 8 : index
    %c0_44 = arith.constant 0 : index
    %c0_45 = arith.constant 0 : index
    %49 = vector.load %arg2[%c8, %c0_44, %c0_45] : memref<9x128x128xbf16, #tpu.memory_space<vmem>>, vector<1x128x128xbf16>
    %50 = vector.shape_cast %49 : vector<1x128x128xbf16> to vector<128x128xbf16>
    %cst_46 = arith.constant dense<0.000000e+00> : vector<128x128xf32>
    %51 = tpu.matmul %48, %50, %cst_46 {dimension_numbers = #tpu.dot_dimension_numbers<[1], [0], [0], [1], [0, 0, 1, 1], [], []>} : vector<128x128xbf16>, vector<128x128xbf16>, vector<128x128xf32> -> vector<128x128xf32>
    %52 = arith.addf %46, %51 : vector<128x128xf32>
    %c0_47 = arith.constant 0 : index
    %c0_48 = arith.constant 0 : index
    %53 = vector.load %arg3[%c0_47, %c0_48] : memref<128x1xf32, #tpu.memory_space<vmem>>, vector<128x1xf32>
    %54 = vector.broadcast %53 : vector<128x1xf32> to vector<128x128xf32>
    %55 = arith.mulf %52, %54 : vector<128x128xf32>
    %56 = arith.truncf %55 : vector<128x128xf32> to vector<128x128xbf16>
    %c0_49 = arith.constant 0 : index
    %c0_50 = arith.constant 0 : index
    %c0_51 = arith.constant 0 : index
    %57 = vector.load %arg4[%c0_49, %c0_50, %c0_51] : memref<1x128x128xbf16, #tpu.memory_space<vmem>>, vector<1x128x128xbf16>
    %58 = vector.shape_cast %57 : vector<1x128x128xbf16> to vector<128x128xbf16>
    %59 = vector.shape_cast %56 : vector<128x128xbf16> to vector<1x128x128xbf16>
    tpu.vector_store %arg4[%c0_49, %c0_50, %c0_51], %59 {strides = array<i32>} : memref<1x128x128xbf16, #tpu.memory_space<vmem>>, vector<1x128x128xbf16>,
    %cst_52 = arith.constant dense<0.000000e+00> : vector<128xf32>
    %60 = vector.multi_reduction <add>, %55, %cst_52 [0] : vector<128x128xf32> to vector<128xf32>
    %61 = vector.shape_cast %60 : vector<128xf32> to vector<1x128xf32>
    %c0_53 = arith.constant 0 : index
    %c0_54 = arith.constant 0 : index
    %c0_55 = arith.constant 0 : index
    %62 = vector.load %arg5[%c0_53, %c0_54, %c0_55] : memref<1x2x128xf32, #tpu.memory_space<vmem>>, vector<1x1x128xf32>
    %63 = vector.shape_cast %62 : vector<1x1x128xf32> to vector<1x128xf32>
    %64 = vector.shape_cast %61 : vector<1x128xf32> to vector<1x1x128xf32>
    tpu.vector_store %arg5[%c0_53, %c0_54, %c0_55], %64 {strides = array<i32>} : memref<1x2x128xf32, #tpu.memory_space<vmem>>, vector<1x1x128xf32>,
    %65 = arith.mulf %55, %55 : vector<128x128xf32>
    %cst_56 = arith.constant dense<0.000000e+00> : vector<128xf32>
    %66 = vector.multi_reduction <add>, %65, %cst_56 [0] : vector<128x128xf32> to vector<128xf32>
    %67 = vector.shape_cast %66 : vector<128xf32> to vector<1x128xf32>
    %c0_57 = arith.constant 0 : index
    %c1_58 = arith.constant 1 : index
    %c0_59 = arith.constant 0 : index
    %68 = vector.load %arg5[%c0_57, %c1_58, %c0_59] : memref<1x2x128xf32, #tpu.memory_space<vmem>>, vector<1x1x128xf32>
    %69 = vector.shape_cast %68 : vector<1x1x128xf32> to vector<1x128xf32>
    %70 = vector.shape_cast %67 : vector<1x128xf32> to vector<1x1x128xf32>
    tpu.vector_store %arg5[%c0_57, %c1_58, %c0_59], %70 {strides = array<i32>} : memref<1x2x128xf32, #tpu.memory_space<vmem>>, vector<1x1x128xf32>,
    return
  }
  func.func @transform_0(%arg0: i32) -> (i32, i32, i32) {
    %c0_i32 = arith.constant 0 : i32
    %c0_i32_0 = arith.constant 0 : i32
    %c0_i32_1 = arith.constant 0 : i32
    return %arg0, %c0_i32, %c0_i32_0 : i32, i32, i32
  }
  func.func @transform_1(%arg0: i32) -> (i32, i32, i32) {
    %c0_i32 = arith.constant 0 : i32
    %c0_i32_0 = arith.constant 0 : i32
    %c0_i32_1 = arith.constant 0 : i32
    %c0_i32_2 = arith.constant 0 : i32
    return %c0_i32, %c0_i32_0, %c0_i32_1 : i32, i32, i32
  }
  func.func @transform_2(%arg0: i32) -> (i32, i32) {
    %c0_i32 = arith.constant 0 : i32
    %c0_i32_0 = arith.constant 0 : i32
    %c0_i32_1 = arith.constant 0 : i32
    return %c0_i32, %c0_i32_0 : i32, i32
  }
  func.func @transform_3(%arg0: i32) -> (i32, i32, i32) {
    %c0_i32 = arith.constant 0 : i32
    %c0_i32_0 = arith.constant 0 : i32
    %c0_i32_1 = arith.constant 0 : i32
    return %arg0, %c0_i32, %c0_i32_0 : i32, i32, i32
  }
  func.func @transform_4(%arg0: i32) -> (i32, i32, i32) {
    %c0_i32 = arith.constant 0 : i32
    %c0_i32_0 = arith.constant 0 : i32
    %c0_i32_1 = arith.constant 0 : i32
    return %arg0, %c0_i32, %c0_i32_0 : i32, i32, i32
  }
}

module attributes {stable_mosaic.version = 11 : i64} {
  func.func @_bn_res_act_kernel(%arg0: i32, %arg1: memref<128x128xbf16, #tpu.memory_space<vmem>>, %arg2: memref<128x128xbf16, #tpu.memory_space<vmem>>, %arg3: memref<2x128xf32, #tpu.memory_space<vmem>>, %arg4: memref<1x128xf32, #tpu.memory_space<vmem>>, %arg5: memref<1x128xf32, #tpu.memory_space<vmem>>, %arg6: memref<2x128xf32, #tpu.memory_space<vmem>>, %arg7: memref<1x128xf32, #tpu.memory_space<vmem>>, %arg8: memref<1x128xf32, #tpu.memory_space<vmem>>, %arg9: memref<128x128xf32, #tpu.memory_space<vmem>>) attributes {dimension_semantics = [#tpu.dimension_semantics<parallel>], iteration_bounds = array<i64: 2>, scalar_prefetch = 0 : i64, scratch_operands = 0 : i64, tpu.core_type = #tpu.core_type<tc>, window_params = [{transform_indices = @transform_0, window_bounds = array<i64: 128, 128>}, {transform_indices = @transform_1, window_bounds = array<i64: 128, 128>}, {pipeline_mode = #tpu.pipeline_mode<synchronous>, transform_indices = @transform_2, window_bounds = array<i64: 2, 128>}, {pipeline_mode = #tpu.pipeline_mode<synchronous>, transform_indices = @transform_3, window_bounds = array<i64: 1, 128>}, {pipeline_mode = #tpu.pipeline_mode<synchronous>, transform_indices = @transform_4, window_bounds = array<i64: 1, 128>}, {pipeline_mode = #tpu.pipeline_mode<synchronous>, transform_indices = @transform_5, window_bounds = array<i64: 2, 128>}, {pipeline_mode = #tpu.pipeline_mode<synchronous>, transform_indices = @transform_6, window_bounds = array<i64: 1, 128>}, {pipeline_mode = #tpu.pipeline_mode<synchronous>, transform_indices = @transform_7, window_bounds = array<i64: 1, 128>}, {transform_indices = @transform_8, window_bounds = array<i64: 128, 128>}]} {
    %c0 = arith.constant 0 : index
    %c0_0 = arith.constant 0 : index
    %0 = vector.load %arg3[%c0, %c0_0] : memref<2x128xf32, #tpu.memory_space<vmem>>, vector<2x128xf32>
    %c0_1 = arith.constant 0 : index
    %c0_2 = arith.constant 0 : index
    %1 = vector.load %arg6[%c0_1, %c0_2] : memref<2x128xf32, #tpu.memory_space<vmem>>, vector<2x128xf32>
    %2 = vector.extract_strided_slice %0 {offsets = [0, 0], sizes = [1, 128], strides = [1, 1]} : vector<2x128xf32> to vector<1x128xf32>
    %3 = vector.extract_strided_slice %0 {offsets = [1, 0], sizes = [1, 128], strides = [1, 1]} : vector<2x128xf32> to vector<1x128xf32>
    %c0_3 = arith.constant 0 : index
    %c0_4 = arith.constant 0 : index
    %4 = vector.load %arg4[%c0_3, %c0_4] : memref<1x128xf32, #tpu.memory_space<vmem>>, vector<1x128xf32>
    %c0_5 = arith.constant 0 : index
    %c0_6 = arith.constant 0 : index
    %5 = vector.load %arg5[%c0_5, %c0_6] : memref<1x128xf32, #tpu.memory_space<vmem>>, vector<1x128xf32>
    %cst = arith.constant 7.812500e-03 : f32
    %6 = vector.broadcast %cst : f32 to vector<1x128xf32>
    %7 = arith.mulf %2, %6 : vector<1x128xf32>
    %cst_7 = arith.constant 7.812500e-03 : f32
    %8 = vector.broadcast %cst_7 : f32 to vector<1x128xf32>
    %9 = arith.mulf %3, %8 : vector<1x128xf32>
    %10 = arith.mulf %7, %7 : vector<1x128xf32>
    %11 = arith.subf %9, %10 : vector<1x128xf32>
    %cst_8 = arith.constant 0.000000e+00 : f32
    %12 = vector.broadcast %cst_8 : f32 to vector<1x128xf32>
    %13 = arith.maximumf %11, %12 : vector<1x128xf32>
    %cst_9 = arith.constant 9.99999974E-6 : f32
    %14 = vector.broadcast %cst_9 : f32 to vector<1x128xf32>
    %15 = arith.addf %13, %14 : vector<1x128xf32>
    %16 = math.rsqrt %15 : vector<1x128xf32>
    %17 = arith.mulf %4, %16 : vector<1x128xf32>
    %18 = arith.mulf %7, %17 : vector<1x128xf32>
    %19 = arith.subf %5, %18 : vector<1x128xf32>
    %20 = vector.extract_strided_slice %1 {offsets = [0, 0], sizes = [1, 128], strides = [1, 1]} : vector<2x128xf32> to vector<1x128xf32>
    %21 = vector.extract_strided_slice %1 {offsets = [1, 0], sizes = [1, 128], strides = [1, 1]} : vector<2x128xf32> to vector<1x128xf32>
    %c0_10 = arith.constant 0 : index
    %c0_11 = arith.constant 0 : index
    %22 = vector.load %arg7[%c0_10, %c0_11] : memref<1x128xf32, #tpu.memory_space<vmem>>, vector<1x128xf32>
    %c0_12 = arith.constant 0 : index
    %c0_13 = arith.constant 0 : index
    %23 = vector.load %arg8[%c0_12, %c0_13] : memref<1x128xf32, #tpu.memory_space<vmem>>, vector<1x128xf32>
    %cst_14 = arith.constant 7.812500e-03 : f32
    %24 = vector.broadcast %cst_14 : f32 to vector<1x128xf32>
    %25 = arith.mulf %20, %24 : vector<1x128xf32>
    %cst_15 = arith.constant 7.812500e-03 : f32
    %26 = vector.broadcast %cst_15 : f32 to vector<1x128xf32>
    %27 = arith.mulf %21, %26 : vector<1x128xf32>
    %28 = arith.mulf %25, %25 : vector<1x128xf32>
    %29 = arith.subf %27, %28 : vector<1x128xf32>
    %cst_16 = arith.constant 0.000000e+00 : f32
    %30 = vector.broadcast %cst_16 : f32 to vector<1x128xf32>
    %31 = arith.maximumf %29, %30 : vector<1x128xf32>
    %cst_17 = arith.constant 9.99999974E-6 : f32
    %32 = vector.broadcast %cst_17 : f32 to vector<1x128xf32>
    %33 = arith.addf %31, %32 : vector<1x128xf32>
    %34 = math.rsqrt %33 : vector<1x128xf32>
    %35 = arith.mulf %22, %34 : vector<1x128xf32>
    %36 = arith.mulf %25, %35 : vector<1x128xf32>
    %37 = arith.subf %23, %36 : vector<1x128xf32>
    %c0_18 = arith.constant 0 : index
    %c0_19 = arith.constant 0 : index
    %38 = vector.load %arg1[%c0_18, %c0_19] : memref<128x128xbf16, #tpu.memory_space<vmem>>, vector<128x128xbf16>
    %39 = arith.extf %38 : vector<128x128xbf16> to vector<128x128xf32>
    %40 = vector.broadcast %17 : vector<1x128xf32> to vector<128x128xf32>
    %41 = arith.mulf %39, %40 : vector<128x128xf32>
    %42 = vector.broadcast %19 : vector<1x128xf32> to vector<128x128xf32>
    %43 = arith.addf %41, %42 : vector<128x128xf32>
    %c0_20 = arith.constant 0 : index
    %c0_21 = arith.constant 0 : index
    %44 = vector.load %arg2[%c0_20, %c0_21] : memref<128x128xbf16, #tpu.memory_space<vmem>>, vector<128x128xbf16>
    %45 = arith.extf %44 : vector<128x128xbf16> to vector<128x128xf32>
    %46 = vector.broadcast %35 : vector<1x128xf32> to vector<128x128xf32>
    %47 = arith.mulf %45, %46 : vector<128x128xf32>
    %48 = vector.broadcast %37 : vector<1x128xf32> to vector<128x128xf32>
    %49 = arith.addf %47, %48 : vector<128x128xf32>
    %50 = arith.addf %43, %49 : vector<128x128xf32>
    %cst_22 = arith.constant 0.000000e+00 : f32
    %51 = vector.broadcast %cst_22 : f32 to vector<128x128xf32>
    %52 = arith.cmpf oge, %50, %51 : vector<128x128xf32>
    %cst_23 = arith.constant 0.00999999977 : f32
    %53 = vector.broadcast %cst_23 : f32 to vector<128x128xf32>
    %54 = arith.mulf %53, %50 : vector<128x128xf32>
    %55 = arith.select %52, %50, %54 : vector<128x128xi1>, vector<128x128xf32>
    %c0_24 = arith.constant 0 : index
    %c0_25 = arith.constant 0 : index
    %56 = vector.load %arg9[%c0_24, %c0_25] : memref<128x128xf32, #tpu.memory_space<vmem>>, vector<128x128xf32>
    tpu.vector_store %arg9[%c0_24, %c0_25], %55 {strides = array<i32>} : memref<128x128xf32, #tpu.memory_space<vmem>>, vector<128x128xf32>,
    return
  }
  func.func @transform_0(%arg0: i32) -> (i32, i32) {
    %c0_i32 = arith.constant 0 : i32
    %c0_i32_0 = arith.constant 0 : i32
    return %arg0, %c0_i32 : i32, i32
  }
  func.func @transform_1(%arg0: i32) -> (i32, i32) {
    %c1_i32 = arith.constant 1 : i32
    %c0_i32 = arith.constant 0 : i32
    return %arg0, %c1_i32 : i32, i32
  }
  func.func @transform_2(%arg0: i32) -> (i32, i32) {
    %c0_i32 = arith.constant 0 : i32
    %c0_i32_0 = arith.constant 0 : i32
    %c0_i32_1 = arith.constant 0 : i32
    return %c0_i32, %c0_i32_0 : i32, i32
  }
  func.func @transform_3(%arg0: i32) -> (i32, i32) {
    %c0_i32 = arith.constant 0 : i32
    %c0_i32_0 = arith.constant 0 : i32
    %c0_i32_1 = arith.constant 0 : i32
    return %c0_i32, %c0_i32_0 : i32, i32
  }
  func.func @transform_4(%arg0: i32) -> (i32, i32) {
    %c0_i32 = arith.constant 0 : i32
    %c0_i32_0 = arith.constant 0 : i32
    %c0_i32_1 = arith.constant 0 : i32
    return %c0_i32, %c0_i32_0 : i32, i32
  }
  func.func @transform_5(%arg0: i32) -> (i32, i32) {
    %c0_i32 = arith.constant 0 : i32
    %c0_i32_0 = arith.constant 0 : i32
    %c0_i32_1 = arith.constant 0 : i32
    return %c0_i32, %c0_i32_0 : i32, i32
  }
  func.func @transform_6(%arg0: i32) -> (i32, i32) {
    %c0_i32 = arith.constant 0 : i32
    %c0_i32_0 = arith.constant 0 : i32
    %c0_i32_1 = arith.constant 0 : i32
    return %c0_i32, %c0_i32_0 : i32, i32
  }
  func.func @transform_7(%arg0: i32) -> (i32, i32) {
    %c0_i32 = arith.constant 0 : i32
    %c0_i32_0 = arith.constant 0 : i32
    %c0_i32_1 = arith.constant 0 : i32
    return %c0_i32, %c0_i32_0 : i32, i32
  }
  func.func @transform_8(%arg0: i32) -> (i32, i32) {
    %c0_i32 = arith.constant 0 : i32
    %c0_i32_0 = arith.constant 0 : i32
    return %arg0, %c0_i32 : i32, i32
  }
}

</mosaic_0001>

<bundles_post_ra>
// kernel: res_block_downsample.5
= control target key start
LH: loop header
LB: loop body
LE: loop exit
PB: predicated region body
PF: predicated region fallthrough
CT: control target
= control target key end

     0   :  { %s814_s15 = smov 0   ;;  %s816_s16 = smov 0   ;;  %s956_s0 = inlined_call_operand.vmem [shape: bf16[256,256], index: 0, kind: input, shape index: {}]   ;;  %s957_s1 = inlined_call_operand.vmem [shape: f32[2,128], index: 1, kind: input, shape index: {}]   ;;  %s958_s2 = inlined_call_operand.vmem [shape: f32[1,128], index: 2, kind: input, shape index: {}]   ;;  %s959_s3 = inlined_call_operand.vmem [shape: f32[1,128], index: 3, kind: input, shape index: {}]   ;;  %s960_s4 = inlined_call_operand.vmem [shape: bf16[256,128], index: 4, kind: output, shape index: {}]  }
   0x1   :  { %s818_s17 = smov 0  }
   0x2 LB: > { %s603_s18 = sadd.s32 4294967295, %s786_s17   ;;  %s831_s19 = sadd.s32 1, %s786_s17   ;;  %s786_s17 = sphi %s818_s17, %s963_s17   ;;  %s782_s16 = sphi %s816_s16, %s962_s16   ;;  %s778_s15 = sphi %s814_s15, %s961_s15  }
   0x3   : > { %s18_s20 = ssub.s32 %s786_s17, %s831_s19  ;;  %s21_s21 = sadd.s32 1, %s782_s16 }
   0x4   : > { %p19_p0 = scmp.eq.s32.totalorder %s18_s20, 0  ;;  %p28_p1 = scmp.ne.s32.totalorder %s782_s16, %s778_s15 }
   0x5   : > { %p29_p2 = scmp.eq.s32.totalorder %s786_s17, 0  ;;  %p606_p4 = scmp.ge.s32.totalorder %s786_s17, 2 }
   0x6   : > { %s840_s22 = scalar_select %p19_p0, %s782_s16, %s21_s21  }
   0x7   : > { %p30_p3 = por %p29_p2, %p28_p1  ;;  %152 = sbr.rel (%p606_p4) target bundleno = 26 (0x1a), region = 28 }
   0xc   : > { %155 = sbr.rel (!%p30_p3) target bundleno = 26 (0x1a), region = 32  ;;  %s157_s23 = sand.u32 (%p30_p3), 1, %s782_s16  }
   0xd   : > { %s634_s24 = sshll.u32 (%p30_p3), %s786_s17, 7  ;;  %s607_s25 = sshll.u32 (%p30_p3), %s157_s23, 6 }
   0xe   : > { %s848_s28 = scalar_lea.vmem (%p30_p3), %s956_s0, %s634_s24  ;;  %s159_s29 = scalar_lea.vmem (%p30_p3), [#allocation2], %s607_s25 }
   0xf   : > { %v180_v0 = vld [vmem:[%s848_s28] sm:$0xf] (%p30_p3)  ;;  %v182_v1 = vld [vmem:[%s848_s28 + $0x8] sm:$0xf] (%p30_p3)  ;;  %v184_v2 = vld [vmem:[%s848_s28 + $0x10] sm:$0xf] (%p30_p3) }
  0x10   : > { %181 = vst [vmem:[%s159_s29] sm:$0xf] (%p30_p3), %v180_v0  ;;  %183 = vst [vmem:[%s159_s29 + $0x4] sm:$0xf] (%p30_p3), %v182_v1  ;;  %v186_v3 = vld [vmem:[%s848_s28 + $0x18] sm:$0xf] (%p30_p3) }
  0x11   : > { %v188_v4 = vld [vmem:[%s848_s28 + $0x20] sm:$0xf]  ;;  %185 = vst [vmem:[%s159_s29 + $0x8] sm:$0xf] %v184_v2  ;;  %187 = vst [vmem:[%s159_s29 + $0xc] sm:$0xf] %v186_v3 }
  0x12   : > { %189 = vst [vmem:[%s159_s29 + $0x10] sm:$0xf] %v188_v4  ;;  %v190_v5 = vld [vmem:[%s848_s28 + $0x28] sm:$0xf]  ;;  %v192_v6 = vld [vmem:[%s848_s28 + $0x30] sm:$0xf] }
  0x13   : > { %v194_v7 = vld [vmem:[%s848_s28 + $0x38] sm:$0xf]  ;;  %191 = vst [vmem:[%s159_s29 + $0x14] sm:$0xf] %v190_v5  ;;  %193 = vst [vmem:[%s159_s29 + $0x18] sm:$0xf] %v192_v6 }
  0x14   : > { %195 = vst [vmem:[%s159_s29 + $0x1c] sm:$0xf] %v194_v7  ;;  %v196_v8 = vld [vmem:[%s848_s28 + $0x40] sm:$0xf]  ;;  %v198_v9 = vld [vmem:[%s848_s28 + $0x48] sm:$0xf] }
  0x15   : > { %v200_v10 = vld [vmem:[%s848_s28 + $0x50] sm:$0xf]  ;;  %197 = vst [vmem:[%s159_s29 + $0x20] sm:$0xf] %v196_v8  ;;  %199 = vst [vmem:[%s159_s29 + $0x24] sm:$0xf] %v198_v9 }
  0x16   : > { %201 = vst [vmem:[%s159_s29 + $0x28] sm:$0xf] %v200_v10  ;;  %v202_v11 = vld [vmem:[%s848_s28 + $0x58] sm:$0xf]  ;;  %v204_v12 = vld [vmem:[%s848_s28 + $0x60] sm:$0xf] }
  0x17   : > { %v206_v13 = vld [vmem:[%s848_s28 + $0x68] sm:$0xf]  ;;  %203 = vst [vmem:[%s159_s29 + $0x2c] sm:$0xf] %v202_v11  ;;  %205 = vst [vmem:[%s159_s29 + $0x30] sm:$0xf] %v204_v12 }
  0x18   : > { %207 = vst [vmem:[%s159_s29 + $0x34] sm:$0xf] %v206_v13  ;;  %v208_v14 = vld [vmem:[%s848_s28 + $0x70] sm:$0xf]  ;;  %v210_v15 = vld [vmem:[%s848_s28 + $0x78] sm:$0xf] }
  0x19   : > { %209 = vst [vmem:[%s159_s29 + $0x38] sm:$0xf] %v208_v14  ;;  %211 = vst [vmem:[%s159_s29 + $0x3c] sm:$0xf] %v210_v15 }
  0x1a PF: > { %p611_p5 = scmp.ge.s32.totalorder %s786_s17, 1  ;;  %p266_p6 = scmp.lt.s32.totalorder %s786_s17, 3 }
  0x1c   : > { %p267_p7 = pnand %p611_p5, %p266_p6 }
  0x1d   : > { %s273_s6 = sand.u32 (!%p267_p7), 1, %s778_s15   ;;  %s877_s11 = sshll.u32 (!%p267_p7), %s603_s18, 4 }
  0x1e   : > { %270 = sbr.rel (%p267_p7) target bundleno = 101 (0x65), region = 73  ;;  %s612_s7 = sshll.u32 (!%p267_p7), %s273_s6, 6 }
  0x1f   : > { %s275_s8 = scalar_lea.vmem (!%p267_p7), [#allocation2], %s612_s7  ;;  %p300_p8 = scmp.lt.s32.totalorder (!%p267_p7), %s877_s11, 31 }
  0x23   : > { %v305_v16 = vld [vmem:[%s957_s1] sm:$0x3]  ;;  %v788_v23 = vmov 1966171168   ;;  %v321_v25 = vlaneseq  ;;  %v723_v33 = vld [vmem:[%s275_s8 + $0x8] sm:$0xff]   ;;  %v724_v35 = vld [vmem:[%s275_s8 + $0x10] sm:$0xff]  }
  0x24   : > { %v308_v17 = vmul.f32 0.0078125, %v305_v16  ;;  %v319_v24 = vunpack.c.l.s4 %v788_v23  ;;  %v652_v32 = vld [vmem:[%s275_s8] sm:$0xff]   ;;  %v725_v38 = vld [vmem:[%s275_s8 + $0x18] sm:$0xff]   ;;  %v657_v42 = vunpack.c.l.bf16 %v723_v33  ;;  %v727_v43 = vld [vmem:[%s275_s8 + $0x28] sm:$0xff]   ;;  %v658_v45 = vunpack.c.h.bf16 %v723_v33  ;;  %s965_s11 = smov (!%p300_p8, %s877_s11), 31 }
  0x25   : > { %v322_v27 = vshrl.u32 %v321_v25, 7  ;;  %v306_v34 = vld [vmem:[%s958_s2] sm:$0x1]  ;;  %v653_v40 = vunpack.c.l.bf16 %v652_v32  ;;  %v654_v41 = vunpack.c.h.bf16 %v652_v32  ;;  %v661_v46 = vunpack.c.l.bf16 %v724_v35  ;;  %v728_v48 = vld [vmem:[%s275_s8 + $0x30] sm:$0xff]   ;;  %v879_v49 = vld [vmem:[%s275_s8 + $0x38] sm:$0xff]   ;;  %s614_s14 = sshll.u32 %s965_s11, 2 }
  0x26   : > { %v309_v18 = vmul.f32 %v308_v17, %v308_v17  ;;  %v320_v26 = vunpack.c.0.s8 %v319_v24  ;;  %v726_v39 = vld [vmem:[%s275_s8 + $0x20] sm:$0xff]   ;;  %v662_v47 = vunpack.c.h.bf16 %v724_v35  ;;  %v665_v51 = vunpack.c.l.bf16 %v725_v38  ;;  %s922_s18 = scalar_lea.vmem %s960_s4, %s614_s14 }
  0x27   : > { %v372_v37 = vsub.s32 0, %v322_v27  ;;  %v307_v50 = vld [vmem:[%s959_s3] sm:$0x1]  ;;  %v666_v52 = vunpack.c.h.bf16 %v725_v38  ;;  %v669_v53 = vunpack.c.l.bf16 %v726_v39  ;;  %v670_v54 = vunpack.c.h.bf16 %v726_v39 }
  0x28   : > { %v311_v19 = vrot.slane %v309_v18, 7  ;;  %v323_v28 = vsub.s32 %v320_v26, %v322_v27  ;;  %v673_v57 = vunpack.c.l.bf16 %v727_v43  ;;  %v674_v58 = vunpack.c.h.bf16 %v727_v43 }
  0x29   : > { %v677_v59 = vunpack.c.l.bf16 %v728_v48  ;;  %v678_v60 = vunpack.c.h.bf16 %v728_v48  ;;  %v681_v61 = vunpack.c.l.bf16 %v879_v49  ;;  %v682_v62 = vunpack.c.h.bf16 %v879_v49 }
  0x2a   : > { %v313_v20 = vsub.f32 %v308_v17, %v311_v19 }
  0x2c   : > { %v314_v21 = vmax.f32 %v313_v20, 0.0 }
  0x2e   : > { %v315_v22 = vadd.f32 1e-05, %v314_v21 }
  0x30   : > { %762 = vrsqrt.f32 %v315_v22 }
  0x3d   : > { %v763_v29 = vpop.eup %762 }
  0x3e   : > { %v324_v30 = vrot.slane %v763_v29, %v323_v28 }
  0x40   : > { %v325_v31 = vcombine.high %v324_v30, %v324_v30 }
  0x42   : > { %v332_v36 = vrot.slane %v325_v31, %v323_v28 }
  0x44   : > { %v334_v44 = vmul.f32 %v332_v36, %v306_v34 }
  0x46   : > { %v335_v55 = vmul.f32 %v334_v44, %v308_v17  ;;  %v885_v56 = vrot.slane %v334_v44, %v372_v37 }
  0x48   : > { %v336_v63 = vsub.f32 %v307_v50, %v335_v55  ;;  %v375_v0 = vmul.f32 %v653_v40, %v885_v56  ;;  %v376_v1 = vmul.f32 %v654_v41, %v885_v56  ;;  %v377_v2 = vmul.f32 %v657_v42, %v885_v56 }
  0x49   : > { %v378_v3 = vmul.f32 %v658_v45, %v885_v56  ;;  %v379_v4 = vmul.f32 %v661_v46, %v885_v56  ;;  %v380_v5 = vmul.f32 %v662_v47, %v885_v56  ;;  %v381_v6 = vmul.f32 %v665_v51, %v885_v56 }
  0x4a   : > { %v901_v7 = vrot.slane %v336_v63, %v372_v37  ;;  %v382_v8 = vmul.f32 %v666_v52, %v885_v56  ;;  %v383_v9 = vmul.f32 %v669_v53, %v885_v56  ;;  %v384_v10 = vmul.f32 %v670_v54, %v885_v56 }
  0x4b   : > { %v385_v11 = vmul.f32 %v673_v57, %v885_v56  ;;  %v386_v12 = vmul.f32 %v674_v58, %v885_v56  ;;  %v387_v13 = vmul.f32 %v677_v59, %v885_v56  ;;  %v388_v14 = vmul.f32 %v678_v60, %v885_v56 }
  0x4c   : > { %v397_v15 = vadd.f32 %v901_v7, %v375_v0  ;;  %v398_v16 = vadd.f32 %v901_v7, %v376_v1  ;;  %v399_v17 = vadd.f32 %v901_v7, %v377_v2  ;;  %v400_v18 = vadd.f32 %v901_v7, %v378_v3 }
  0x4d   : > { %v401_v19 = vadd.f32 %v901_v7, %v379_v4  ;;  %v402_v20 = vadd.f32 %v901_v7, %v380_v5  ;;  %v403_v21 = vadd.f32 %v901_v7, %v381_v6  ;;  %v404_v22 = vadd.f32 %v901_v7, %v382_v8 }
  0x4e   : > { %vm413_vm0 = vcmp.ge.f32.partialorder %v397_v15, 0.0  ;;  %vm414_vm1 = vcmp.ge.f32.partialorder %v398_v16, 0.0  ;;  %v429_v23 = vmul.f32 0.01, %v397_v15  ;;  %v430_v24 = vmul.f32 0.01, %v398_v16 }
  0x4f   : > { %vm415_vm2 = vcmp.ge.f32.partialorder %v399_v17, 0.0  ;;  %vm416_vm3 = vcmp.ge.f32.partialorder %v400_v18, 0.0  ;;  %v431_v25 = vmul.f32 0.01, %v399_v17  ;;  %v432_v26 = vmul.f32 0.01, %v400_v18 }
  0x50   : > { %v445_v27 = vsel %vm413_vm0, %v397_v15, %v429_v23  ;;  %v446_v28 = vsel %vm414_vm1, %v398_v16, %v430_v24  ;;  %vm417_vm4 = vcmp.ge.f32.partialorder %v401_v19, 0.0  ;;  %vm418_vm5 = vcmp.ge.f32.partialorder %v402_v20, 0.0 }
  0x51   : > { %v686_v29 = vpack.c.bf16 %v446_v28, %v445_v27  ;;  %v447_v30 = vsel %vm415_vm2, %v399_v17, %v431_v25  ;;  %v448_v31 = vsel %vm416_vm3, %v400_v18, %v432_v26  ;;  %v433_v32 = vmul.f32 0.01, %v401_v19 }
  0x52   : > { %v691_v33 = vpack.c.bf16 %v448_v31, %v447_v30  ;;  %v434_v34 = vmul.f32 0.01, %v402_v20  ;;  %vm419_vm6 = vcmp.ge.f32.partialorder %v403_v21, 0.0  ;;  %vm420_vm7 = vcmp.ge.f32.partialorder %v404_v22, 0.0 }
  0x53   : > { %687 = vst [vmem:[%s922_s18] sm:$0xff] %v686_v29   ;;  %v449_v35 = vsel %vm417_vm4, %v401_v19, %v433_v32  ;;  %v435_v36 = vmul.f32 0.01, %v403_v21  ;;  %v436_v37 = vmul.f32 0.01, %v404_v22  ;;  %v405_v38 = vadd.f32 %v901_v7, %v383_v9 }
  0x54   : > { %730 = vst [vmem:[%s922_s18 + $0x8] sm:$0xff] %v691_v33   ;;  %v450_v39 = vsel %vm418_vm5, %v402_v20, %v434_v34  ;;  %v406_v40 = vadd.f32 %v901_v7, %v384_v10  ;;  %v407_v41 = vadd.f32 %v901_v7, %v385_v11  ;;  %v408_v42 = vadd.f32 %v901_v7, %v386_v12 }
  0x55   : > { %v696_v43 = vpack.c.bf16 %v450_v39, %v449_v35  ;;  %v451_v44 = vsel %vm419_vm6, %v403_v21, %v435_v36  ;;  %v452_v45 = vsel %vm420_vm7, %v404_v22, %v436_v37  ;;  %vm421_vm8 = vcmp.ge.f32.partialorder %v405_v38, 0.0 }
  0x56   : > { %v701_v46 = vpack.c.bf16 %v452_v45, %v451_v44  ;;  %vm422_vm9 = vcmp.ge.f32.partialorder %v406_v40, 0.0  ;;  %v437_v47 = vmul.f32 0.01, %v405_v38  ;;  %v438_v48 = vmul.f32 0.01, %v406_v40 }
  0x57   : > { %731 = vst [vmem:[%s922_s18 + $0x10] sm:$0xff] %v696_v43   ;;  %vm423_vm10 = vcmp.ge.f32.partialorder %v407_v41, 0.0  ;;  %vm424_vm11 = vcmp.ge.f32.partialorder %v408_v42, 0.0  ;;  %v439_v50 = vmul.f32 0.01, %v407_v41  ;;  %v409_v54 = vadd.f32 %v901_v7, %v387_v13 }
  0x58   : > { %v440_v51 = vmul.f32 0.01, %v408_v42  ;;  %732 = vst [vmem:[%s922_s18 + $0x18] sm:$0xff] %v701_v46   ;;  %v453_v52 = vsel %vm421_vm8, %v405_v38, %v437_v47  ;;  %v454_v53 = vsel %vm422_vm9, %v406_v40, %v438_v48  ;;  %v410_v55 = vadd.f32 %v901_v7, %v388_v14 }
  0x59   : > { %v706_v57 = vpack.c.bf16 %v454_v53, %v453_v52  ;;  %v455_v58 = vsel %vm423_vm10, %v407_v41, %v439_v50  ;;  %v389_v60 = vmul.f32 %v681_v61, %v885_v56  ;;  %vm425_vm12 = vcmp.ge.f32.partialorder %v409_v54, 0.0 }
  0x5a   : > { %v456_v59 = vsel %vm424_vm11, %v408_v42, %v440_v51  ;;  %vm426_vm13 = vcmp.ge.f32.partialorder %v410_v55, 0.0  ;;  %v441_v0 = vmul.f32 0.01, %v409_v54  ;;  %v442_v1 = vmul.f32 0.01, %v410_v55 }
  0x5b   : > { %v711_v63 = vpack.c.bf16 %v456_v59, %v455_v58  ;;  %733 = vst [vmem:[%s922_s18 + $0x20] sm:$0xff] %v706_v57   ;;  %v390_v2 = vmul.f32 %v682_v62, %v885_v56  ;;  %v411_v3 = vadd.f32 %v901_v7, %v389_v60 }
  0x5c   : > { %v457_v4 = vsel %vm425_vm12, %v409_v54, %v441_v0  ;;  %v458_v5 = vsel %vm426_vm13, %v410_v55, %v442_v1 }
  0x5d   : > { %734 = vst [vmem:[%s922_s18 + $0x28] sm:$0xff] %v711_v63   ;;  %v412_v6 = vadd.f32 %v901_v7, %v390_v2  ;;  %vm427_vm14 = vcmp.ge.f32.partialorder %v411_v3, 0.0  ;;  %v443_v61 = vmul.f32 0.01, %v411_v3  ;;  %v716_v8 = vpack.c.bf16 %v458_v5, %v457_v4 }
  0x5f   : > { %vm428_vm15 = vcmp.ge.f32.partialorder %v412_v6, 0.0  ;;  %v444_v9 = vmul.f32 0.01, %v412_v6  ;;  %v459_v10 = vsel %vm427_vm14, %v411_v3, %v443_v61  ;;  %735 = vst [vmem:[%s922_s18 + $0x30] sm:$0xff] %v716_v8  }
  0x61   : > { %v460_v11 = vsel %vm428_vm15, %v412_v6, %v444_v9 }
  0x62   : > { %v721_v12 = vpack.c.bf16 %v460_v11, %v459_v10 }
  0x64   : > { %736 = vst [vmem:[%s922_s18 + $0x38] sm:$0xff] %v721_v12  }
  0x65 PF: > { %p11_p9 = scmp.ge.s32.totalorder %s831_s19, 4   ;;  %s961_s15 = smov %s782_s16 }
  0x66   : > { %s962_s16 = smov %s840_s22  ;;  %s963_s17 = smov %s831_s19 }
  0x67   :  { %13 = sbr.rel (!%p11_p9) target bundleno = 2 (0x2), region = 112 }

// kernel: res_block_downsample.4
= control target key start
LH: loop header
LB: loop body
LE: loop exit
PB: predicated region body
PF: predicated region fallthrough
CT: control target
= control target key end

     0   :  { %s986_s12 = smov 0   ;;  %s1183_s0 = inlined_call_operand.vmem [shape: bf16[256,128], index: 0, kind: input, shape index: {}]   ;;  %s1184_s1 = inlined_call_operand.vmem [shape: bf16[128,256], index: 1, kind: input, shape index: {}]   ;;  %s1185_s2 = inlined_call_operand.vmem [shape: bf16[256,256], index: 2, kind: output, shape index: {0}]   ;;  %s1186_s3 = inlined_call_operand.vmem [shape: f32[2,2,256], index: 3, kind: output, shape index: {1}]  }
   0x1 LB: > { %s992_s13 = sadd.s32 4294967295, %s962_s12   ;;  %p829_p0 = scmp.ge.s32.totalorder %s962_s12, 1  ;;  %s962_s12 = sphi %s986_s12, %s14_s12  }
   0x2   : > { %p141_p1 = scmp.lt.s32.totalorder %s962_s12, 3 }
   0x4   : > { %p142_p2 = pnand %p829_p0, %p141_p1 }
   0x5   : > { %s830_s16 = sshll.u32 (!%p142_p2), %s992_s13, 4  ;;  %p184_p4 = scmp.lt.s32.totalorder (!%p142_p2), %s992_s13, 1 }
   0x6   : > { %145 = sbr.rel (%p142_p2) target bundleno = 308 (0x134), region = 28  ;;  %p172_p3 = scmp.lt.s32.totalorder (!%p142_p2), %s830_s16, 31 }
   0xb   : > { %v924_v0 = vld [vmem:[%s1184_s1 + $0x74] ss:$8 sps:$4 sm:$0xff]   ;;  %v926_v1 = vld [vmem:[%s1184_s1 + $0x70] ss:$8 sps:$4 sm:$0xff]   ;;  %v964_v2 = vmov 0   ;;  %s1188_s16 = smov (!%p172_p3, %s830_s16), 31 }
   0xc   : > { %382 = vmatprep.mubr.bf16.mxu0 %v964_v2  ;;  %422 = vmatprep.mubr.bf16.mxu1 %v964_v2  ;;  %v927_v3 = vld [vmem:[%s1184_s1 + $0x64] ss:$8 sps:$4 sm:$0xff]   ;;  %v929_v4 = vld [vmem:[%s1184_s1 + $0x60] ss:$8 sps:$4 sm:$0xff]   ;;  %v930_v5 = vld [vmem:[%s1184_s1 + $0x54] ss:$8 sps:$4 sm:$0xff]  }
   0xd   : > { %350 = vmatprep.subr.bf16.mxu0 %v924_v0  ;;  %898 = vmatprep.subr.bf16.mxu1 %v924_v0  ;;  %s831_s25 = sshll.u32 %s1188_s16, 2  ;;  %v932_v6 = vld [vmem:[%s1184_s1 + $0x50] ss:$8 sps:$4 sm:$0xff]   ;;  %v933_v7 = vld [vmem:[%s1184_s1 + $0x44] ss:$8 sps:$4 sm:$0xff]   ;;  %s880_s27 = sshll.u32 %s1188_s16, 3 }
   0xe   : > { %351 = vmatpush1.bf16.msra.mxu0 %v926_v1  ;;  %906 = vmatpush1.bf16.msra.mxu1 %v926_v1  ;;  %s1026_s5 = scalar_lea.vmem %s1183_s0, %s831_s25  ;;  %v935_v8 = vld [vmem:[%s1184_s1 + $0x40] ss:$8 sps:$4 sm:$0xff]   ;;  %v936_v9 = vld [vmem:[%s1184_s1 + $0x34] ss:$8 sps:$4 sm:$0xff]   ;;  %v938_v10 = vld [vmem:[%s1184_s1 + $0x30] ss:$8 sps:$4 sm:$0xff]   ;;  %s1075_s30 = scalar_lea.vmem %s1185_s2, %s880_s27 }
   0xf   : > { %352 = vmatprep.subr.bf16.mxu0 %v927_v3  ;;  %899 = vmatprep.subr.bf16.mxu1 %v927_v3  ;;  %v939_v11 = vld [vmem:[%s1184_s1 + $0x24] ss:$8 sps:$4 sm:$0xff]   ;;  %v941_v12 = vld [vmem:[%s1184_s1 + $0x20] ss:$8 sps:$4 sm:$0xff]   ;;  %v942_v13 = vld [vmem:[%s1184_s1 + $0x14] ss:$8 sps:$4 sm:$0xff]  }
  0x10   : > { %v944_v14 = vld [vmem:[%s1184_s1 + $0x10] ss:$8 sps:$4 sm:$0xff]   ;;  %v945_v15 = vld [vmem:[%s1184_s1 + $0x4] ss:$8 sps:$4 sm:$0xff]   ;;  %v947_v16 = vld [vmem:[%s1184_s1] ss:$8 sps:$4 sm:$0xff]  }
  0x11   : > { %v948_v17 = vld [vmem:[%s1026_s5] sm:$0xff]   ;;  %v949_v19 = vld [vmem:[%s1026_s5 + $0x8] sm:$0xff]   ;;  %v951_v21 = vld [vmem:[%s1026_s5 + $0x10] sm:$0xff]   ;;  %s1190_s13 = smov (!%p184_p4, %s992_s13), 1 }
  0x12   : > { %353 = vmatpush1.bf16.msra.mxu0 %v929_v4  ;;  %907 = vmatpush1.bf16.msra.mxu1 %v929_v4  ;;  %v950_v18 = vld [vmem:[%s1026_s5 + $0x20] sm:$0xff]   ;;  %v952_v20 = vld [vmem:[%s1026_s5 + $0x28] sm:$0xff]   ;;  %v954_v22 = vld [vmem:[%s1026_s5 + $0x30] sm:$0xff]   ;;  %s881_s16 = sshll.u32 %s1190_s13, 2 }
  0x13   : > { %354 = vmatprep.subr.bf16.mxu0 %v930_v5  ;;  %900 = vmatprep.subr.bf16.mxu1 %v930_v5  ;;  %v953_v23 = vld [vmem:[%s1026_s5 + $0x18] sm:$0xff]   ;;  %s188_s6 = scalar_lea.vmem %s1186_s3, %s881_s16 }
  0x14   : > { %v955_v24 = vld [vmem:[%s1026_s5 + $0x38] sm:$0xff]  }
  0x16   : > { %355 = vmatpush1.bf16.msra.mxu0 %v932_v6  ;;  %908 = vmatpush1.bf16.msra.mxu1 %v932_v6 }
  0x17   : > { %356 = vmatprep.subr.bf16.mxu0 %v933_v7  ;;  %901 = vmatprep.subr.bf16.mxu1 %v933_v7 }
  0x1a   : > { %357 = vmatpush1.bf16.msra.mxu0 %v935_v8  ;;  %909 = vmatpush1.bf16.msra.mxu1 %v935_v8 }
  0x1b   : > { %358 = vmatprep.subr.bf16.mxu0 %v936_v9  ;;  %902 = vmatprep.subr.bf16.mxu1 %v936_v9 }
  0x1e   : > { %359 = vmatpush1.bf16.msra.mxu0 %v938_v10  ;;  %910 = vmatpush1.bf16.msra.mxu1 %v938_v10 }
  0x1f   : > { %360 = vmatprep.subr.bf16.mxu0 %v939_v11  ;;  %903 = vmatprep.subr.bf16.mxu1 %v939_v11 }
  0x22   : > { %361 = vmatpush1.bf16.msra.mxu0 %v941_v12  ;;  %911 = vmatpush1.bf16.msra.mxu1 %v941_v12 }
  0x23   : > { %362 = vmatprep.subr.bf16.mxu0 %v942_v13  ;;  %904 = vmatprep.subr.bf16.mxu1 %v942_v13 }
  0x26   : > { %363 = vmatpush1.bf16.msra.mxu0 %v944_v14  ;;  %912 = vmatpush1.bf16.msra.mxu1 %v944_v14 }
  0x27   : > { %364 = vmatprep.subr.bf16.mxu0 %v945_v15  ;;  %905 = vmatprep.subr.bf16.mxu1 %v945_v15 }
  0x2a   : > { %365 = vmatpush1.bf16.msra.mxu0 %v947_v16  ;;  %913 = vmatpush1.bf16.msra.mxu1 %v947_v16 }
  0x2d   : > { %383 = vmatmul.mubr.bf16.vlgmr.msra.gmra.mxu0 %v948_v17  ;;  %423 = vmatmul.mubr.bf16.vlgmr.msra.gmra.mxu1 %v950_v18 }
  0x2e   : > { %392 = vmatprep.mubr.bf16.mxu0 %v964_v2  ;;  %432 = vmatprep.mubr.bf16.mxu1 %v964_v2 }
  0x35   : > { %393 = vmatmul.mubr.bf16.gmra.mxu0 %v949_v19  ;;  %433 = vmatmul.mubr.bf16.gmra.mxu1 %v952_v20 }
  0x36   : > { %402 = vmatprep.mubr.bf16.mxu0 %v964_v2  ;;  %442 = vmatprep.mubr.bf16.mxu1 %v964_v2 }
  0x3d   : > { %403 = vmatmul.mubr.bf16.gmra.mxu0 %v951_v21  ;;  %443 = vmatmul.mubr.bf16.gmra.mxu1 %v954_v22 }
  0x3e   : > { %412 = vmatprep.mubr.bf16.mxu0 %v964_v2  ;;  %452 = vmatprep.mubr.bf16.mxu1 %v964_v2 }
  0x45   : > { %413 = vmatmul.mubr.bf16.gmra.mxu0 %v953_v23  ;;  %453 = vmatmul.mubr.bf16.gmra.mxu1 %v955_v24 }
  0xed   : > { %v384_v25 = vpop.f32.mrf.mxu0  ;;  %v1070_v26 = vpop.f32.mrf.mxu1 }
  0xee   : > { %v640_v49 = vmul.f32 %v384_v25, %v384_v25 }
  0xef   : > { %v386_v27 = vpop.f32.mrf.mxu0  ;;  %v1077_v28 = vpop.f32.mrf.mxu1 }
  0xf0   : > { %v882_v29 = vpack.c.bf16 %v386_v27, %v384_v25  ;;  %v890_v30 = vpack.c.bf16 %v1077_v28, %v1070_v26  ;;  %v641_v63 = vmul.f32 %v386_v27, %v386_v27 }
  0xf1   : > { %v388_v31 = vpop.f32.mrf.mxu0  ;;  %v1081_v32 = vpop.f32.mrf.mxu1 }
  0xf2   : > { %559 = vst [vmem:[%s1075_s30] sm:$0xff] %v882_v29  ;;  %567 = vst [vmem:[%s1075_s30 + $0x40] sm:$0xff] %v890_v30  ;;  %v642_v45 = vmul.f32 %v388_v31, %v388_v31  ;;  %v575_v54 = vadd.f32 %v388_v31, %v384_v25 }
  0xf3   : > { %v390_v33 = vpop.f32.mrf.mxu0  ;;  %v1085_v34 = vpop.f32.mrf.mxu1 }
  0xf4   : > { %v883_v35 = vpack.c.bf16 %v390_v33, %v388_v31  ;;  %v891_v37 = vpack.c.bf16 %v1085_v34, %v1081_v32  ;;  %v672_v55 = vadd.f32 %v642_v45, %v640_v49  ;;  %v643_v56 = vmul.f32 %v390_v33, %v390_v33 }
  0xf5   : > { %v394_v36 = vpop.f32.mrf.mxu0  ;;  %v1089_v38 = vpop.f32.mrf.mxu1  ;;  %v596_v60 = vadd.f32 %v390_v33, %v386_v27 }
  0xf6   : > { %560 = vst [vmem:[%s1075_s30 + $0x8] sm:$0xff] %v883_v35  ;;  %568 = vst [vmem:[%s1075_s30 + $0x48] sm:$0xff] %v891_v37  ;;  %v644_v50 = vmul.f32 %v394_v36, %v394_v36  ;;  %v576_v61 = vadd.f32 %v575_v54, %v394_v36  ;;  %v693_v8 = vadd.f32 %v643_v56, %v641_v63 }
  0xf7   : > { %v396_v39 = vpop.f32.mrf.mxu0  ;;  %v1093_v40 = vpop.f32.mrf.mxu1 }
  0xf8   : > { %v884_v41 = vpack.c.bf16 %v396_v39, %v394_v36  ;;  %v892_v43 = vpack.c.bf16 %v1093_v40, %v1089_v38  ;;  %v673_v0 = vadd.f32 %v672_v55, %v644_v50  ;;  %v645_v1 = vmul.f32 %v396_v39, %v396_v39 }
  0xf9   : > { %v398_v42 = vpop.f32.mrf.mxu0  ;;  %v1097_v44 = vpop.f32.mrf.mxu1  ;;  %v597_v5 = vadd.f32 %v596_v60, %v396_v39 }
  0xfa   : > { %561 = vst [vmem:[%s1075_s30 + $0x10] sm:$0xff] %v884_v41  ;;  %569 = vst [vmem:[%s1075_s30 + $0x50] sm:$0xff] %v892_v43  ;;  %v646_v57 = vmul.f32 %v398_v42, %v398_v42  ;;  %v577_v6 = vadd.f32 %v576_v61, %v398_v42  ;;  %v694_v17 = vadd.f32 %v693_v8, %v645_v1 }
  0xfb   : > { %v400_v46 = vpop.f32.mrf.mxu0  ;;  %v1101_v47 = vpop.f32.mrf.mxu1 }
  0xfc   : > { %v885_v48 = vpack.c.bf16 %v400_v46, %v398_v42  ;;  %v893_v52 = vpack.c.bf16 %v1101_v47, %v1097_v44  ;;  %v674_v9 = vadd.f32 %v673_v0, %v646_v57  ;;  %v647_v10 = vmul.f32 %v400_v46, %v400_v46 }
  0xfd   : > { %v404_v51 = vpop.f32.mrf.mxu0  ;;  %v1105_v53 = vpop.f32.mrf.mxu1  ;;  %v598_v13 = vadd.f32 %v597_v5, %v400_v46  ;;  %v658_v0 = vmul.f32 %v1081_v32, %v1081_v32  ;;  %v657_v5 = vmul.f32 %v1077_v28, %v1077_v28 }
  0xfe   : > { %562 = vst [vmem:[%s1075_s30 + $0x18] sm:$0xff] %v885_v48  ;;  %570 = vst [vmem:[%s1075_s30 + $0x58] sm:$0xff] %v893_v52  ;;  %v648_v7 = vmul.f32 %v404_v51, %v404_v51  ;;  %v578_v14 = vadd.f32 %v577_v6, %v404_v51  ;;  %v695_v27 = vadd.f32 %v694_v17, %v647_v10 }
  0xff   : > { %v406_v58 = vpop.f32.mrf.mxu0  ;;  %v1109_v59 = vpop.f32.mrf.mxu1  ;;  %v664_v17 = vmul.f32 %v1105_v53, %v1105_v53 }
 0x100   : > { %v886_v62 = vpack.c.bf16 %v406_v58, %v404_v51  ;;  %v894_v3 = vpack.c.bf16 %v1109_v59, %v1105_v53  ;;  %v649_v18 = vmul.f32 %v406_v58, %v406_v58  ;;  %v675_v22 = vadd.f32 %v674_v9, %v648_v7 }
 0x101   : > { %v408_v2 = vpop.f32.mrf.mxu0  ;;  %v1113_v4 = vpop.f32.mrf.mxu1  ;;  %v599_v23 = vadd.f32 %v598_v13, %v406_v58  ;;  %v656_v51 = vmul.f32 %v1070_v26, %v1070_v26 }
 0x102   : > { %563 = vst [vmem:[%s1075_s30 + $0x20] sm:$0xff] %v886_v62  ;;  %571 = vst [vmem:[%s1075_s30 + $0x60] sm:$0xff] %v894_v3  ;;  %v650_v15 = vmul.f32 %v408_v2, %v408_v2  ;;  %v579_v24 = vadd.f32 %v578_v14, %v408_v2  ;;  %v696_v39 = vadd.f32 %v695_v27, %v649_v18 }
 0x103   : > { %v410_v11 = vpop.f32.mrf.mxu0  ;;  %v1117_v12 = vpop.f32.mrf.mxu1 }
 0x104   : > { %v887_v16 = vpack.c.bf16 %v410_v11, %v408_v2  ;;  %v895_v20 = vpack.c.bf16 %v1117_v12, %v1113_v4  ;;  %v651_v29 = vmul.f32 %v410_v11, %v410_v11  ;;  %v676_v33 = vadd.f32 %v675_v22, %v650_v15 }
 0x105   : > { %v414_v19 = vpop.f32.mrf.mxu0  ;;  %v1121_v21 = vpop.f32.mrf.mxu1  ;;  %v600_v35 = vadd.f32 %v599_v23, %v410_v11  ;;  %v662_v11 = vmul.f32 %v1097_v44, %v1097_v44  ;;  %v661_v15 = vmul.f32 %v1093_v40, %v1093_v40 }
 0x106   : > { %564 = vst [vmem:[%s1075_s30 + $0x28] sm:$0xff] %v887_v16  ;;  %v652_v25 = vmul.f32 %v414_v19, %v414_v19  ;;  %572 = vst [vmem:[%s1075_s30 + $0x68] sm:$0xff] %v895_v20  ;;  %v580_v36 = vadd.f32 %v579_v24, %v414_v19  ;;  %v697_v52 = vadd.f32 %v696_v39, %v651_v29 }
 0x107   : > { %v416_v30 = vpop.f32.mrf.mxu0  ;;  %v1125_v31 = vpop.f32.mrf.mxu1  ;;  %v665_v24 = vmul.f32 %v1109_v59, %v1109_v59 }
 0x108   : > { %v888_v37 = vpack.c.bf16 %v416_v30, %v414_v19  ;;  %v653_v41 = vmul.f32 %v416_v30, %v416_v30  ;;  %v896_v43 = vpack.c.bf16 %v1125_v31, %v1121_v21  ;;  %v677_v46 = vadd.f32 %v676_v33, %v652_v25 }
 0x109   : > { %v418_v42 = vpop.f32.mrf.mxu0  ;;  %v458_v45 = vpop.f32.mrf.mxu1  ;;  %v601_v48 = vadd.f32 %v600_v35, %v416_v30  ;;  %v663_v19 = vmul.f32 %v1101_v47, %v1101_v47  ;;  %v667_v30 = vmul.f32 %v1117_v12, %v1117_v12 }
 0x10a   : > { %565 = vst [vmem:[%s1075_s30 + $0x30] sm:$0xff] %v888_v37  ;;  %v581_v49 = vadd.f32 %v580_v36, %v418_v42  ;;  %v654_v50 = vmul.f32 %v418_v42, %v418_v42  ;;  %573 = vst [vmem:[%s1075_s30 + $0x70] sm:$0xff] %v896_v43  ;;  %v698_v61 = vadd.f32 %v697_v52, %v653_v41 }
 0x10b   : > { %v420_v54 = vpop.f32.mrf.mxu0  ;;  %v460_v55 = vpop.f32.mrf.mxu1  ;;  %v670_v37 = vmul.f32 %v458_v45, %v458_v45 }
 0x10c   : > { %v582_v56 = vadd.f32 %v581_v49, %v1070_v26  ;;  %v678_v57 = vadd.f32 %v677_v46, %v654_v50  ;;  %v889_v58 = vpack.c.bf16 %v420_v54, %v418_v42  ;;  %v602_v60 = vadd.f32 %v601_v48, %v420_v54 }
 0x10d   : > { %v655_v62 = vmul.f32 %v420_v54, %v420_v54  ;;  %v897_v63 = vpack.c.bf16 %v460_v55, %v458_v45  ;;  %v660_v26 = vmul.f32 %v1089_v38, %v1089_v38  ;;  %v671_v48 = vmul.f32 %v460_v55, %v460_v55 }
 0x10e   : > { %v583_v1 = vadd.f32 %v582_v56, %v1081_v32  ;;  %v679_v2 = vadd.f32 %v678_v57, %v656_v51  ;;  %566 = vst [vmem:[%s1075_s30 + $0x38] sm:$0xff] %v889_v58  ;;  %v603_v3 = vadd.f32 %v602_v60, %v1077_v28  ;;  %v659_v32 = vmul.f32 %v1085_v34, %v1085_v34 }
 0x10f   : > { %v699_v6 = vadd.f32 %v698_v61, %v655_v62  ;;  %574 = vst [vmem:[%s1075_s30 + $0x78] sm:$0xff] %v897_v63  ;;  %v623_v57 = vlaneseq }
 0x110   : > { %v680_v7 = vadd.f32 %v679_v2, %v658_v0  ;;  %v604_v8 = vadd.f32 %v603_v3, %v1085_v34  ;;  %v584_v9 = vadd.f32 %v583_v1, %v1089_v38 }
 0x111   : > { %v700_v10 = vadd.f32 %v699_v6, %v657_v5  ;;  %v624_v2 = vshrl.u32 %v623_v57, 7  ;;  %vm637_vm0 = vcmp.lt.s32.totalorder %v623_v57, 256 }
 0x112   : > { %v605_v13 = vadd.f32 %v604_v8, %v1093_v40  ;;  %v585_v28 = vadd.f32 %v584_v9, %v1097_v44  ;;  %v681_v14 = vadd.f32 %v680_v7, %v660_v26  ;;  %v666_v44 = vmul.f32 %v1113_v4, %v1113_v4 }
 0x113   : > { %v701_v16 = vadd.f32 %v700_v10, %v659_v32 }
 0x114   : > { %v586_v38 = vadd.f32 %v585_v28, %v1105_v53  ;;  %v682_v18 = vadd.f32 %v681_v14, %v662_v11  ;;  %v606_v34 = vadd.f32 %v605_v13, %v1101_v47  ;;  %v668_v47 = vmul.f32 %v1121_v21, %v1121_v21 }
 0x115   : > { %v702_v20 = vadd.f32 %v701_v16, %v661_v15 }
 0x116   : > { %v587_v22 = vadd.f32 %v586_v38, %v1113_v4  ;;  %v683_v23 = vadd.f32 %v682_v18, %v664_v17  ;;  %v607_v40 = vadd.f32 %v606_v34, %v1109_v59  ;;  %v669_v59 = vmul.f32 %v1125_v31, %v1125_v31 }
 0x117   : > { %v703_v25 = vadd.f32 %v702_v20, %v663_v19 }
 0x118   : > { %v684_v53 = vadd.f32 %v683_v23, %v666_v44  ;;  %v608_v27 = vadd.f32 %v607_v40, %v1117_v12  ;;  %v588_v29 = vadd.f32 %v587_v22, %v1121_v21  ;;  %v965_v12 = vmov 1966171168  }
 0x119   : > { %v704_v33 = vadd.f32 %v703_v25, %v665_v24  ;;  %v621_v51 = vunpack.c.l.s4 %v965_v12 }
 0x11a   : > { %v685_v4 = vadd.f32 %v684_v53, %v668_v47  ;;  %v609_v35 = vadd.f32 %v608_v27, %v1125_v31  ;;  %v589_v36 = vadd.f32 %v588_v29, %v458_v45 }
 0x11b   : > { %v705_v39 = vadd.f32 %v704_v33, %v667_v30  ;;  %v622_v62 = vunpack.c.0.s8 %v621_v51 }
 0x11c   : > { %v590_v41 = vrot.slane %v589_v36, 4  ;;  %v686_v42 = vadd.f32 %v685_v4, %v670_v37  ;;  %v610_v43 = vadd.f32 %v609_v35, %v460_v55 }
 0x11d   : > { %v706_v46 = vadd.f32 %v705_v39, %v669_v59  ;;  %v625_v9 = vsub.s32 %v622_v62, %v624_v2 }
 0x11e   : > { %v591_v21 = vadd.f32 %v590_v41, %v589_v36  ;;  %v687_v49 = vrot.slane %v686_v42, 4  ;;  %v611_v50 = vrot.slane %v610_v43, 4 }
 0x11f   : > { %v707_v52 = vadd.f32 %v706_v46, %v671_v48 }
 0x120   : > { %v592_v54 = vrot.slane %v591_v21, 2  ;;  %v688_v56 = vadd.f32 %v687_v49, %v686_v42  ;;  %v612_v45 = vadd.f32 %v611_v50, %v610_v43 }
 0x121   : > { %v708_v58 = vrot.slane %v707_v52, 4 }
 0x122   : > { %v593_v60 = vadd.f32 %v592_v54, %v591_v21  ;;  %v689_v31 = vrot.slane %v688_v56, 2  ;;  %v613_v61 = vrot.slane %v612_v45, 2 }
 0x123   : > { %v709_v63 = vadd.f32 %v708_v58, %v707_v52 }
 0x124   : > { %v594_v0 = vrot.slane %v593_v60, 1  ;;  %v690_v55 = vadd.f32 %v689_v31, %v688_v56  ;;  %v614_v1 = vadd.f32 %v613_v61, %v612_v45 }
 0x125   : > { %v710_v3 = vrot.slane %v709_v63, 2 }
 0x126   : > { %v615_v5 = vrot.slane %v614_v1, 1  ;;  %v691_v6 = vrot.slane %v690_v55, 1  ;;  %v595_v7 = vadd.f32 %v594_v0, %v593_v60 }
 0x127   : > { %v711_v26 = vadd.f32 %v710_v3, %v709_v63 }
 0x128   : > { %v616_v8 = vadd.f32 %v615_v5, %v614_v1  ;;  %v692_v11 = vadd.f32 %v691_v6, %v690_v55 }
 0x129   : > { %v712_v32 = vrot.slane %v711_v26, 1 }
 0x12a   : > { %v619_v10 = vcombine.low %v595_v7, %v616_v8 }
 0x12b   : > { %v713_v13 = vadd.f32 %v712_v32, %v711_v26 }
 0x12c   : > { %v626_v28 = vrot.slane %v619_v10, %v625_v9 }
 0x12d   : > { %v716_v14 = vcombine.low %v692_v11, %v713_v13 }
 0x12e   : > { %v633_v15 = vrot.slane %v626_v28, %v625_v9 }
 0x12f   : > { %v723_v16 = vrot.slane %v716_v14, %v625_v9 }
 0x130   : > { %639 = vst.msk [vmem:[%s188_s6] ss:$2 sm:$0x3] %vm637_vm0, %v633_v15 }
 0x131   : > { %v730_v17 = vrot.slane %v723_v16, %v625_v9 }
 0x133   : > { %877 = vst.msk [vmem:[%s188_s6 + $0x1] ss:$2 sm:$0x3] %vm637_vm0, %v730_v17 }
 0x134 PF: > { %s14_s12 = sadd.s32 1, %s962_s12  }
 0x135   : > { %p11_p5 = scmp.ge.s32.totalorder %s14_s12, 4  }
 0x137   :  { %13 = sbr.rel (!%p11_p5) target bundleno = 1 (0x1), region = 71 }

// kernel: res_block_downsample.7
= control target key start
LH: loop header
LB: loop body
LE: loop exit
PB: predicated region body
PF: predicated region fallthrough
CT: control target
= control target key end

     0   :  { %s1017_s27 = smov 0   ;;  %s1019_s28 = smov 0   ;;  %s1356_s0 = inlined_call_operand.vmem [shape: bf16[256,128], index: 0, kind: input, shape index: {}]   ;;  %s1357_s1 = inlined_call_operand.vmem [shape: bf16[256,256], index: 1, kind: input, shape index: {}]   ;;  %s1358_s2 = inlined_call_operand.vmem [shape: f32[2,128], index: 2, kind: input, shape index: {}]   ;;  %s1359_s3 = inlined_call_operand.vmem [shape: f32[1,128], index: 3, kind: input, shape index: {}]   ;;  %s1360_s4 = inlined_call_operand.vmem [shape: f32[1,128], index: 4, kind: input, shape index: {}]   ;;  %s1361_s5 = inlined_call_operand.vmem [shape: f32[2,128], index: 5, kind: input, shape index: {}]   ;;  %s1362_s6 = inlined_call_operand.vmem [shape: f32[1,128], index: 6, kind: input, shape index: {}]   ;;  %s1363_s7 = inlined_call_operand.vmem [shape: f32[1,128], index: 7, kind: input, shape index: {}]   ;;  %s1364_s8 = inlined_call_operand.vmem [shape: f32[256,128], index: 8, kind: output, shape index: {}]  }
   0x1   :  { %s1021_s29 = smov 0  }
   0x2 LB: > { %s808_s30 = sadd.s32 4294967295, %s969_s29   ;;  %s1034_s9 = sadd.s32 1, %s969_s29   ;;  %s969_s29 = sphi %s1021_s29, %s1367_s29   ;;  %s965_s28 = sphi %s1019_s28, %s1366_s28   ;;  %s961_s27 = sphi %s1017_s27, %s1365_s27  }
   0x3   : > { %s48_s10 = ssub.s32 %s969_s29, %s1034_s9  ;;  %s51_s11 = sadd.s32 1, %s965_s28 }
   0x4   : > { %p49_p0 = scmp.eq.s32.totalorder %s48_s10, 0  ;;  %p58_p1 = scmp.ne.s32.totalorder %s965_s28, %s961_s27 }
   0x5   : > { %p59_p2 = scmp.eq.s32.totalorder %s969_s29, 0  ;;  %p811_p4 = scmp.ge.s32.totalorder %s969_s29, 2 }
   0x6   : > { %s1043_s12 = scalar_select %p49_p0, %s965_s28, %s51_s11  }
   0x7   : > { %p60_p3 = por %p59_p2, %p58_p1  ;;  %254 = sbr.rel (%p811_p4) target bundleno = 26 (0x1a), region = 40 }
   0xc   : > { %266 = sbr.rel (!%p60_p3) target bundleno = 26 (0x1a), region = 48  ;;  %s268_s13 = sand.u32 (%p60_p3), 1, %s965_s28  }
   0xd   : > { %s839_s14 = sshll.u32 (%p60_p3), %s969_s29, 7  ;;  %s812_s15 = sshll.u32 (%p60_p3), %s268_s13, 6 }
   0xe   : > { %s1051_s18 = scalar_lea.vmem (%p60_p3), %s1357_s1, %s839_s14  ;;  %s270_s19 = scalar_lea.vmem (%p60_p3), [#allocation2], %s812_s15 }
   0xf   : > { %v815_v0 = vld [vmem:[%s1051_s18 + $0x4] sm:$0xf] (%p60_p3)  ;;  %v816_v1 = vld [vmem:[%s1051_s18 + $0xc] sm:$0xf] (%p60_p3)  ;;  %v817_v2 = vld [vmem:[%s1051_s18 + $0x14] sm:$0xf] (%p60_p3) }
  0x10   : > { %293 = vst [vmem:[%s270_s19] sm:$0xf] (%p60_p3), %v815_v0  ;;  %295 = vst [vmem:[%s270_s19 + $0x4] sm:$0xf] (%p60_p3), %v816_v1  ;;  %v818_v3 = vld [vmem:[%s1051_s18 + $0x1c] sm:$0xf] (%p60_p3) }
  0x11   : > { %v819_v4 = vld [vmem:[%s1051_s18 + $0x24] sm:$0xf]  ;;  %297 = vst [vmem:[%s270_s19 + $0x8] sm:$0xf] %v817_v2  ;;  %299 = vst [vmem:[%s270_s19 + $0xc] sm:$0xf] %v818_v3 }
  0x12   : > { %301 = vst [vmem:[%s270_s19 + $0x10] sm:$0xf] %v819_v4  ;;  %v820_v5 = vld [vmem:[%s1051_s18 + $0x2c] sm:$0xf]  ;;  %v821_v6 = vld [vmem:[%s1051_s18 + $0x34] sm:$0xf] }
  0x13   : > { %v822_v7 = vld [vmem:[%s1051_s18 + $0x3c] sm:$0xf]  ;;  %303 = vst [vmem:[%s270_s19 + $0x14] sm:$0xf] %v820_v5  ;;  %305 = vst [vmem:[%s270_s19 + $0x18] sm:$0xf] %v821_v6 }
  0x14   : > { %307 = vst [vmem:[%s270_s19 + $0x1c] sm:$0xf] %v822_v7  ;;  %v823_v8 = vld [vmem:[%s1051_s18 + $0x44] sm:$0xf]  ;;  %v824_v9 = vld [vmem:[%s1051_s18 + $0x4c] sm:$0xf] }
  0x15   : > { %v825_v10 = vld [vmem:[%s1051_s18 + $0x54] sm:$0xf]  ;;  %309 = vst [vmem:[%s270_s19 + $0x20] sm:$0xf] %v823_v8  ;;  %311 = vst [vmem:[%s270_s19 + $0x24] sm:$0xf] %v824_v9 }
  0x16   : > { %313 = vst [vmem:[%s270_s19 + $0x28] sm:$0xf] %v825_v10  ;;  %v826_v11 = vld [vmem:[%s1051_s18 + $0x5c] sm:$0xf]  ;;  %v827_v12 = vld [vmem:[%s1051_s18 + $0x64] sm:$0xf] }
  0x17   : > { %v828_v13 = vld [vmem:[%s1051_s18 + $0x6c] sm:$0xf]  ;;  %315 = vst [vmem:[%s270_s19 + $0x2c] sm:$0xf] %v826_v11  ;;  %317 = vst [vmem:[%s270_s19 + $0x30] sm:$0xf] %v827_v12 }
  0x18   : > { %319 = vst [vmem:[%s270_s19 + $0x34] sm:$0xf] %v828_v13  ;;  %v829_v14 = vld [vmem:[%s1051_s18 + $0x74] sm:$0xf]  ;;  %v830_v15 = vld [vmem:[%s1051_s18 + $0x7c] sm:$0xf] }
  0x19   : > { %321 = vst [vmem:[%s270_s19 + $0x38] sm:$0xf] %v829_v14  ;;  %323 = vst [vmem:[%s270_s19 + $0x3c] sm:$0xf] %v830_v15 }
  0x1a PF: > { %p831_p5 = scmp.ge.s32.totalorder %s969_s29, 1  ;;  %p378_p6 = scmp.lt.s32.totalorder %s969_s29, 3 }
  0x1c   : > { %p379_p7 = pnand %p831_p5, %p378_p6 }
  0x1d   : > { %s833_s24 = sshll.u32 (!%p379_p7), %s808_s30, 4  ;;  %s385_s25 = sand.u32 (!%p379_p7), 1, %s961_s27  }
  0x1e   : > { %382 = sbr.rel (%p379_p7) target bundleno = 110 (0x6e), region = 89  ;;  %p424_p8 = scmp.lt.s32.totalorder (!%p379_p7), %s833_s24, 31 }
  0x1f   : > { %s832_s26 = sshll.u32 (!%p379_p7), %s385_s25, 6 }
  0x20   : > { %s1098_s27 = scalar_lea.vmem (!%p379_p7), [#allocation2], %s832_s26 }
  0x23   : > { %v436_v16 = vld [vmem:[%s1358_s2] sm:$0x3]  ;;  %s1369_s24 = smov (!%p424_p8, %s833_s24), 31  ;;  %v971_v30 = vmov 1966171168   ;;  %v453_v32 = vlaneseq  ;;  %v1104_v37 = vld [vmem:[%s1098_s27 + $0x8] sm:$0xff]  }
  0x24   : > { %v437_v17 = vld [vmem:[%s1361_s5] sm:$0x3]  ;;  %v1077_v18 = vmul.f32 0.0078125, %v436_v16  ;;  %v451_v31 = vunpack.c.l.s4 %v971_v30  ;;  %s834_s10 = sshll.u32 %s1369_s24, 2  ;;  %v1107_v38 = vld [vmem:[%s1098_s27 + $0x10] sm:$0xff]   ;;  %v1110_v39 = vld [vmem:[%s1098_s27 + $0x18] sm:$0xff]   ;;  %v878_v47 = vunpack.c.l.bf16 %v1104_v37  ;;  %v879_v48 = vunpack.c.h.bf16 %v1104_v37 }
  0x25   : > { %v1079_v19 = vmul.f32 0.0078125, %v437_v17  ;;  %v454_v34 = vshrl.u32 %v453_v32, 7  ;;  %s1096_s11 = scalar_lea.vmem %s1356_s0, %s834_s10  ;;  %v1101_v36 = vld [vmem:[%s1098_s27] sm:$0xff]   ;;  %v882_v52 = vunpack.c.l.bf16 %v1107_v38  ;;  %v883_v53 = vunpack.c.h.bf16 %v1107_v38  ;;  %v1149_v2 = vld [vmem:[%s1098_s27 + $0x28] sm:$0xff]   ;;  %v1167_v14 = vld [vmem:[%s1098_s27 + $0x30] sm:$0xff]   ;;  %s836_s21 = sshll.u32 %s1369_s24, 3 }
  0x26   : > { %v441_v20 = vmul.f32 %v1077_v18, %v1077_v18  ;;  %v452_v33 = vunpack.c.0.s8 %v451_v31  ;;  %v1113_v40 = vld [vmem:[%s1096_s11] sm:$0xff]   ;;  %v874_v44 = vunpack.c.l.bf16 %v1101_v36  ;;  %v875_v45 = vunpack.c.h.bf16 %v1101_v36  ;;  %v1123_v46 = vld [vmem:[%s1096_s11 + $0x8] sm:$0xff]   ;;  %v1128_v51 = vld [vmem:[%s1096_s11 + $0x10] sm:$0xff]   ;;  %s1254_s24 = scalar_lea.vmem %s1364_s8, %s836_s21 }
  0x27   : > { %v472_v21 = vmul.f32 %v1079_v19, %v1079_v19  ;;  %v1115_v41 = vsub.s32 0, %v454_v34  ;;  %v1118_v42 = vld [vmem:[%s1098_s27 + $0x20] sm:$0xff]   ;;  %v1133_v54 = vld [vmem:[%s1096_s11 + $0x18] sm:$0xff]   ;;  %v886_v55 = vunpack.c.l.bf16 %v1110_v39  ;;  %v842_v57 = vunpack.c.l.bf16 %v1113_v40  ;;  %v1146_v1 = vld [vmem:[%s1096_s11 + $0x28] sm:$0xff]  }
  0x28   : > { %v443_v22 = vrot.slane %v441_v20, 7  ;;  %v455_v35 = vsub.s32 %v452_v33, %v454_v34  ;;  %v887_v58 = vunpack.c.h.bf16 %v1110_v39  ;;  %v1139_v59 = vld [vmem:[%s1096_s11 + $0x20] sm:$0xff]   ;;  %v890_v60 = vunpack.c.l.bf16 %v1118_v42  ;;  %v1158_v8 = vld [vmem:[%s1096_s11 + $0x30] sm:$0xff]  }
  0x29   : > { %v474_v23 = vrot.slane %v472_v21, 7  ;;  %v843_v62 = vunpack.c.h.bf16 %v1113_v40  ;;  %v846_v63 = vunpack.c.l.bf16 %v1123_v46  ;;  %v847_v0 = vunpack.c.h.bf16 %v1123_v46  ;;  %v438_v3 = vld [vmem:[%s1359_s3] sm:$0x1]  ;;  %v1173_v21 = vld [vmem:[%s1096_s11 + $0x38] sm:$0xff]  }
  0x2a   : > { %v445_v24 = vsub.f32 %v1077_v18, %v443_v22  ;;  %v850_v5 = vunpack.c.l.bf16 %v1128_v51  ;;  %v851_v6 = vunpack.c.h.bf16 %v1128_v51  ;;  %v854_v7 = vunpack.c.l.bf16 %v1133_v54  ;;  %v469_v10 = vld [vmem:[%s1362_s6] sm:$0x1]  ;;  %v1176_v22 = vld [vmem:[%s1098_s27 + $0x38] sm:$0xff]  }
  0x2b   : > { %v476_v25 = vsub.f32 %v1079_v19, %v474_v23  ;;  %v855_v11 = vunpack.c.h.bf16 %v1133_v54  ;;  %v858_v12 = vunpack.c.l.bf16 %v1139_v59  ;;  %v859_v13 = vunpack.c.h.bf16 %v1139_v59  ;;  %v470_v33 = vld [vmem:[%s1363_s7] sm:$0x1] }
  0x2c   : > { %v446_v26 = vmax.f32 %v445_v24, 0.0  ;;  %v891_v16 = vunpack.c.h.bf16 %v1118_v42  ;;  %v862_v17 = vunpack.c.l.bf16 %v1146_v1  ;;  %v894_v20 = vunpack.c.l.bf16 %v1149_v2 }
  0x2d   : > { %v477_v27 = vmax.f32 %v476_v25, 0.0  ;;  %v863_v24 = vunpack.c.h.bf16 %v1146_v1  ;;  %v895_v25 = vunpack.c.h.bf16 %v1149_v2  ;;  %v867_v30 = vunpack.c.h.bf16 %v1158_v8 }
  0x2e   : > { %v447_v28 = vadd.f32 1e-05, %v446_v26  ;;  %v866_v26 = vunpack.c.l.bf16 %v1158_v8  ;;  %v899_v31 = vunpack.c.h.bf16 %v1167_v14  ;;  %v902_v40 = vunpack.c.l.bf16 %v1176_v22 }
  0x2f   : > { %v478_v29 = vadd.f32 1e-05, %v477_v27  ;;  %v439_v27 = vld [vmem:[%s1360_s4] sm:$0x1] }
  0x30   : > { %943 = vrsqrt.f32 %v447_v28 }
  0x31   : > { %945 = vrsqrt.f32 %v478_v29  ;;  %v898_v29 = vunpack.c.l.bf16 %v1167_v14 }
  0x3d   : > { %v944_v43 = vpop.eup %943 }
  0x3e   : > { %v946_v49 = vpop.eup %945  ;;  %v456_v50 = vrot.slane %v944_v43, %v455_v35 }
  0x3f   : > { %v487_v56 = vrot.slane %v946_v49, %v455_v35  ;;  %v871_v49 = vunpack.c.h.bf16 %v1173_v21 }
  0x40   : > { %v457_v61 = vcombine.high %v456_v50, %v456_v50 }
  0x41   : > { %v488_v4 = vcombine.high %v487_v56, %v487_v56 }
  0x42   : > { %v464_v9 = vrot.slane %v457_v61, %v455_v35 }
  0x43   : > { %v495_v15 = vrot.slane %v488_v4, %v455_v35  ;;  %v870_v35 = vunpack.c.l.bf16 %v1173_v21 }
  0x44   : > { %v466_v23 = vmul.f32 %v464_v9, %v438_v3 }
  0x45   : > { %v497_v28 = vmul.f32 %v495_v15, %v469_v10 }
  0x46   : > { %v467_v32 = vmul.f32 %v466_v23, %v1077_v18  ;;  %v1192_v34 = vrot.slane %v466_v23, %v1115_v41  ;;  %v903_v18 = vunpack.c.h.bf16 %v1176_v22 }
  0x47   : > { %v498_v43 = vmul.f32 %v497_v28, %v1079_v19  ;;  %v1198_v46 = vrot.slane %v497_v28, %v1115_v41 }
  0x48   : > { %v468_v50 = vsub.f32 %v439_v27, %v467_v32  ;;  %v538_v51 = vmul.f32 %v842_v57, %v1192_v34  ;;  %v539_v56 = vmul.f32 %v843_v62, %v1192_v34  ;;  %v540_v61 = vmul.f32 %v846_v63, %v1192_v34 }
  0x49   : > { %v499_v3 = vsub.f32 %v470_v33, %v498_v43  ;;  %v614_v4 = vmul.f32 %v874_v44, %v1198_v46  ;;  %v615_v19 = vmul.f32 %v875_v45, %v1198_v46  ;;  %v616_v9 = vmul.f32 %v878_v47, %v1198_v46 }
  0x4a   : > { %v1215_v10 = vrot.slane %v468_v50, %v1115_v41  ;;  %v541_v57 = vmul.f32 %v847_v0, %v1192_v34  ;;  %v617_v62 = vmul.f32 %v879_v48, %v1198_v46  ;;  %v542_v44 = vmul.f32 %v850_v5, %v1192_v34 }
  0x4b   : > { %v1223_v63 = vrot.slane %v499_v3, %v1115_v41  ;;  %v618_v36 = vmul.f32 %v882_v52, %v1198_v46  ;;  %v543_v45 = vmul.f32 %v851_v6, %v1192_v34  ;;  %v619_v47 = vmul.f32 %v883_v53, %v1198_v46 }
  0x4c   : > { %v560_v0 = vadd.f32 %v1215_v10, %v538_v51  ;;  %v561_v37 = vadd.f32 %v1215_v10, %v539_v56  ;;  %v562_v48 = vadd.f32 %v1215_v10, %v540_v61  ;;  %v563_v5 = vadd.f32 %v1215_v10, %v541_v57 }
  0x4d   : > { %v636_v41 = vadd.f32 %v1223_v63, %v614_v4  ;;  %v637_v15 = vadd.f32 %v1223_v63, %v615_v19  ;;  %v638_v52 = vadd.f32 %v1223_v63, %v616_v9  ;;  %v639_v6 = vadd.f32 %v1223_v63, %v617_v62 }
  0x4e   : > { %v564_v38 = vadd.f32 %v1215_v10, %v542_v44  ;;  %v640_v53 = vadd.f32 %v1223_v63, %v618_v36  ;;  %v565_v23 = vadd.f32 %v1215_v10, %v543_v45  ;;  %v641_v27 = vadd.f32 %v1223_v63, %v619_v47 }
  0x4f   : > { %v652_v28 = vadd.f32 %v636_v41, %v560_v0  ;;  %v653_v32 = vadd.f32 %v637_v15, %v561_v37  ;;  %v654_v33 = vadd.f32 %v638_v52, %v562_v48  ;;  %v655_v43 = vadd.f32 %v639_v6, %v563_v5 }
  0x50   : > { %v656_v50 = vadd.f32 %v640_v53, %v564_v38  ;;  %v657_v51 = vadd.f32 %v641_v27, %v565_v23  ;;  %v544_v56 = vmul.f32 %v854_v7, %v1192_v34  ;;  %v620_v61 = vmul.f32 %v886_v55, %v1198_v46 }
  0x51   : > { %vm668_vm0 = vcmp.ge.f32.partialorder %v652_v28, 0.0  ;;  %v684_v3 = vmul.f32 0.01, %v652_v28  ;;  %vm669_vm1 = vcmp.ge.f32.partialorder %v653_v32, 0.0  ;;  %v685_v4 = vmul.f32 0.01, %v653_v32 }
  0x52   : > { %vm670_vm2 = vcmp.ge.f32.partialorder %v654_v33, 0.0  ;;  %v686_v19 = vmul.f32 0.01, %v654_v33  ;;  %vm671_vm3 = vcmp.ge.f32.partialorder %v655_v43, 0.0  ;;  %v687_v7 = vmul.f32 0.01, %v655_v43 }
  0x53   : > { %v700_v9 = vsel %vm668_vm0, %v652_v28, %v684_v3  ;;  %v701_v55 = vsel %vm669_vm1, %v653_v32, %v685_v4  ;;  %vm672_vm4 = vcmp.ge.f32.partialorder %v656_v50, 0.0  ;;  %v688_v57 = vmul.f32 0.01, %v656_v50 }
  0x54   : > { %716 = vst [vmem:[%s1254_s24] sm:$0xff] %v700_v9  ;;  %717 = vst [vmem:[%s1254_s24 + $0x8] sm:$0xff] %v701_v55  ;;  %v702_v62 = vsel %vm670_vm2, %v654_v33, %v686_v19  ;;  %v703_v44 = vsel %vm671_vm3, %v655_v43, %v687_v7  ;;  %vm673_vm5 = vcmp.ge.f32.partialorder %v657_v51, 0.0  ;;  %v689_v36 = vmul.f32 0.01, %v657_v51 }
  0x55   : > { %718 = vst [vmem:[%s1254_s24 + $0x10] sm:$0xff] %v702_v62  ;;  %719 = vst [vmem:[%s1254_s24 + $0x18] sm:$0xff] %v703_v44  ;;  %v704_v45 = vsel %vm672_vm4, %v656_v50, %v688_v57  ;;  %v566_v47 = vadd.f32 %v1215_v10, %v544_v56  ;;  %v642_v0 = vadd.f32 %v1223_v63, %v620_v61 }
  0x56   : > { %v545_v37 = vmul.f32 %v855_v11, %v1192_v34  ;;  %720 = vst [vmem:[%s1254_s24 + $0x20] sm:$0xff] %v704_v45  ;;  %v705_v48 = vsel %vm673_vm5, %v657_v51, %v689_v36  ;;  %v621_v5 = vmul.f32 %v887_v58, %v1198_v46  ;;  %v546_v41 = vmul.f32 %v858_v12, %v1192_v34 }
  0x57   : > { %v622_v15 = vmul.f32 %v890_v60, %v1198_v46  ;;  %721 = vst [vmem:[%s1254_s24 + $0x28] sm:$0xff] %v705_v48  ;;  %v658_v52 = vadd.f32 %v642_v0, %v566_v47  ;;  %v547_v54 = vmul.f32 %v859_v13, %v1192_v34  ;;  %v623_v39 = vmul.f32 %v891_v16, %v1198_v46 }
  0x58   : > { %v567_v6 = vadd.f32 %v1215_v10, %v545_v37  ;;  %v643_v58 = vadd.f32 %v1223_v63, %v621_v5  ;;  %v568_v11 = vadd.f32 %v1215_v10, %v546_v41  ;;  %v548_v60 = vmul.f32 %v862_v17, %v1192_v34 }
  0x59   : > { %v644_v12 = vadd.f32 %v1223_v63, %v622_v15  ;;  %vm674_vm6 = vcmp.ge.f32.partialorder %v658_v52, 0.0  ;;  %v690_v38 = vmul.f32 0.01, %v658_v52  ;;  %v569_v59 = vadd.f32 %v1215_v10, %v547_v54 }
  0x5a   : > { %v645_v13 = vadd.f32 %v1223_v63, %v623_v39  ;;  %v659_v53 = vadd.f32 %v643_v58, %v567_v6  ;;  %v570_v16 = vadd.f32 %v1215_v10, %v548_v60  ;;  %v624_v23 = vmul.f32 %v894_v20, %v1198_v46 }
  0x5b   : > { %v660_v42 = vadd.f32 %v644_v12, %v568_v11  ;;  %v706_v27 = vsel %vm674_vm6, %v658_v52, %v690_v38  ;;  %v549_v17 = vmul.f32 %v863_v24, %v1192_v34  ;;  %v625_v32 = vmul.f32 %v895_v25, %v1198_v46 }
  0x5c   : > { %v661_v28 = vadd.f32 %v645_v13, %v569_v59  ;;  %722 = vst [vmem:[%s1254_s24 + $0x30] sm:$0xff] %v706_v27  ;;  %vm675_vm7 = vcmp.ge.f32.partialorder %v659_v53, 0.0  ;;  %v691_v33 = vmul.f32 0.01, %v659_v53  ;;  %v646_v50 = vadd.f32 %v1223_v63, %v624_v23 }
  0x5d   : > { %vm676_vm8 = vcmp.ge.f32.partialorder %v660_v42, 0.0  ;;  %v692_v43 = vmul.f32 0.01, %v660_v42  ;;  %v571_v51 = vadd.f32 %v1215_v10, %v549_v17  ;;  %v647_v24 = vadd.f32 %v1223_v63, %v625_v32 }
  0x5e   : > { %vm677_vm9 = vcmp.ge.f32.partialorder %v661_v28, 0.0  ;;  %v693_v20 = vmul.f32 0.01, %v661_v28  ;;  %v707_v1 = vsel %vm675_vm7, %v659_v53, %v691_v33  ;;  %v550_v2 = vmul.f32 %v866_v26, %v1192_v34 }
  0x5f   : > { %v708_v56 = vsel %vm676_vm8, %v660_v42, %v692_v43  ;;  %723 = vst [vmem:[%s1254_s24 + $0x38] sm:$0xff] %v707_v1  ;;  %v662_v61 = vadd.f32 %v646_v50, %v570_v16  ;;  %v626_v3 = vmul.f32 %v898_v29, %v1198_v46  ;;  %v551_v4 = vmul.f32 %v867_v30, %v1192_v34 }
  0x60   : > { %724 = vst [vmem:[%s1254_s24 + $0x40] sm:$0xff] %v708_v56  ;;  %v709_v25 = vsel %vm677_vm9, %v661_v28, %v693_v20  ;;  %v663_v19 = vadd.f32 %v647_v24, %v571_v51  ;;  %v572_v7 = vadd.f32 %v1215_v10, %v550_v2  ;;  %v627_v26 = vmul.f32 %v899_v31, %v1198_v46 }
  0x61   : > { %725 = vst [vmem:[%s1254_s24 + $0x48] sm:$0xff] %v709_v25  ;;  %v552_v9 = vmul.f32 %v870_v35, %v1192_v34  ;;  %vm678_vm10 = vcmp.ge.f32.partialorder %v662_v61, 0.0  ;;  %v694_v29 = vmul.f32 0.01, %v662_v61  ;;  %v648_v55 = vadd.f32 %v1223_v63, %v626_v3 }
  0x62   : > { %v573_v8 = vadd.f32 %v1215_v10, %v551_v4  ;;  %vm679_vm11 = vcmp.ge.f32.partialorder %v663_v19, 0.0  ;;  %v695_v30 = vmul.f32 0.01, %v663_v19  ;;  %v649_v57 = vadd.f32 %v1223_v63, %v627_v26 }
  0x63   : > { %v574_v62 = vadd.f32 %v1215_v10, %v552_v9  ;;  %v710_v44 = vsel %vm678_vm10, %v662_v61, %v694_v29  ;;  %v664_v14 = vadd.f32 %v648_v55, %v572_v7  ;;  %v628_v31 = vmul.f32 %v902_v40, %v1198_v46 }
  0x64   : > { %v553_v35 = vmul.f32 %v871_v49, %v1192_v34  ;;  %726 = vst [vmem:[%s1254_s24 + $0x50] sm:$0xff] %v710_v44  ;;  %v711_v36 = vsel %vm679_vm11, %v663_v19, %v695_v30  ;;  %v665_v45 = vadd.f32 %v649_v57, %v573_v8  ;;  %v629_v47 = vmul.f32 %v903_v18, %v1198_v46 }
  0x65   : > { %727 = vst [vmem:[%s1254_s24 + $0x58] sm:$0xff] %v711_v36  ;;  %vm680_vm12 = vcmp.ge.f32.partialorder %v664_v14, 0.0  ;;  %v696_v0 = vmul.f32 0.01, %v664_v14  ;;  %v650_v37 = vadd.f32 %v1223_v63, %v628_v31 }
  0x66   : > { %v575_v40 = vadd.f32 %v1215_v10, %v553_v35  ;;  %vm681_vm13 = vcmp.ge.f32.partialorder %v665_v45, 0.0  ;;  %v697_v21 = vmul.f32 0.01, %v665_v45  ;;  %v651_v34 = vadd.f32 %v1223_v63, %v629_v47 }
  0x67   : > { %v712_v49 = vsel %vm680_vm12, %v664_v14, %v696_v0  ;;  %v666_v48 = vadd.f32 %v650_v37, %v574_v62 }
  0x68   : > { %728 = vst [vmem:[%s1254_s24 + $0x60] sm:$0xff] %v712_v49  ;;  %v713_v5 = vsel %vm681_vm13, %v665_v45, %v697_v21  ;;  %v667_v41 = vadd.f32 %v651_v34, %v575_v40 }
  0x69   : > { %729 = vst [vmem:[%s1254_s24 + $0x68] sm:$0xff] %v713_v5  ;;  %vm682_vm14 = vcmp.ge.f32.partialorder %v666_v48, 0.0  ;;  %v698_v22 = vmul.f32 0.01, %v666_v48 }
  0x6a   : > { %vm683_vm15 = vcmp.ge.f32.partialorder %v667_v41, 0.0  ;;  %v699_v46 = vmul.f32 0.01, %v667_v41 }
  0x6b   : > { %v714_v18 = vsel %vm682_vm14, %v666_v48, %v698_v22 }
  0x6c   : > { %730 = vst [vmem:[%s1254_s24 + $0x70] sm:$0xff] %v714_v18  ;;  %v715_v15 = vsel %vm683_vm15, %v667_v41, %v699_v46 }
  0x6d   : > { %731 = vst [vmem:[%s1254_s24 + $0x78] sm:$0xff] %v715_v15 }
  0x6e PF: > { %p15_p9 = scmp.ge.s32.totalorder %s1034_s9, 4   ;;  %s1365_s27 = smov %s965_s28 }
  0x6f   : > { %s1366_s28 = smov %s1043_s12  ;;  %s1367_s29 = smov %s1034_s9 }
  0x70   :  { %17 = sbr.rel (!%p15_p9) target bundleno = 2 (0x2), region = 131 }

// kernel: res_block_downsample.6
= control target key start
LH: loop header
LB: loop body
LE: loop exit
PB: predicated region body
PF: predicated region fallthrough
CT: control target
= control target key end

     0   :  { %s3699_s15 = smov 0   ;;  %s4457_s0 = inlined_call_operand.vmem [shape: bf16[2,176,128], index: 0, kind: input, shape index: {}]   ;;  %s4458_s1 = inlined_call_operand.vmem [shape: bf16[9,128,128], index: 1, kind: input, shape index: {}]   ;;  %s4459_s2 = inlined_call_operand.vmem [shape: f32[128,1], index: 2, kind: input, shape index: {}]   ;;  %s4460_s3 = inlined_call_operand.vmem [shape: bf16[2,128,128], index: 3, kind: output, shape index: {0}]   ;;  %s4461_s4 = inlined_call_operand.vmem [shape: f32[2,2,128], index: 4, kind: output, shape index: {1}]  }
   0x1 LB: > { %s2750_s16 = sadd.s32 4294967295, %s3671_s15   ;;  %p2754_p0 = scmp.ge.s32.totalorder %s3671_s15, 1  ;;  %s3671_s15 = sphi %s3699_s15, %s15_s15  }
   0x2   : > { %p165_p1 = scmp.lt.s32.totalorder %s3671_s15, 3 }
   0x4   : > { %p166_p2 = pnand %p2754_p0, %p165_p1 }
   0x6   : > { %169 = sbr.rel (%p166_p2) target bundleno = 420 (0x1a4), region = 32 }
   0xb   : > { %v3547_v0 = vld [vmem:[%s4458_s1 + $0x78] sm:$0xff]   ;;  %p195_p3 = scmp.lt.s32.totalorder %s2750_s16, 1  ;;  %v3549_v2 = vld [vmem:[%s4458_s1 + $0x70] sm:$0xff]   ;;  %v3551_v4 = vld [vmem:[%s4458_s1 + $0x68] sm:$0xff]   ;;  %vm303_vm0 = vsmask.f32 7424 }
   0xc   : > { %v3548_v1 = vld [vmem:[%s4458_s1 + $0x38] sm:$0xff]   ;;  %3231 = vmatprep.subr.bf16.mxu0 %v3547_v0  ;;  %v3550_v3 = vld [vmem:[%s4458_s1 + $0x30] sm:$0xff]   ;;  %v3552_v5 = vld [vmem:[%s4458_s1 + $0x28] sm:$0xff]   ;;  %vm699_vm1 = vcmask 1046528  }
   0xd   : > { %3263 = vmatprep.subr.bf16.mxu1 %v3548_v1  ;;  %3232 = vmatpush3.bf16.msra.mxu0 %v3547_v0  ;;  %s4507_s16 = smov (!%p195_p3, %s2750_s16), 1  ;;  %v3553_v6 = vld [vmem:[%s4458_s1 + $0x60] sm:$0xff]   ;;  %v3555_v8 = vld [vmem:[%s4458_s1 + $0x58] sm:$0xff]   ;;  %v3557_v10 = vld [vmem:[%s4458_s1 + $0x50] sm:$0xff]  }
   0xe   : > { %3264 = vmatpush3.bf16.msra.mxu1 %v3548_v1  ;;  %3233 = vmatprep.subr.bf16.mxu0 %v3549_v2  ;;  %v3554_v7 = vld [vmem:[%s4458_s1 + $0x20] sm:$0xff]   ;;  %s3535_s7 = smul.u32 88, %s4507_s16  ;;  %v3556_v9 = vld [vmem:[%s4458_s1 + $0x18] sm:$0xff]   ;;  %v3558_v11 = vld [vmem:[%s4458_s1 + $0x10] sm:$0xff]   ;;  %s3023_s8 = sshll.u32 %s4507_s16, 6 }
   0xf   : > { %3265 = vmatprep.subr.bf16.mxu1 %v3550_v3  ;;  %v3559_v17 = vld [vmem:[%s4458_s1 + $0x48] sm:$0xff]   ;;  %v3561_v24 = vld [vmem:[%s4458_s1 + $0x40] sm:$0xff]   ;;  %v3566_v36 = vld [vmem:[%s4458_s1 + $0xb8] sm:$0xff]   ;;  %s4407_s11 = scalar_lea.vmem %s4460_s3, %s3023_s8  ;;  %s2758_s12 = sshll.u32 %s4507_s16, 1 }
  0x10   : > { %s3743_s14 = scalar_lea.vmem %s4457_s0, %s3535_s7  ;;  %v3560_v21 = vld [vmem:[%s4458_s1 + $0x8] sm:$0xff]   ;;  %v3562_v29 = vld [vmem:[%s4458_s1] sm:$0xff]   ;;  %v3567_v37 = vld [vmem:[%s4458_s1 + $0xf8] sm:$0xff]   ;;  %s208_s18 = scalar_lea.vmem %s4461_s4, %s2758_s12 }
  0x11   : > { %3234 = vmatpush3.bf16.msra.mxu0 %v3549_v2  ;;  %v210_v12 = vld [vmem:[%s3743_s14] sm:$0xf]  ;;  %v3753_v13 = vld [vmem:[%s3743_s14 + $0x4] sm:$0xf]  ;;  %v3757_v15 = vld [vmem:[%s3743_s14 + $0x8] sm:$0xff]  }
  0x12   : > { %3266 = vmatpush3.bf16.msra.mxu1 %v3550_v3  ;;  %3235 = vmatprep.subr.bf16.mxu0 %v3551_v4  ;;  %v2775_v14 = vcombine.low %v210_v12, %v3753_v13  ;;  %v3760_v16 = vld [vmem:[%s3743_s14 + $0x10] sm:$0xff]   ;;  %v312_v20 = vshll.u32 %v3757_v15, 16  ;;  %v316_v25 = vshrl.u32 %v3757_v15, 16  ;;  %v3775_v28 = vld [vmem:[%s3743_s14 + $0x18] sm:$0xff]   ;;  %v3784_v35 = vld [vmem:[%s3743_s14 + $0x20] sm:$0xff]  }
  0x13   : > { %3267 = vmatprep.subr.bf16.mxu1 %v3552_v5  ;;  %v320_v26 = vshll.u32 %v3760_v16, 16  ;;  %v324_v31 = vshrl.u32 %v3760_v16, 16  ;;  %v328_v32 = vshll.u32 %v3775_v28, 16  ;;  %v3793_v40 = vld [vmem:[%s3743_s14 + $0x28] sm:$0xff]   ;;  %v332_v42 = vshrl.u32 %v3775_v28, 16  ;;  %v3568_v44 = vld [vmem:[%s4458_s1 + $0xb0] sm:$0xff]  }
  0x14   : > { %v305_v18 = vshrl.u32 %v2775_v14, 16  ;;  %v307_v19 = vshll.u32 %v2775_v14, 16  ;;  %3279 = vmatprep.mubr.bf16.mxu1 %v2775_v14  ;;  %v314_v23 = vrot.slane %v312_v20, 1  ;;  %v336_v43 = vshll.u32 %v3784_v35, 16  ;;  %v3569_v45 = vld [vmem:[%s4458_s1 + $0xf0] sm:$0xff]   ;;  %v3572_v52 = vld [vmem:[%s4458_s1 + $0xa8] sm:$0xff]  }
  0x15   : > { %3236 = vmatpush3.bf16.msra.mxu0 %v3551_v4  ;;  %v322_v34 = vrot.slane %v320_v26, 1  ;;  %v330_v39 = vrot.slane %v328_v32, 1  ;;  %v340_v47 = vshrl.u32 %v3784_v35, 16  ;;  %v344_v48 = vshll.u32 %v3793_v40, 16  ;;  %v3809_v51 = vld [vmem:[%s3743_s14 + $0x30] sm:$0xff]   ;;  %v3573_v53 = vld [vmem:[%s4458_s1 + $0xe8] sm:$0xff]  }
  0x16   : > { %3268 = vmatpush3.bf16.msra.mxu1 %v3552_v5  ;;  %3237 = vmatprep.subr.bf16.mxu0 %v3553_v6  ;;  %v309_v22 = vrot.slane %v307_v19, 1  ;;  %v318_v33 = vor.u32 %v316_v25, %v314_v23  ;;  %v338_v50 = vrot.slane %v336_v43, 1  ;;  %v3819_v56 = vld [vmem:[%s3743_s14 + $0x38] sm:$0xff]   ;;  %v348_v58 = vshrl.u32 %v3793_v40, 16  ;;  %v3574_v60 = vld [vmem:[%s4458_s1 + $0xa0] sm:$0xff]   ;;  %v3580_v12 = vld [vmem:[%s4458_s1 + $0x90] sm:$0xff]  }
  0x17   : > { %3269 = vmatprep.subr.bf16.mxu1 %v3554_v7  ;;  %v326_v38 = vor.u32 %v324_v31, %v322_v34  ;;  %v334_v49 = vor.u32 %v332_v42, %v330_v39  ;;  %v346_v55 = vrot.slane %v344_v48, 1  ;;  %v352_v59 = vshll.u32 %v3809_v51, 16  ;;  %v3575_v61 = vld [vmem:[%s4458_s1 + $0xe0] sm:$0xff]   ;;  %v3578_v4 = vld [vmem:[%s4458_s1 + $0x98] sm:$0xff]   ;;  %v3581_v14 = vld [vmem:[%s4458_s1 + $0xd0] sm:$0xff]  }
  0x18   : > { %v310_v27 = vor.u32 %v309_v22, %v305_v18  ;;  %v323_v41 = vsel %vm303_vm0, %v318_v33, %v322_v34  ;;  %v342_v54 = vor.u32 %v340_v47, %v338_v50  ;;  %v3831_v62 = vld [vmem:[%s3743_s14 + $0x40] ss:$0 sps:$4 sm:$0x11]   ;;  %v356_v0 = vshrl.u32 %v3809_v51, 16  ;;  %v3579_v5 = vld [vmem:[%s4458_s1 + $0xd8] sm:$0xff]   ;;  %v3584_v22 = vld [vmem:[%s4458_s1 + $0x88] sm:$0xff]  }
  0x19   : > { %3238 = vmatpush3.bf16.msra.mxu0 %v3553_v6  ;;  %v331_v46 = vsel %vm303_vm0, %v326_v38, %v330_v39  ;;  %v339_v57 = vsel %vm303_vm0, %v334_v49, %v338_v50  ;;  %v360_v1 = vshll.u32 %v3819_v56, 16  ;;  %v350_v2 = vor.u32 %v348_v58, %v346_v55  ;;  %v3586_v26 = vld [vmem:[%s4458_s1 + $0x80] sm:$0xff]   ;;  %v3591_v31 = vld [vmem:[%s4458_s1 + $0x138] sm:$0xff]   ;;  %v3598_v42 = vld [vmem:[%s4458_s1 + $0x168] sm:$0xff]  }
  0x1a   : > { %3270 = vmatpush3.bf16.msra.mxu1 %v3554_v7  ;;  %3239 = vmatprep.subr.bf16.mxu0 %v3555_v8  ;;  %v315_v30 = vsel %vm303_vm0, %v310_v27, %v314_v23  ;;  %v347_v63 = vsel %vm303_vm0, %v342_v54, %v346_v55  ;;  %v354_v3 = vrot.slane %v352_v59, 1  ;;  %v364_v6 = vshrl.u32 %v3819_v56, 16  ;;  %v3587_v27 = vld [vmem:[%s4458_s1 + $0xc0] sm:$0xff]   ;;  %v3592_v32 = vld [vmem:[%s4458_s1 + $0x178] sm:$0xff]   ;;  %v1129_v47 = vld [vmem:[%s3743_s14 + $0xc] sm:$0xf] }
  0x1b   : > { %3271 = vmatprep.subr.bf16.mxu1 %v3556_v9  ;;  %3247 = vmatprep.mubr.bf16.mxu0 %v315_v30  ;;  %v3673_v19 = vmov 0   ;;  %v703_v30 = vrot.slane %v3760_v16, 1  ;;  %v705_v33 = vrot.slane %v3775_v28, 1  ;;  %v707_v39 = vrot.slane %v3784_v35, 1  ;;  %v3596_v43 = vld [vmem:[%s3743_s14 + $0x20] sm:$0xff]   ;;  %v3601_v50 = vld [vmem:[%s3743_s14 + $0x28] sm:$0xff]  }
  0x1c   : > { %v358_v7 = vor.u32 %v356_v0, %v354_v3  ;;  %3545 = vset.pattern.permute.xlu0 %v3673_v19  ;;  %3546 = vset.pattern.permute.xlu1 %v3673_v19  ;;  %v3600_v48 = vld [vmem:[%s4458_s1 + $0x160] sm:$0xff]   ;;  %v3604_v54 = vld [vmem:[%s4458_s1 + $0x158] sm:$0xff]   ;;  %v3921_v55 = vld [vmem:[%s3743_s14 + $0x10] sm:$0xff]  }
  0x1d   : > { %3240 = vmatpush3.bf16.msra.mxu0 %v3555_v8  ;;  %v362_v8 = vrot.slane %v360_v1, 1  ;;  %v706_v38 = vsel %vm699_vm1, %v703_v30, %v705_v33  ;;  %v3602_v58 = vld [vmem:[%s3743_s14 + $0x30] sm:$0xff]   ;;  %v3607_v1 = vld [vmem:[%s3743_s14 + $0x38] sm:$0xff]  }
  0x1e   : > { %3272 = vmatpush3.bf16.msra.mxu1 %v3556_v9  ;;  %3241 = vmatprep.subr.bf16.mxu0 %v3557_v10  ;;  %v368_v9 = vshll.u32 %v3831_v62, 16 }
  0x1f   : > { %3273 = vmatprep.subr.bf16.mxu1 %v3558_v11  ;;  %v366_v20 = vor.u32 %v364_v6, %v362_v8  ;;  %v3938_v6 = vld [vmem:[%s3743_s14 + $0x18] sm:$0xff]  }
  0x20   : > { %v1221_v19 = vshll.u32 %v3938_v6, 16 }
  0x21   : > { %3242 = vmatpush3.bf16.msra.mxu0 %v3557_v10  ;;  %v355_v10 = vsel %vm303_vm0, %v350_v2, %v354_v3 }
  0x22   : > { %3274 = vmatpush3.bf16.msra.mxu1 %v3558_v11  ;;  %3243 = vmatprep.subr.bf16.mxu0 %v3559_v17  ;;  %v678_v11 = vld [vmem:[%s3743_s14] sm:$0xe] }
  0x23   : > { %3275 = vmatprep.subr.bf16.mxu1 %v3560_v21  ;;  %v2816_v18 = vcombine.low %v678_v11, %v3753_v13  ;;  %v3585_v13 = vld [vmem:[%s4458_s1 + $0xc8] sm:$0xff]   ;;  %v3608_v11 = vld [vmem:[%s3743_s14 + $0x40] sm:$0xff]  }
  0x25   : > { %3244 = vmatpush3.bf16.msra.mxu0 %v3559_v17  ;;  %v363_v17 = vsel %vm303_vm0, %v358_v7, %v362_v8  ;;  %v700_v23 = vrot.slane %v2816_v18, 1  ;;  %v3609_v7 = vld [vmem:[%s4458_s1 + $0x108] sm:$0xff]   ;;  %v1464_v18 = vrot.slane %v3921_v55, 1 }
  0x26   : > { %3276 = vmatpush3.bf16.msra.mxu1 %v3560_v21  ;;  %3245 = vmatprep.subr.bf16.mxu0 %v3561_v24  ;;  %v370_v21 = vrot.slane %v368_v9, 1  ;;  %v3610_v8 = vld [vmem:[%s4458_s1 + $0x148] sm:$0xff]   ;;  %v1217_v9 = vshrl.u32 %v3921_v55, 16 }
  0x27   : > { %3277 = vmatprep.subr.bf16.mxu1 %v3562_v29 }
  0x28   : > { %v371_v25 = vsel %vm303_vm0, %v366_v20, %v370_v21  ;;  %v3611_v20 = vld [vmem:[%s4458_s1 + $0x100] sm:$0xff]  }
  0x29   : > { %3246 = vmatpush3.bf16.msra.mxu0 %v3561_v24  ;;  %v701_v24 = vrot.slane %v3757_v15, 1  ;;  %v3612_v21 = vld [vmem:[%s4458_s1 + $0x140] sm:$0xff]  }
  0x2a   : > { %3278 = vmatpush3.bf16.msra.mxu1 %v3562_v29  ;;  %3295 = vmatprep.subr.bf16.mxu0 %v3566_v36  ;;  %v3589_v29 = vld [vmem:[%s3743_s14 + $0x8] sm:$0xff]  }
  0x2b   : > { %3327 = vmatprep.subr.bf16.mxu1 %v3567_v37  ;;  %v704_v34 = vsel %vm699_vm1, %v701_v24, %v703_v30  ;;  %v3618_v30 = vld [vmem:[%s4458_s1 + $0x1f8] sm:$0xff]  }
  0x2c   : > { %3248 = vmatmul.mubr.bf16.vlgmr.msra.gmra.mxu0 %v323_v41  ;;  %v3597_v41 = vld [vmem:[%s4458_s1 + $0x128] sm:$0xff]  }
  0x2d   : > { %3280 = vmatmul.mubr.bf16.vlgmr.msra.gmra.mxu1 %v3757_v15  ;;  %3296 = vmatpush3.bf16.msra.mxu0 %v3566_v36  ;;  %v702_v15 = vsel %vm699_vm1, %v700_v23, %v701_v24  ;;  %v3593_v36 = vld [vmem:[%s4458_s1 + $0x130] sm:$0xff]   ;;  %v3964_v24 = vld [vmem:[%s3743_s14 + $0x28] sm:$0xff]  }
  0x2e   : > { %3328 = vmatpush3.bf16.msra.mxu1 %v3567_v37  ;;  %3297 = vmatprep.subr.bf16.mxu0 %v3568_v44  ;;  %v3594_v37 = vld [vmem:[%s4458_s1 + $0x170] sm:$0xff]  }
  0x2f   : > { %3329 = vmatprep.subr.bf16.mxu1 %v3569_v45  ;;  %3251 = vmatprep.mubr.bf16.mxu0 %v331_v46  ;;  %v1128_v46 = vld [vmem:[%s3743_s14 + $0x8] sm:$0xf] }
  0x30   : > { %3283 = vmatprep.mubr.bf16.mxu1 %v3760_v16  ;;  %v3590_v16 = vld [vmem:[%s3743_s14 + $0x10] sm:$0xff]  }
  0x31   : > { %3298 = vmatpush3.bf16.msra.mxu0 %v3568_v44  ;;  %v3599_v44 = vld [vmem:[%s4458_s1 + $0x120] sm:$0xff]  }
  0x32   : > { %3330 = vmatpush3.bf16.msra.mxu1 %v3569_v45  ;;  %3299 = vmatprep.subr.bf16.mxu0 %v3572_v52  ;;  %v708_v45 = vsel %vm699_vm1, %v705_v33, %v707_v39 }
  0x33   : > { %3331 = vmatprep.subr.bf16.mxu1 %v3573_v53 }
  0x34   : > { %3252 = vmatmul.mubr.bf16.gmra.mxu0 %v339_v57  ;;  %v1442_v57 = vld [vmem:[%s3743_s14 + $0x8] sm:$0xe] }
  0x35   : > { %3284 = vmatmul.mubr.bf16.gmra.mxu1 %v3775_v28  ;;  %3300 = vmatpush3.bf16.msra.mxu0 %v3572_v52  ;;  %v3595_v28 = vld [vmem:[%s3743_s14 + $0x18] sm:$0xff]   ;;  %v711_v52 = vrot.slane %v3809_v51, 1  ;;  %v2906_v0 = vcombine.low %v1442_v57, %v1129_v47  ;;  %v4009_v57 = vld [vmem:[%s3743_s14 + $0x40] sm:$0xff]  }
  0x36   : > { %3332 = vmatpush3.bf16.msra.mxu1 %v3573_v53  ;;  %3301 = vmatprep.subr.bf16.mxu0 %v3574_v60  ;;  %v3603_v53 = vld [vmem:[%s4458_s1 + $0x118] sm:$0xff]  }
  0x37   : > { %3333 = vmatprep.subr.bf16.mxu1 %v3575_v61  ;;  %3255 = vmatprep.mubr.bf16.mxu0 %v347_v63  ;;  %v3606_v63 = vld [vmem:[%s4458_s1 + $0x150] sm:$0xff]  }
  0x38   : > { %3287 = vmatprep.mubr.bf16.mxu1 %v3784_v35  ;;  %v709_v35 = vrot.slane %v3793_v40, 1 }
  0x39   : > { %3302 = vmatpush3.bf16.msra.mxu0 %v3574_v60 }
  0x3a   : > { %3334 = vmatpush3.bf16.msra.mxu1 %v3575_v61  ;;  %3303 = vmatprep.subr.bf16.mxu0 %v3578_v4  ;;  %v710_v49 = vsel %vm699_vm1, %v707_v39, %v709_v35  ;;  %v712_v60 = vsel %vm699_vm1, %v709_v35, %v711_v52  ;;  %v3605_v61 = vld [vmem:[%s4458_s1 + $0x110] sm:$0xff]  }
  0x3b   : > { %3335 = vmatprep.subr.bf16.mxu1 %v3579_v5  ;;  %v3620_v39 = vld [vmem:[%s4458_s1 + $0x1f0] sm:$0xff]  }
  0x3c   : > { %3256 = vmatmul.mubr.bf16.gmra.mxu0 %v355_v10  ;;  %v1463_v10 = vrot.slane %v2906_v0, 1 }
  0x3d   : > { %3288 = vmatmul.mubr.bf16.gmra.mxu1 %v3793_v40  ;;  %3304 = vmatpush3.bf16.msra.mxu0 %v3578_v4  ;;  %v2873_v40 = vcombine.low %v1128_v46, %v1129_v47  ;;  %v1470_v47 = vrot.slane %v3964_v24, 1 }
  0x3e   : > { %3336 = vmatpush3.bf16.msra.mxu1 %v3579_v5  ;;  %3305 = vmatprep.subr.bf16.mxu0 %v3580_v12  ;;  %v715_v5 = vrot.slane %v3831_v62, 1  ;;  %v3949_v62 = vld [vmem:[%s3743_s14 + $0x20] sm:$0xff]  }
  0x3f   : > { %3337 = vmatprep.subr.bf16.mxu1 %v3581_v14  ;;  %3259 = vmatprep.mubr.bf16.mxu0 %v363_v17  ;;  %v1208_v59 = vshll.u32 %v2873_v40, 16  ;;  %v1206_v3 = vshrl.u32 %v2873_v40, 16  ;;  %v1229_v23 = vshll.u32 %v3949_v62, 16 }
  0x40   : > { %3291 = vmatprep.mubr.bf16.mxu1 %v3809_v51  ;;  %v713_v51 = vrot.slane %v3819_v56, 1 }
  0x41   : > { %3306 = vmatpush3.bf16.msra.mxu0 %v3580_v12  ;;  %v1210_v4 = vrot.slane %v1208_v59, 1  ;;  %v1231_v33 = vrot.slane %v1229_v23, 1  ;;  %v1891_v59 = vld [vmem:[%s3743_s14 + $0x10] sm:$0xf] }
  0x42   : > { %3338 = vmatpush3.bf16.msra.mxu1 %v3581_v14  ;;  %3307 = vmatprep.subr.bf16.mxu0 %v3584_v22  ;;  %v714_v2 = vsel %vm699_vm1, %v711_v52, %v713_v51  ;;  %v716_v17 = vsel %vm699_vm1, %v713_v51, %v715_v5  ;;  %v4013_v51 = vld [vmem:[%s3743_s14 + $0x48] ss:$0 sps:$4 sm:$0x11]  }
  0x43   : > { %3339 = vmatprep.subr.bf16.mxu1 %v3585_v13  ;;  %v1211_v14 = vor.u32 %v1210_v4, %v1206_v3 }
  0x44   : > { %3260 = vmatmul.mubr.bf16.gmra.mxu0 %v371_v25 }
  0x45   : > { %3292 = vmatmul.mubr.bf16.gmra.mxu1 %v3819_v56  ;;  %3308 = vmatpush3.bf16.msra.mxu0 %v3584_v22  ;;  %v1213_v56 = vshll.u32 %v3921_v55, 16 }
  0x46   : > { %3340 = vmatpush3.bf16.msra.mxu1 %v3585_v13  ;;  %3309 = vmatprep.subr.bf16.mxu0 %v3586_v26  ;;  %v1225_v13 = vshrl.u32 %v3938_v6, 16 }
  0x47   : > { %3341 = vmatprep.subr.bf16.mxu1 %v3587_v27  ;;  %3311 = vmatprep.mubr.bf16.mxu0 %v702_v15  ;;  %v1215_v12 = vrot.slane %v1213_v56, 1  ;;  %v1466_v15 = vrot.slane %v3938_v6, 1  ;;  %v1261_v56 = vshll.u32 %v4009_v57, 16 }
  0x48   : > { %3343 = vmatprep.mubr.bf16.mxu1 %v3589_v29  ;;  %v3617_v29 = vld [vmem:[%s4458_s1 + $0x1b8] sm:$0xff]  }
  0x49   : > { %3310 = vmatpush3.bf16.msra.mxu0 %v3586_v26  ;;  %v1216_v22 = vsel %vm303_vm0, %v1211_v14, %v1215_v12  ;;  %v1219_v25 = vor.u32 %v1217_v9, %v1215_v12  ;;  %v1465_v26 = vsel %vm699_vm1, %v1463_v10, %v1464_v18  ;;  %v1269_v9 = vshll.u32 %v4013_v51, 16  ;;  %v3631_v14 = vld [vmem:[%s4458_s1 + $0x190] sm:$0xff]  }
  0x4a   : > { %3342 = vmatpush3.bf16.msra.mxu1 %v3587_v27  ;;  %3359 = vmatprep.subr.bf16.mxu0 %v3591_v31  ;;  %v1223_v27 = vrot.slane %v1221_v19, 1  ;;  %v1476_v12 = vrot.slane %v4009_v57, 1 }
  0x4b   : > { %3391 = vmatprep.subr.bf16.mxu1 %v3592_v32 }
  0x4c   : > { %3312 = vmatmul.mubr.bf16.vlgmr.msra.gmra.mxu0 %v704_v34  ;;  %v1237_v34 = vshll.u32 %v3964_v24, 16 }
  0x4d   : > { %3344 = vmatmul.mubr.bf16.vlgmr.msra.gmra.mxu1 %v3590_v16  ;;  %3360 = vmatpush3.bf16.msra.mxu0 %v3591_v31  ;;  %v3619_v31 = vld [vmem:[%s4458_s1 + $0x1b0] sm:$0xff]  }
  0x4e   : > { %3392 = vmatpush3.bf16.msra.mxu1 %v3592_v32  ;;  %3361 = vmatprep.subr.bf16.mxu0 %v3593_v36  ;;  %v1227_v32 = vor.u32 %v1225_v13, %v1223_v27  ;;  %v3979_v16 = vld [vmem:[%s3743_s14 + $0x30] sm:$0xff]   ;;  %v1478_v13 = vrot.slane %v4013_v51, 1 }
  0x4f   : > { %3393 = vmatprep.subr.bf16.mxu1 %v3594_v37  ;;  %3315 = vmatprep.mubr.bf16.mxu0 %v706_v38  ;;  %v1233_v38 = vshrl.u32 %v3949_v62, 16  ;;  %v1245_v35 = vshll.u32 %v3979_v16, 16  ;;  %v1249_v40 = vshrl.u32 %v3979_v16, 16  ;;  %v3645_v51 = vld [vmem:[%s4458_s1 + $0x230] sm:$0xff]  }
  0x50   : > { %3347 = vmatprep.mubr.bf16.mxu1 %v3595_v28  ;;  %v1467_v28 = vsel %vm699_vm1, %v1464_v18, %v1466_v15  ;;  %v4043_v18 = vld [vmem:[%s3743_s14 + $0x18] sm:$0xff]  }
  0x51   : > { %3362 = vmatpush3.bf16.msra.mxu0 %v3593_v36  ;;  %v1224_v36 = vsel %vm303_vm0, %v1219_v25, %v1223_v27  ;;  %v1235_v46 = vor.u32 %v1233_v38, %v1231_v33  ;;  %v1247_v55 = vrot.slane %v1245_v35, 1  ;;  %v3635_v25 = vld [vmem:[%s4458_s1 + $0x188] sm:$0xff]   ;;  %v1980_v38 = vshrl.u32 %v4043_v18, 16 }
  0x52   : > { %3394 = vmatpush3.bf16.msra.mxu1 %v3594_v37  ;;  %3363 = vmatprep.subr.bf16.mxu0 %v3597_v41  ;;  %v1468_v37 = vrot.slane %v3949_v62, 1 }
  0x53   : > { %3395 = vmatprep.subr.bf16.mxu1 %v3598_v42  ;;  %v1251_v3 = vor.u32 %v1249_v40, %v1247_v55  ;;  %v2415_v40 = vld [vmem:[%s4459_s2 + $0x18] sm:$0xff] }
  0x54   : > { %3316 = vmatmul.mubr.bf16.gmra.mxu0 %v708_v45  ;;  %v1469_v45 = vsel %vm699_vm1, %v1466_v15, %v1468_v37 }
  0x55   : > { %3348 = vmatmul.mubr.bf16.gmra.mxu1 %v3596_v43  ;;  %3364 = vmatpush3.bf16.msra.mxu0 %v3597_v41  ;;  %v3989_v41 = vld [vmem:[%s3743_s14 + $0x38] sm:$0xff]   ;;  %v1239_v43 = vrot.slane %v1237_v34, 1 }
  0x56   : > { %3396 = vmatpush3.bf16.msra.mxu1 %v3598_v42  ;;  %3365 = vmatprep.subr.bf16.mxu0 %v3599_v44  ;;  %v1232_v42 = vsel %vm303_vm0, %v1227_v32, %v1231_v33  ;;  %v1253_v52 = vshll.u32 %v3989_v41, 16  ;;  %v1474_v6 = vrot.slane %v3989_v41, 1 }
  0x57   : > { %3397 = vmatprep.subr.bf16.mxu1 %v3600_v48  ;;  %3319 = vmatprep.mubr.bf16.mxu0 %v710_v49  ;;  %v3624_v49 = vld [vmem:[%s4458_s1 + $0x1e8] sm:$0xff]  }
  0x58   : > { %3351 = vmatprep.mubr.bf16.mxu1 %v3601_v50  ;;  %v1472_v50 = vrot.slane %v3979_v16, 1  ;;  %v1255_v4 = vrot.slane %v1253_v52, 1  ;;  %v4064_v16 = vld [vmem:[%s3743_s14 + $0x28] sm:$0xff]   ;;  %v3642_v52 = vld [vmem:[%s3743_s14 + $0x18] sm:$0xff]  }
  0x59   : > { %3366 = vmatpush3.bf16.msra.mxu0 %v3599_v44  ;;  %v1241_v44 = vshrl.u32 %v3964_v24, 16  ;;  %v1477_v24 = vsel %vm699_vm1, %v1474_v6, %v1476_v12 }
  0x5a   : > { %3398 = vmatpush3.bf16.msra.mxu1 %v3600_v48  ;;  %3367 = vmatprep.subr.bf16.mxu0 %v3603_v53  ;;  %v3623_v48 = vld [vmem:[%s4458_s1 + $0x1a8] sm:$0xff]   ;;  %v1256_v62 = vsel %vm303_vm0, %v1251_v3, %v1255_v4 }
  0x5b   : > { %3399 = vmatprep.subr.bf16.mxu1 %v3604_v54 }
  0x5c   : > { %3320 = vmatmul.mubr.bf16.gmra.mxu0 %v712_v60  ;;  %v1471_v60 = vsel %vm699_vm1, %v1468_v37, %v1470_v47  ;;  %v3637_v37 = vld [vmem:[%s4458_s1 + $0x180] sm:$0xff]  }
  0x5d   : > { %3352 = vmatmul.mubr.bf16.gmra.mxu1 %v3602_v58  ;;  %3368 = vmatpush3.bf16.msra.mxu0 %v3603_v53  ;;  %v3625_v53 = vld [vmem:[%s4458_s1 + $0x1a0] sm:$0xff]   ;;  %v1240_v58 = vsel %vm303_vm0, %v1235_v46, %v1239_v43  ;;  %v2413_v46 = vld [vmem:[%s4459_s2 + $0x8] sm:$0xff] }
  0x5e   : > { %3400 = vmatpush3.bf16.msra.mxu1 %v3604_v54  ;;  %3369 = vmatprep.subr.bf16.mxu0 %v3605_v61  ;;  %v1243_v54 = vor.u32 %v1241_v44, %v1239_v43  ;;  %v3639_v43 = vld [vmem:[%s3743_s14 + $0x10] sm:$0xff]  }
  0x5f   : > { %3401 = vmatprep.subr.bf16.mxu1 %v3606_v63  ;;  %3323 = vmatprep.mubr.bf16.mxu0 %v714_v2  ;;  %v1473_v2 = vsel %vm699_vm1, %v1470_v47, %v1472_v50 }
  0x60   : > { %3355 = vmatprep.mubr.bf16.mxu1 %v3607_v1  ;;  %v1248_v0 = vsel %vm303_vm0, %v1243_v54, %v1247_v55  ;;  %v1257_v1 = vshrl.u32 %v3989_v41, 16  ;;  %v2414_v41 = vld [vmem:[%s4459_s2 + $0x10] sm:$0xff]  ;;  %v4099_v55 = vld [vmem:[%s3743_s14 + $0x38] sm:$0xff]  }
  0x61   : > { %3370 = vmatpush3.bf16.msra.mxu0 %v3605_v61  ;;  %v4018_v61 = vld [vmem:[%s3743_s14 + $0x14] sm:$0xf]  ;;  %2440 = vperm.xlu1 %3546, %v2414_v41  }
  0x62   : > { %3402 = vmatpush3.bf16.msra.mxu1 %v3606_v63  ;;  %3371 = vmatprep.subr.bf16.mxu0 %v3609_v7  ;;  %v3626_v63 = vld [vmem:[%s4458_s1 + $0x1e0] sm:$0xff]   ;;  %v2963_v5 = vcombine.low %v1891_v59, %v4018_v61  ;;  %v1259_v10 = vor.u32 %v1257_v1, %v1255_v4  ;;  %v1996_v59 = vshrl.u32 %v4064_v16, 16 }
  0x63   : > { %3403 = vmatprep.subr.bf16.mxu1 %v3610_v8 }
  0x64   : > { %3324 = vmatmul.mubr.bf16.gmra.mxu0 %v716_v17  ;;  %v1265_v17 = vshrl.u32 %v4009_v57, 16  ;;  %v1971_v19 = vshll.u32 %v2963_v5, 16  ;;  %v1969_v27 = vshrl.u32 %v2963_v5, 16  ;;  %v2416_v57 = vld [vmem:[%s4459_s2 + $0x20] sm:$0xff]  ;;  %v3650_v5 = vld [vmem:[%s4458_s1 + $0x228] sm:$0xff]  }
  0x65   : > { %3356 = vmatmul.mubr.bf16.gmra.mxu1 %v3608_v11  ;;  %3372 = vmatpush3.bf16.msra.mxu0 %v3609_v7  ;;  %v3629_v7 = vld [vmem:[%s4458_s1 + $0x198] sm:$0xff]   ;;  %v1263_v11 = vrot.slane %v1261_v56, 1  ;;  %v2008_v56 = vshll.u32 %v4099_v55, 16 }
  0x66   : > { %3404 = vmatpush3.bf16.msra.mxu1 %v3610_v8  ;;  %3373 = vmatprep.subr.bf16.mxu0 %v3611_v20  ;;  %v3630_v8 = vld [vmem:[%s4458_s1 + $0x1d8] sm:$0xff]   ;;  %v1973_v15 = vrot.slane %v1971_v19, 1 }
  0x67   : > { %3405 = vmatprep.subr.bf16.mxu1 %v3612_v21  ;;  %3375 = vmatprep.mubr.bf16.mxu0 %v1216_v22  ;;  %v1271_v22 = vrot.slane %v1269_v9, 1  ;;  %v1264_v23 = vsel %vm303_vm0, %v1259_v10, %v1263_v11  ;;  %v2010_v10 = vrot.slane %v2008_v56, 1 }
  0x68   : > { %3407 = vmatprep.mubr.bf16.mxu1 %v1465_v26  ;;  %v1267_v26 = vor.u32 %v1265_v17, %v1263_v11  ;;  %v1974_v33 = vor.u32 %v1973_v15, %v1969_v27  ;;  %2445 = vperm.xlu1 %3546, %v2415_v40   ;;  %v4128_v11 = vld [vmem:[%s3743_s14 + $0x48] sm:$0xff]   ;;  %v2012_v17 = vshrl.u32 %v4099_v55, 16  ;;  %v4150_v27 = vld [vmem:[%s3743_s14 + $0x50] ss:$0 sps:$4 sm:$0x11]   ;;  %v2235_v40 = vrot.slane %v4099_v55, 1 }
  0x69   : > { %3374 = vmatpush3.bf16.msra.mxu0 %v3611_v20  ;;  %v1475_v20 = vsel %vm699_vm1, %v1472_v50, %v1474_v6  ;;  %v4092_v50 = vld [vmem:[%s3743_s14 + $0x30] sm:$0xff]   ;;  %v4121_v6 = vld [vmem:[%s3743_s14 + $0x40] sm:$0xff]   ;;  %v2421_v15 = vld [vmem:[%s4459_s2 + $0x48] sm:$0xff] }
  0x6a   : > { %3406 = vmatpush3.bf16.msra.mxu1 %v3612_v21  ;;  %3423 = vmatprep.subr.bf16.mxu0 %v3617_v29  ;;  %v3632_v21 = vld [vmem:[%s4458_s1 + $0x1d0] sm:$0xff]   ;;  %v1272_v32 = vsel %vm303_vm0, %v1267_v26, %v1271_v22  ;;  %v2004_v1 = vshrl.u32 %v4092_v50, 16  ;;  %v2016_v19 = vshll.u32 %v4121_v6, 16  ;;  %v2020_v22 = vshrl.u32 %v4121_v6, 16  ;;  %v3656_v26 = vld [vmem:[%s4458_s1 + $0x218] sm:$0xff]  }
  0x6b   : > { %3455 = vmatprep.subr.bf16.mxu1 %v3618_v30 }
  0x6c   : > { %3376 = vmatmul.mubr.bf16.vlgmr.msra.gmra.mxu0 %v1224_v36  ;;  %v1479_v36 = vsel %vm699_vm1, %v1476_v12, %v1478_v13  ;;  %v2419_v12 = vld [vmem:[%s4459_s2 + $0x38] sm:$0xff]  ;;  %v2024_v13 = vshll.u32 %v4128_v11, 16 }
  0x6d   : > { %3408 = vmatmul.mubr.bf16.vlgmr.msra.gmra.mxu1 %v1467_v28  ;;  %3424 = vmatpush3.bf16.msra.mxu0 %v3617_v29  ;;  %v1976_v29 = vshll.u32 %v4043_v18, 16 }
  0x6e   : > { %3456 = vmatpush3.bf16.msra.mxu1 %v3618_v30  ;;  %3425 = vmatprep.subr.bf16.mxu0 %v3619_v31  ;;  %v4057_v30 = vld [vmem:[%s3743_s14 + $0x20] sm:$0xff]  }
  0x6f   : > { %3457 = vmatprep.subr.bf16.mxu1 %v3620_v39  ;;  %3379 = vmatprep.mubr.bf16.mxu0 %v1232_v42  ;;  %v1978_v34 = vrot.slane %v1976_v29, 1  ;;  %v1984_v28 = vshll.u32 %v4057_v30, 16  ;;  %v3638_v42 = vld [vmem:[%s4458_s1 + $0x1c0] sm:$0xff]   ;;  %v1988_v35 = vshrl.u32 %v4057_v30, 16  ;;  %v3654_v29 = vld [vmem:[%s3743_s14 + $0x38] sm:$0xff]   ;;  %v2229_v55 = vrot.slane %v4057_v30, 1 }
  0x70   : > { %3411 = vmatprep.mubr.bf16.mxu1 %v1469_v45  ;;  %v1992_v45 = vshll.u32 %v4064_v16, 16 }
  0x71   : > { %3426 = vmatpush3.bf16.msra.mxu0 %v3619_v31  ;;  %v3636_v31 = vld [vmem:[%s4458_s1 + $0x1c8] sm:$0xff]   ;;  %v1979_v44 = vsel %vm303_vm0, %v1974_v33, %v1978_v34  ;;  %v1982_v47 = vor.u32 %v1980_v38, %v1978_v34  ;;  %v2205_v33 = vld [vmem:[%s3743_s14 + $0x10] sm:$0xe]  ;;  %v2028_v38 = vshrl.u32 %v4128_v11, 16 }
  0x72   : > { %3458 = vmatpush3.bf16.msra.mxu1 %v3620_v39  ;;  %3427 = vmatprep.subr.bf16.mxu0 %v3623_v48  ;;  %v2412_v39 = vld [vmem:[%s4459_s2] sm:$0xff]  ;;  %v1994_v54 = vrot.slane %v1992_v45, 1  ;;  %v2422_v34 = vld [vmem:[%s4459_s2 + $0x50] sm:$0xff]  ;;  %v2996_v41 = vcombine.low %v2205_v33, %v4018_v61  ;;  %v3662_v45 = vld [vmem:[%s4458_s1 + $0x208] sm:$0xff]  }
  0x73   : > { %3459 = vmatprep.subr.bf16.mxu1 %v3624_v49  ;;  %2430 = vperm.xlu0 %3545, %v2412_v39   ;;  %v3658_v39 = vld [vmem:[%s3743_s14 + $0x40] sm:$0xff]  }
  0x74   : > { %3380 = vmatmul.mubr.bf16.gmra.mxu0 %v1240_v58  ;;  %v1998_v3 = vor.u32 %v1996_v59, %v1994_v54  ;;  %v2424_v61 = vld [vmem:[%s4459_s2 + $0x60] sm:$0xff]  ;;  %v2427_v59 = vld [vmem:[%s4459_s2 + $0x78] sm:$0xff] }
  0x75   : > { %3412 = vmatmul.mubr.bf16.gmra.mxu1 %v1471_v60  ;;  %3428 = vmatpush3.bf16.msra.mxu0 %v3623_v48  ;;  %v1986_v48 = vrot.slane %v1984_v28, 1  ;;  %v2000_v60 = vshll.u32 %v4092_v50, 16  ;;  %v2032_v28 = vshll.u32 %v4150_v27, 16 }
  0x76   : > { %3460 = vmatpush3.bf16.msra.mxu1 %v3624_v49  ;;  %3429 = vmatprep.subr.bf16.mxu0 %v3625_v53  ;;  %v3644_v49 = vld [vmem:[%s4458_s1 + $0x238] sm:$0xff]  }
  0x77   : > { %3461 = vmatprep.subr.bf16.mxu1 %v3626_v63  ;;  %3383 = vmatprep.mubr.bf16.mxu0 %v1248_v0  ;;  %v1987_v58 = vsel %vm303_vm0, %v1982_v47, %v1986_v48  ;;  %v2002_v4 = vrot.slane %v2000_v60, 1  ;;  %v2226_v47 = vrot.slane %v2996_v41, 1  ;;  %v2239_v60 = vrot.slane %v4128_v11, 1 }
  0x78   : > { %3415 = vmatprep.mubr.bf16.mxu1 %v1473_v2  ;;  %2435 = vperm.xlu0 %3545, %v2413_v46   ;;  %v2417_v2 = vld [vmem:[%s4459_s2 + $0x28] sm:$0xff] }
  0x79   : > { %3430 = vmatpush3.bf16.msra.mxu0 %v3625_v53  ;;  %v1990_v53 = vor.u32 %v1988_v35, %v1986_v48  ;;  %2455 = vperm.xlu1 %3546, %v2417_v2   ;;  %v2006_v9 = vor.u32 %v2004_v1, %v2002_v4  ;;  %v2034_v35 = vrot.slane %v2032_v28, 1  ;;  %v3660_v46 = vld [vmem:[%s3743_s14 + $0x48] sm:$0xff]   ;;  %v2227_v48 = vrot.slane %v4043_v18, 1 }
  0x7a   : > { %3462 = vmatpush3.bf16.msra.mxu1 %v3626_v63  ;;  %3431 = vmatprep.subr.bf16.mxu0 %v3629_v7  ;;  %v3646_v63 = vld [vmem:[%s3743_s14 + $0x20] sm:$0xff]   ;;  %v2241_v1 = vrot.slane %v4150_v27, 1 }
  0x7b   : > { %3463 = vmatprep.subr.bf16.mxu1 %v3630_v8  ;;  %v1995_v0 = vsel %vm303_vm0, %v1990_v53, %v1994_v54  ;;  %v3663_v54 = vld [vmem:[%s4458_s1 + $0x200] sm:$0xff]   ;;  %v2228_v18 = vsel %vm699_vm1, %v2226_v47, %v2227_v48  ;;  %v2230_v30 = vsel %vm699_vm1, %v2227_v48, %v2229_v55 }
  0x7c   : > { %3384 = vmatmul.mubr.bf16.gmra.mxu0 %v1256_v62  ;;  %2450 = vperm.xlu0 %3545, %v2416_v57   ;;  %v2003_v62 = vsel %vm303_vm0, %v1998_v3, %v2002_v4  ;;  %v2426_v57 = vld [vmem:[%s4459_s2 + $0x70] sm:$0xff]  ;;  %v2242_v2 = vsel %vm699_vm1, %v2239_v60, %v2241_v1 }
  0x7d   : > { %3416 = vmatmul.mubr.bf16.gmra.mxu1 %v1475_v20  ;;  %3432 = vmatpush3.bf16.msra.mxu0 %v3629_v7  ;;  %v2418_v7 = vld [vmem:[%s4459_s2 + $0x30] sm:$0xff] }
  0x7e   : > { %3464 = vmatpush3.bf16.msra.mxu1 %v3630_v8  ;;  %3433 = vmatprep.subr.bf16.mxu0 %v3631_v14  ;;  %v3648_v8 = vld [vmem:[%s3743_s14 + $0x28] sm:$0xff]   ;;  %v3652_v20 = vld [vmem:[%s3743_s14 + $0x30] sm:$0xff]  }
  0x7f   : > { %3465 = vmatprep.subr.bf16.mxu1 %v3632_v21  ;;  %3387 = vmatprep.mubr.bf16.mxu0 %v1264_v23  ;;  %v2420_v23 = vld [vmem:[%s4459_s2 + $0x40] sm:$0xff] }
  0x80   : > { %3419 = vmatprep.mubr.bf16.mxu1 %v1477_v24  ;;  %2460 = vperm.xlu0 %3545, %v2418_v7   ;;  %v2014_v24 = vor.u32 %v2012_v17, %v2010_v10 }
  0x81   : > { %3434 = vmatpush3.bf16.msra.mxu0 %v3631_v14  ;;  %v3651_v14 = vld [vmem:[%s4458_s1 + $0x220] sm:$0xff]   ;;  %2465 = vperm.xlu1 %3546, %v2419_v12  }
  0x82   : > { %3466 = vmatpush3.bf16.msra.mxu1 %v3632_v21  ;;  %3435 = vmatprep.subr.bf16.mxu0 %v3635_v25  ;;  %v2011_v21 = vsel %vm303_vm0, %v2006_v9, %v2010_v10 }
  0x83   : > { %3467 = vmatprep.subr.bf16.mxu1 %v3636_v31 }
  0x84   : > { %3388 = vmatmul.mubr.bf16.gmra.mxu0 %v1272_v32  ;;  %2470 = vperm.xlu0 %3545, %v2420_v23   ;;  %v2026_v32 = vrot.slane %v2024_v13, 1 }
  0x85   : > { %3420 = vmatmul.mubr.bf16.gmra.mxu1 %v1479_v36  ;;  %3436 = vmatpush3.bf16.msra.mxu0 %v3635_v25  ;;  %v2018_v25 = vrot.slane %v2016_v19, 1 }
  0x86   : > { %3468 = vmatpush3.bf16.msra.mxu1 %v3636_v31  ;;  %3437 = vmatprep.subr.bf16.mxu0 %v3637_v37 }
  0x87   : > { %3469 = vmatprep.subr.bf16.mxu1 %v3638_v42  ;;  %3439 = vmatprep.mubr.bf16.mxu0 %v3639_v43  ;;  %v2022_v31 = vor.u32 %v2020_v22, %v2018_v25  ;;  %v2019_v36 = vsel %vm303_vm0, %v2014_v24, %v2018_v25  ;;  %v2423_v43 = vld [vmem:[%s4459_s2 + $0x58] sm:$0xff] }
  0x88   : > { %3471 = vmatprep.mubr.bf16.mxu1 %v1979_v44  ;;  %2475 = vperm.xlu1 %3546, %v2421_v15   ;;  %v2030_v44 = vor.u32 %v2028_v38, %v2026_v32 }
  0x89   : > { %3438 = vmatpush3.bf16.msra.mxu0 %v3637_v37  ;;  %v3657_v37 = vld [vmem:[%s4458_s1 + $0x210] sm:$0xff]   ;;  %2480 = vperm.xlu0 %3545, %v2422_v34  }
  0x8a   : > { %3470 = vmatpush3.bf16.msra.mxu1 %v3638_v42  ;;  %3487 = vmatprep.subr.bf16.mxu0 %v3644_v49  ;;  %v2027_v42 = vsel %vm303_vm0, %v2022_v31, %v2026_v32  ;;  %v2035_v53 = vsel %vm303_vm0, %v2030_v44, %v2034_v35 }
  0x8b   : > { %3519 = vmatprep.subr.bf16.mxu1 %v3644_v49 }
  0x8c   : > { %3440 = vmatmul.mubr.bf16.vlgmr.msra.gmra.mxu0 %v3642_v52  ;;  %2485 = vperm.xlu1 %3546, %v2423_v43   ;;  %v2425_v52 = vld [vmem:[%s4459_s2 + $0x68] sm:$0xff] }
  0x8d   : > { %3472 = vmatmul.mubr.bf16.vlgmr.msra.gmra.mxu1 %v1987_v58  ;;  %3488 = vmatpush3.bf16.msra.mxu0 %v3644_v49  ;;  %v2237_v58 = vrot.slane %v4121_v6, 1 }
  0x8e   : > { %3527 = vmatpush3.bf16.msra.mxu1 %v3644_v49  ;;  %3489 = vmatprep.subr.bf16.mxu0 %v3645_v51  ;;  %v2233_v49 = vrot.slane %v4092_v50, 1 }
  0x8f   : > { %3520 = vmatprep.subr.bf16.mxu1 %v3645_v51  ;;  %3443 = vmatprep.mubr.bf16.mxu0 %v3646_v63  ;;  %v2238_v63 = vsel %vm699_vm1, %v2235_v40, %v2237_v58 }
  0x90   : > { %3475 = vmatprep.mubr.bf16.mxu1 %v1995_v0  ;;  %2490 = vperm.xlu0 %3545, %v2424_v61   ;;  %v2236_v50 = vsel %vm699_vm1, %v2233_v49, %v2235_v40 }
  0x91   : > { %3490 = vmatpush3.bf16.msra.mxu0 %v3645_v51  ;;  %2495 = vperm.xlu1 %3546, %v2425_v52  }
  0x92   : > { %3528 = vmatpush3.bf16.msra.mxu1 %v3645_v51  ;;  %3491 = vmatprep.subr.bf16.mxu0 %v3650_v5  ;;  %v2231_v51 = vrot.slane %v4064_v16, 1  ;;  %v2240_v16 = vsel %vm699_vm1, %v2237_v58, %v2239_v60 }
  0x93   : > { %3521 = vmatprep.subr.bf16.mxu1 %v3650_v5 }
  0x94   : > { %3444 = vmatmul.mubr.bf16.gmra.mxu0 %v3648_v8  ;;  %2500 = vperm.xlu0 %3545, %v2426_v57   ;;  %v2232_v0 = vsel %vm699_vm1, %v2229_v55, %v2231_v51  ;;  %v2234_v56 = vsel %vm699_vm1, %v2231_v51, %v2233_v49 }
  0x95   : > { %3476 = vmatmul.mubr.bf16.gmra.mxu1 %v2003_v62  ;;  %3492 = vmatpush3.bf16.msra.mxu0 %v3650_v5 }
  0x96   : > { %3529 = vmatpush3.bf16.msra.mxu1 %v3650_v5  ;;  %3493 = vmatprep.subr.bf16.mxu0 %v3651_v14 }
  0x97   : > { %3522 = vmatprep.subr.bf16.mxu1 %v3651_v14  ;;  %3447 = vmatprep.mubr.bf16.mxu0 %v3652_v20 }
  0x98   : > { %3479 = vmatprep.mubr.bf16.mxu1 %v2011_v21  ;;  %2505 = vperm.xlu1 %3546, %v2427_v59  }
  0x99   : > { %3494 = vmatpush3.bf16.msra.mxu0 %v3651_v14 }
  0x9a   : > { %3530 = vmatpush3.bf16.msra.mxu1 %v3651_v14  ;;  %3495 = vmatprep.subr.bf16.mxu0 %v3656_v26 }
  0x9b   : > { %3523 = vmatprep.subr.bf16.mxu1 %v3656_v26 }
  0x9c   : > { %3448 = vmatmul.mubr.bf16.gmra.mxu0 %v3654_v29 }
  0x9d   : > { %3480 = vmatmul.mubr.bf16.gmra.mxu1 %v2019_v36  ;;  %3496 = vmatpush3.bf16.msra.mxu0 %v3656_v26 }
  0x9e   : > { %3531 = vmatpush3.bf16.msra.mxu1 %v3656_v26  ;;  %3497 = vmatprep.subr.bf16.mxu0 %v3657_v37 }
  0x9f   : > { %3524 = vmatprep.subr.bf16.mxu1 %v3657_v37  ;;  %3451 = vmatprep.mubr.bf16.mxu0 %v3658_v39 }
  0xa0   : > { %3483 = vmatprep.mubr.bf16.mxu1 %v2027_v42 }
  0xa1   : > { %3498 = vmatpush3.bf16.msra.mxu0 %v3657_v37 }
  0xa2   : > { %3532 = vmatpush3.bf16.msra.mxu1 %v3657_v37  ;;  %3499 = vmatprep.subr.bf16.mxu0 %v3662_v45 }
  0xa3   : > { %3525 = vmatprep.subr.bf16.mxu1 %v3662_v45 }
  0xa4   : > { %3452 = vmatmul.mubr.bf16.gmra.mxu0 %v3660_v46 }
  0xa5   : > { %3484 = vmatmul.mubr.bf16.gmra.mxu1 %v2035_v53  ;;  %3500 = vmatpush3.bf16.msra.mxu0 %v3662_v45 }
  0xa6   : > { %3533 = vmatpush3.bf16.msra.mxu1 %v3662_v45  ;;  %3501 = vmatprep.subr.bf16.mxu0 %v3663_v54 }
  0xa7   : > { %3526 = vmatprep.subr.bf16.mxu1 %v3663_v54  ;;  %3503 = vmatprep.mubr.bf16.mxu0 %v2228_v18 }
  0xa8   : > { %3511 = vmatprep.mubr.bf16.mxu1 %v2236_v50 }
  0xa9   : > { %3502 = vmatpush3.bf16.msra.mxu0 %v3663_v54 }
  0xaa   : > { %3534 = vmatpush3.bf16.msra.mxu1 %v3663_v54 }
  0xac   : > { %3504 = vmatmul.mubr.bf16.vlgmr.msra.gmra.mxu0 %v2230_v30 }
  0xad   : > { %3512 = vmatmul.mubr.bf16.vlgmr.msra.gmra.mxu1 %v2238_v63  ;;  %3507 = vmatprep.mubr.bf16.mxu0 %v2232_v0 }
  0xae   : > { %3515 = vmatprep.mubr.bf16.mxu1 %v2240_v16 }
  0xb4   : > { %3508 = vmatmul.mubr.bf16.gmra.mxu0 %v2234_v56 }
  0xb5   : > { %3516 = vmatmul.mubr.bf16.gmra.mxu1 %v2242_v2 }
  0xec   : > { %v3249_v3 = vpop.f32.mrf.mxu0 }
  0xed   : > { %v3281_v4 = vpop.f32.mrf.mxu1 }
  0xee   : > { %v624_v5 = vadd.f32 %v3281_v4, %v3249_v3  ;;  %v462_v6 = vpop.f32.mrf.mxu0 }
  0xef   : > { %v615_v7 = vpop.f32.mrf.mxu1 }
  0xf0   : > { %v616_v8 = vadd.f32 %v615_v7, %v462_v6  ;;  %v3250_v9 = vpop.f32.mrf.mxu0 }
  0xf1   : > { %v3282_v10 = vpop.f32.mrf.mxu1 }
  0xf2   : > { %v627_v11 = vadd.f32 %v3282_v10, %v3250_v9  ;;  %v465_v12 = vpop.f32.mrf.mxu0 }
  0xf3   : > { %v618_v62 = vpop.f32.mrf.mxu1 }
  0xf4   : > { %v619_v14 = vadd.f32 %v618_v62, %v465_v12  ;;  %v3253_v17 = vpop.f32.mrf.mxu0 }
  0xf5   : > { %v3285_v19 = vpop.f32.mrf.mxu1 }
  0xf6   : > { %v640_v20 = vadd.f32 %v3285_v19, %v3253_v17  ;;  %v478_v21 = vpop.f32.mrf.mxu0 }
  0xf7   : > { %v631_v22 = vpop.f32.mrf.mxu1 }
  0xf8   : > { %v632_v13 = vadd.f32 %v631_v22, %v478_v21  ;;  %v3254_v23 = vpop.f32.mrf.mxu0 }
  0xf9   : > { %v3286_v24 = vpop.f32.mrf.mxu1 }
  0xfa   : > { %v643_v25 = vadd.f32 %v3286_v24, %v3254_v23  ;;  %v481_v26 = vpop.f32.mrf.mxu0 }
  0xfb   : > { %v634_v27 = vpop.f32.mrf.mxu1 }
  0xfc   : > { %v635_v15 = vadd.f32 %v634_v27, %v481_v26  ;;  %v3257_v29 = vpop.f32.mrf.mxu0 }
  0xfd   : > { %v3289_v31 = vpop.f32.mrf.mxu1 }
  0xfe   : > { %v656_v32 = vadd.f32 %v3289_v31, %v3257_v29  ;;  %v494_v33 = vpop.f32.mrf.mxu0 }
  0xff   : > { %v647_v34 = vpop.f32.mrf.mxu1 }
 0x100   : > { %v648_v36 = vadd.f32 %v647_v34, %v494_v33  ;;  %v3258_v37 = vpop.f32.mrf.mxu0 }
 0x101   : > { %v3290_v38 = vpop.f32.mrf.mxu1 }
 0x102   : > { %v659_v28 = vadd.f32 %v3290_v38, %v3258_v37  ;;  %v497_v39 = vpop.f32.mrf.mxu0 }
 0x103   : > { %v650_v41 = vpop.f32.mrf.mxu1 }
 0x104   : > { %v651_v42 = vadd.f32 %v650_v41, %v497_v39  ;;  %v3261_v43 = vpop.f32.mrf.mxu0 }
 0x105   : > { %v3293_v44 = vpop.f32.mrf.mxu1 }
 0x106   : > { %v672_v35 = vadd.f32 %v3293_v44, %v3261_v43  ;;  %v510_v45 = vpop.f32.mrf.mxu0 }
 0x107   : > { %v663_v61 = vpop.f32.mrf.mxu1 }
 0x108   : > { %v664_v46 = vadd.f32 %v663_v61, %v510_v45  ;;  %v3262_v47 = vpop.f32.mrf.mxu0 }
 0x109   : > { %v3294_v48 = vpop.f32.mrf.mxu1 }
 0x10a   : > { %v675_v49 = vadd.f32 %v3294_v48, %v3262_v47  ;;  %v513_v40 = vpop.f32.mrf.mxu0 }
 0x10b   : > { %v666_v52 = vpop.f32.mrf.mxu1 }
 0x10c   : > { %v667_v53 = vadd.f32 %v666_v52, %v513_v40  ;;  %v3313_v54 = vpop.f32.mrf.mxu0 }
 0x10d   : > { %v872_v18 = vadd.f32 %v3313_v54, %v624_v5  ;;  %v3345_v50 = vpop.f32.mrf.mxu1 }
 0x10e   : > { %v807_v55 = vpop.f32.mrf.mxu0 }
 0x10f   : > { %v4208_v57 = vadd.f32 %v3345_v50, %v872_v18  ;;  %v870_v58 = vadd.f32 %v807_v55, %v616_v8  ;;  %v1049_v51 = vpop.f32.mrf.mxu1 }
 0x110   : > { %v3314_v59 = vpop.f32.mrf.mxu0 }
 0x111   : > { %v4210_v60 = vadd.f32 %v1049_v51, %v870_v58  ;;  %v873_v30 = vadd.f32 %v3314_v59, %v627_v11  ;;  %v3346_v63 = vpop.f32.mrf.mxu1 }
 0x112   : > { %v810_v0 = vpop.f32.mrf.mxu0 }
 0x113   : > { %v4212_v16 = vadd.f32 %v3346_v63, %v873_v30  ;;  %v871_v1 = vadd.f32 %v810_v0, %v619_v14  ;;  %v1052_v56 = vpop.f32.mrf.mxu1 }
 0x114   : > { %v3317_v2 = vpop.f32.mrf.mxu0 }
 0x115   : > { %v4214_v3 = vadd.f32 %v1052_v56, %v871_v1  ;;  %v876_v4 = vadd.f32 %v3317_v2, %v640_v20  ;;  %v3349_v5 = vpop.f32.mrf.mxu1 }
 0x116   : > { %v823_v6 = vpop.f32.mrf.mxu0 }
 0x117   : > { %v4216_v7 = vadd.f32 %v3349_v5, %v876_v4  ;;  %v874_v8 = vadd.f32 %v823_v6, %v632_v13  ;;  %v1065_v9 = vpop.f32.mrf.mxu1 }
 0x118   : > { %v3318_v10 = vpop.f32.mrf.mxu0 }
 0x119   : > { %v4218_v12 = vadd.f32 %v1065_v9, %v874_v8  ;;  %v877_v11 = vadd.f32 %v3318_v10, %v643_v25  ;;  %v3350_v62 = vpop.f32.mrf.mxu1 }
 0x11a   : > { %v826_v17 = vpop.f32.mrf.mxu0 }
 0x11b   : > { %v4220_v19 = vadd.f32 %v3350_v62, %v877_v11  ;;  %v875_v14 = vadd.f32 %v826_v17, %v635_v15  ;;  %v1068_v21 = vpop.f32.mrf.mxu1 }
 0x11c   : > { %v3321_v22 = vpop.f32.mrf.mxu0 }
 0x11d   : > { %v4222_v23 = vadd.f32 %v1068_v21, %v875_v14  ;;  %v880_v20 = vadd.f32 %v3321_v22, %v656_v32  ;;  %v3353_v24 = vpop.f32.mrf.mxu1 }
 0x11e   : > { %v839_v26 = vpop.f32.mrf.mxu0 }
 0x11f   : > { %v4224_v27 = vadd.f32 %v3353_v24, %v880_v20  ;;  %v878_v13 = vadd.f32 %v839_v26, %v648_v36  ;;  %v1081_v29 = vpop.f32.mrf.mxu1 }
 0x120   : > { %v3322_v31 = vpop.f32.mrf.mxu0 }
 0x121   : > { %v4226_v33 = vadd.f32 %v1081_v29, %v878_v13  ;;  %v881_v25 = vadd.f32 %v3322_v31, %v659_v28  ;;  %v3354_v34 = vpop.f32.mrf.mxu1 }
 0x122   : > { %v842_v37 = vpop.f32.mrf.mxu0 }
 0x123   : > { %v4228_v38 = vadd.f32 %v3354_v34, %v881_v25  ;;  %v879_v15 = vadd.f32 %v842_v37, %v651_v42  ;;  %v1084_v39 = vpop.f32.mrf.mxu1 }
 0x124   : > { %v3325_v41 = vpop.f32.mrf.mxu0 }
 0x125   : > { %v4230_v43 = vadd.f32 %v1084_v39, %v879_v15  ;;  %v884_v32 = vadd.f32 %v3325_v41, %v672_v35  ;;  %v3357_v44 = vpop.f32.mrf.mxu1 }
 0x126   : > { %v855_v45 = vpop.f32.mrf.mxu0 }
 0x127   : > { %v4232_v61 = vadd.f32 %v3357_v44, %v884_v32  ;;  %v882_v36 = vadd.f32 %v855_v45, %v664_v46  ;;  %v1097_v47 = vpop.f32.mrf.mxu1  ;;  %v4284_v32 = vpop.permute.xlu0 %2430 }
 0x128   : > { %v3326_v48 = vpop.f32.mrf.mxu0  ;;  %4466 = vst [vmem:[#allocation6_spill] sm:$0xff] %v4284_v32  ;;  %v4288_v45 = vpop.permute.xlu1 %2440 }
 0x129   : > { %v4234_v40 = vadd.f32 %v1097_v47, %v882_v36  ;;  %v885_v28 = vadd.f32 %v3326_v48, %v675_v49  ;;  %v3358_v52 = vpop.f32.mrf.mxu1  ;;  %4468 = vst [vmem:[#allocation8_spill] sm:$0xff] %v4288_v45 }
 0x12a   : > { %v858_v54 = vpop.f32.mrf.mxu0 }
 0x12b   : > { %v4236_v18 = vadd.f32 %v3358_v52, %v885_v28  ;;  %v883_v42 = vadd.f32 %v858_v54, %v667_v53  ;;  %v1100_v50 = vpop.f32.mrf.mxu1  ;;  %v4300_v54 = vpop.permute.xlu0 %2435 }
 0x12c   : > { %v3377_v55 = vpop.f32.mrf.mxu0  ;;  %4473 = vst [vmem:[#allocation13_spill] sm:$0xff] %v4300_v54 }
 0x12d   : > { %v4238_v58 = vadd.f32 %v1100_v50, %v883_v42  ;;  %v4240_v35 = vpop.f32.mrf.mxu1  ;;  %v4304_v50 = vpop.permute.xlu1 %2445 }
 0x12e   : > { %v1363_v51 = vpop.f32.mrf.mxu0  ;;  %4475 = vst [vmem:[#allocation15_spill] sm:$0xff] %v4304_v50  ;;  %v1428_v50 = vadd.f32 %v3377_v55, %v4208_v57 }
 0x12f   : > { %v4242_v59 = vpop.f32.mrf.mxu1 }
 0x130   : > { %v3378_v46 = vpop.f32.mrf.mxu0 }
 0x131   : > { %v4244_v30 = vpop.f32.mrf.mxu1 }
 0x132   : > { %v1366_v63 = vpop.f32.mrf.mxu0 }
 0x133   : > { %v4246_v0 = vpop.f32.mrf.mxu1 }
 0x134   : > { %v3381_v49 = vpop.f32.mrf.mxu0 }
 0x135   : > { %v4248_v1 = vpop.f32.mrf.mxu1 }
 0x136   : > { %v1379_v56 = vpop.f32.mrf.mxu0 }
 0x137   : > { %v4250_v53 = vpop.f32.mrf.mxu1 }
 0x138   : > { %v3382_v2 = vpop.f32.mrf.mxu0 }
 0x139   : > { %v4252_v4 = vpop.f32.mrf.mxu1 }
 0x13a   : > { %v1382_v5 = vpop.f32.mrf.mxu0 }
 0x13b   : > { %v4254_v6 = vpop.f32.mrf.mxu1 }
 0x13c   : > { %v3385_v8 = vpop.f32.mrf.mxu0 }
 0x13d   : > { %v4256_v9 = vpop.f32.mrf.mxu1 }
 0x13e   : > { %v1395_v10 = vpop.f32.mrf.mxu0 }
 0x13f   : > { %v4258_v11 = vpop.f32.mrf.mxu1  ;;  %v1434_v55 = vadd.f32 %v1395_v10, %v4226_v33 }
 0x140   : > { %v3386_v62 = vpop.f32.mrf.mxu0 }
 0x141   : > { %v4260_v17 = vpop.f32.mrf.mxu1 }
 0x142   : > { %v1398_v14 = vpop.f32.mrf.mxu0 }
 0x143   : > { %v4262_v21 = vpop.f32.mrf.mxu1 }
 0x144   : > { %v3389_v22 = vpop.f32.mrf.mxu0 }
 0x145   : > { %v4264_v20 = vpop.f32.mrf.mxu1 }
 0x146   : > { %v1411_v24 = vpop.f32.mrf.mxu0 }
 0x147   : > { %v4266_v26 = vpop.f32.mrf.mxu1 }
 0x148   : > { %v3390_v13 = vpop.f32.mrf.mxu0 }
 0x149   : > { %v4268_v29 = vpop.f32.mrf.mxu1 }
 0x14a   : > { %4462 = vst [vmem:[#allocation2_spill] sm:$0xff] %v4268_v29  ;;  %v4270_v31 = vpop.f32.mrf.mxu0 }
 0x14b   : > { %v4272_v25 = vpop.f32.mrf.mxu1 }
 0x14c   : > { %4463 = vst [vmem:[#allocation3_spill] sm:$0xff] %v4272_v25  ;;  %v4274_v34 = vpop.f32.mrf.mxu0 }
 0x14d   : > { %v4276_v37 = vpop.f32.mrf.mxu1 }
 0x14e   : > { %4464 = vst [vmem:[#allocation4_spill] sm:$0xff] %v4276_v37  ;;  %v4278_v15 = vpop.f32.mrf.mxu0  ;;  %v4314_v37 = vpop.permute.xlu0 %2450 }
 0x14f   : > { %v4280_v39 = vpop.f32.mrf.mxu1  ;;  %4480 = vst [vmem:[#allocation20_spill] sm:$0xff] %v4314_v37  ;;  %v1432_v37 = vadd.f32 %v3381_v49, %v4216_v7  ;;  %v1635_v7 = vadd.f32 %v4240_v35, %v1428_v50 }
 0x150   : > { %4465 = vst [vmem:[#allocation5_spill] sm:$0xff] %v4280_v39  ;;  %v4282_v41 = vpop.f32.mrf.mxu0 }
 0x151   : > { %v4286_v44 = vpop.f32.mrf.mxu1  ;;  %v1639_v49 = vadd.f32 %v4248_v1, %v1432_v37  ;;  %v1641_v1 = vadd.f32 %v4258_v11, %v1434_v55 }
 0x152   : > { %4467 = vst [vmem:[#allocation7_spill] sm:$0xff] %v4286_v44  ;;  %v4290_v36 = vpop.f32.mrf.mxu0 }
 0x153   : > { %v4292_v47 = vpop.f32.mrf.mxu1 }
 0x154   : > { %4469 = vst [vmem:[#allocation9_spill] sm:$0xff] %v4292_v47  ;;  %v4294_v48 = vpop.f32.mrf.mxu0 }
 0x155   : > { %4470 = vst [vmem:[#allocation10_spill] sm:$0xff] %v4294_v48  ;;  %v4296_v28 = vpop.f32.mrf.mxu1  ;;  %v4329_v48 = vpop.permute.xlu0 %2460 }
 0x156   : > { %4471 = vst [vmem:[#allocation11_spill] sm:$0xff] %v4296_v28  ;;  %v4298_v52 = vpop.f32.mrf.mxu0 }
 0x157   : > { %4472 = vst [vmem:[#allocation12_spill] sm:$0xff] %v4298_v52  ;;  %v4302_v42 = vpop.f32.mrf.mxu1  ;;  %v4318_v52 = vpop.permute.xlu1 %2455 }
 0x158   : > { %4474 = vst [vmem:[#allocation14_spill] sm:$0xff] %v4302_v42  ;;  %v4306_v32 = vpop.f32.mrf.mxu0  ;;  %4482 = vst [vmem:[#allocation22_spill] sm:$0xff] %v4318_v52  ;;  %v1430_v52 = vadd.f32 %v1379_v56, %v4218_v12  ;;  %v1437_v12 = vadd.f32 %v3386_v62, %v4228_v38 }
 0x159   : > { %4476 = vst [vmem:[#allocation16_spill] sm:$0xff] %v4306_v32  ;;  %v4308_v44 = vpop.f32.mrf.mxu1  ;;  %v1426_v32 = vadd.f32 %v1363_v51, %v4210_v60  ;;  %v1431_v60 = vadd.f32 %v1382_v5, %v4222_v23  ;;  %v1435_v23 = vadd.f32 %v1398_v14, %v4230_v43  ;;  %v1439_v43 = vadd.f32 %v4270_v31, %v4238_v58  ;;  %v4484_v14 = vld [vmem:[#allocation2_spill] sm:$0xff] }
 0x15a   : > { %4477 = vst [vmem:[#allocation17_spill] sm:$0xff] %v4308_v44  ;;  %v4310_v45 = vpop.f32.mrf.mxu0  ;;  %v1429_v44 = vadd.f32 %v3378_v46, %v4212_v16  ;;  %v1436_v16 = vadd.f32 %v3385_v8, %v4224_v27  ;;  %v1440_v27 = vadd.f32 %v3389_v22, %v4232_v61  ;;  %v1637_v56 = vadd.f32 %v4250_v53, %v1430_v52  ;;  %v4361_v61 = vpop.permute.xlu0 %2470 }
 0x15b   : > { %4478 = vst [vmem:[#allocation18_spill] sm:$0xff] %v4310_v45  ;;  %v4312_v39 = vpop.f32.mrf.mxu1  ;;  %v4335_v57 = vpop.permute.xlu1 %2465  ;;  %v1633_v51 = vadd.f32 %v4242_v59, %v1426_v32  ;;  %v1438_v59 = vadd.f32 %v1411_v24, %v4234_v40  ;;  %v1877_v40 = vadd.f32 %v4274_v34, %v1635_v7  ;;  %v4486_v34 = vld [vmem:[#allocation3_spill] sm:$0xff] }
 0x15c   : > { %4479 = vst [vmem:[#allocation19_spill] sm:$0xff] %v4312_v39  ;;  %v3449_v47 = vpop.f32.mrf.mxu0  ;;  %v1427_v39 = vadd.f32 %v1366_v63, %v4214_v3  ;;  %v1636_v46 = vadd.f32 %v4244_v30, %v1429_v44  ;;  %v1441_v30 = vadd.f32 %v3390_v13, %v4236_v18  ;;  %v1647_v10 = vadd.f32 %v4264_v20, %v1440_v27  ;;  %v4485_v24 = vld [vmem:[#allocation10_spill] sm:$0xff]  ;;  %v4489_v44 = vld [vmem:[#allocation4_spill] sm:$0xff] }
 0x15d   : > { %v4316_v28 = vpop.f32.mrf.mxu1  ;;  %v1875_v18 = vadd.f32 %v4278_v15, %v1633_v51  ;;  %v1881_v13 = vadd.f32 %v4485_v24, %v1639_v49  ;;  %v1646_v37 = vadd.f32 %v4486_v34, %v1439_v43 }
 0x15e   : > { %4481 = vst [vmem:[#allocation21_spill] sm:$0xff] %v4316_v28  ;;  %v1844_v54 = vpop.f32.mrf.mxu0  ;;  %v1634_v63 = vadd.f32 %v4246_v0, %v1427_v39  ;;  %v1643_v0 = vadd.f32 %v4256_v9, %v1436_v16  ;;  %v1878_v5 = vadd.f32 %v4282_v41, %v1636_v46  ;;  %v1642_v9 = vadd.f32 %v4262_v21, %v1435_v23  ;;  %v4487_v15 = vld [vmem:[#allocation12_spill] sm:$0xff]  ;;  %v2481_v49 = vpop.permute.xlu0 %2480 }
 0x15f   : > { %v4320_v25 = vpop.f32.mrf.mxu1  ;;  %v1648_v22 = vadd.f32 %v4484_v14, %v1441_v30  ;;  %v1883_v31 = vadd.f32 %v1844_v54, %v1641_v1  ;;  %v1879_v39 = vadd.f32 %v4487_v15, %v1637_v56  ;;  %v4493_v54 = vld [vmem:[#allocation9_spill] sm:$0xff]  ;;  %v4497_v43 = vld [vmem:[#allocation14_spill] sm:$0xff] }
 0x160   : > { %4483 = vst [vmem:[#allocation23_spill] sm:$0xff] %v4320_v25  ;;  %v3450_v42 = vpop.f32.mrf.mxu0  ;;  %v1433_v25 = vadd.f32 %v3382_v2, %v4220_v19  ;;  %v1638_v2 = vadd.f32 %v4254_v6, %v1431_v60  ;;  %v4369_v6 = vpop.permute.xlu1 %2475  ;;  %v1876_v58 = vadd.f32 %v4290_v36, %v1634_v63  ;;  %v1885_v11 = vadd.f32 %v3449_v47, %v1643_v0  ;;  %v4488_v21 = vld [vmem:[#allocation16_spill] sm:$0xff]  ;;  %v4490_v47 = vld [vmem:[#allocation5_spill] sm:$0xff] }
 0x161   : > { %v4325_v45 = vpop.f32.mrf.mxu1  ;;  %v2191_v36 = vadd.f32 %v4489_v44, %v1877_v40  ;;  %v2189_v52 = vadd.f32 %v4490_v47, %v1875_v18 }
 0x162   : > { %v1847_v28 = vpop.f32.mrf.mxu0  ;;  %v1640_v35 = vadd.f32 %v4252_v4, %v1433_v25  ;;  %v1644_v4 = vadd.f32 %v4260_v17, %v1437_v12  ;;  %v1645_v17 = vadd.f32 %v4266_v26, %v1438_v59  ;;  %v4491_v26 = vld [vmem:[#allocation7_spill] sm:$0xff]  ;;  %v4492_v60 = vld [vmem:[#allocation18_spill] sm:$0xff]  ;;  %v2190_v7 = vadd.f32 %v4493_v54, %v1876_v58  ;;  %v2491_v47 = vpop.permute.xlu0 %2490 }
 0x163   : > { %v4333_v29 = vpop.f32.mrf.mxu1  ;;  %v2192_v50 = vadd.f32 %v4491_v26, %v1878_v5  ;;  %v1880_v16 = vadd.f32 %v4492_v60, %v1638_v2  ;;  %v1884_v12 = vadd.f32 %v1847_v28, %v1642_v9  ;;  %v2193_v2 = vadd.f32 %v4497_v43, %v1879_v39 }
 0x164   : > { %v3453_v3 = vpop.f32.mrf.mxu0  ;;  %v1882_v41 = vadd.f32 %v4488_v21, %v1640_v35  ;;  %v1886_v20 = vadd.f32 %v3450_v42, %v1644_v4  ;;  %v4495_v42 = vld [vmem:[#allocation11_spill] sm:$0xff]  ;;  %v2486_v30 = vpop.permute.xlu1 %2485  ;;  %v4498_v4 = vld [vmem:[#allocation17_spill] sm:$0xff] }
 0x165   : > { %v4344_v19 = vpop.f32.mrf.mxu1  ;;  %v4494_v51 = vld [vmem:[#allocation21_spill] sm:$0xff]  ;;  %v1889_v63 = vadd.f32 %v3453_v3, %v1647_v10  ;;  %v2195_v27 = vadd.f32 %v4495_v42, %v1881_v13  ;;  %v4499_v3 = vld [vmem:[#allocation19_spill] sm:$0xff]  ;;  %v2198_v24 = vadd.f32 %v4333_v29, %v1884_v12 }
 0x166   : > { %v1860_v33 = vpop.f32.mrf.mxu0  ;;  %v2199_v46 = vadd.f32 %v4494_v51, %v1885_v11  ;;  %v2196_v40 = vadd.f32 %v4498_v4, %v1882_v41  ;;  %v2200_v18 = vadd.f32 %v4325_v45, %v1886_v20  ;;  %v4394_v9 = vadd.f32 %v4499_v3, %v1880_v16  ;;  %v4501_v45 = vld [vmem:[#allocation8_spill] sm:$0xff]  ;;  %v4502_v20 = vld [vmem:[#allocation15_spill] sm:$0xff] }
 0x167   : > { %v4354_v38 = vpop.f32.mrf.mxu1  ;;  %v4496_v56 = vld [vmem:[#allocation23_spill] sm:$0xff]  ;;  %v1887_v10 = vadd.f32 %v1860_v33, %v1645_v17  ;;  %v2203_v13 = vadd.f32 %v4344_v19, %v1889_v63  ;;  %v4504_v4 = vld [vmem:[#allocation20_spill] sm:$0xff] }
 0x168   : > { %v3454_v53 = vpop.f32.mrf.mxu0  ;;  %v2197_v35 = vadd.f32 %v4496_v56, %v1883_v31  ;;  %v4500_v31 = vld [vmem:[#allocation6_spill] sm:$0xff] }
 0x169   : > { %v4367_v8 = vpop.f32.mrf.mxu1  ;;  %v1890_v21 = vadd.f32 %v3454_v53, %v1648_v22  ;;  %v2201_v22 = vadd.f32 %v4354_v38, %v1887_v10 }
 0x16a   : > { %v1863_v62 = vpop.f32.mrf.mxu0 }
 0x16b   : > { %v4377_v25 = vpop.f32.mrf.mxu1  ;;  %v1888_v33 = vadd.f32 %v1863_v62, %v1646_v37  ;;  %v2496_v62 = vpop.permute.xlu1 %2495  ;;  %v4503_v37 = vld [vmem:[#allocation13_spill] sm:$0xff] }
 0x16c   : > { %v3505_v32 = vpop.f32.mrf.mxu0 }
 0x16d   : > { %v3513_v55 = vpop.f32.mrf.mxu1  ;;  %v2398_v59 = vadd.f32 %v3505_v32, %v2191_v36 }
 0x16e   : > { %v2333_v23 = vpop.f32.mrf.mxu0  ;;  %v2406_v5 = vadd.f32 %v3513_v55, %v2199_v46 }
 0x16f   : > { %v2396_v0 = vadd.f32 %v2333_v23, %v2189_v52  ;;  %v2365_v1 = vpop.f32.mrf.mxu1  ;;  %v2510_v41 = vmul.f32 %v4501_v45, %v2398_v59  ;;  %v2202_v23 = vadd.f32 %v4377_v25, %v1888_v33  ;;  %v2506_v10 = vpop.permute.xlu1 %2505 }
 0x170   : > { %v3506_v28 = vpop.f32.mrf.mxu0  ;;  %v2404_v58 = vadd.f32 %v2365_v1, %v2197_v35  ;;  %v4402_v17 = vmul.f32 %v2481_v49, %v2406_v5  ;;  %v2204_v49 = vadd.f32 %v4367_v8, %v1890_v21  ;;  %v2501_v1 = vpop.permute.xlu0 %2500 }
 0x171   : > { %v2399_v11 = vadd.f32 %v3506_v28, %v2192_v50  ;;  %v3514_v14 = vpop.f32.mrf.mxu1  ;;  %v2508_v34 = vmul.f32 %v4500_v31, %v2396_v0 }
 0x172   : > { %v2407_v15 = vadd.f32 %v3514_v14, %v2200_v18  ;;  %v2336_v39 = vpop.f32.mrf.mxu0  ;;  %v4413_v52 = vmul.f32 %v4361_v61, %v2404_v58 }
 0x173   : > { %v2511_v32 = vmul.f32 %v4502_v20, %v2399_v11  ;;  %v2397_v44 = vadd.f32 %v2336_v39, %v2190_v7  ;;  %v2368_v36 = vpop.f32.mrf.mxu1  ;;  %v2626_v16 = vmul.f32 %v2508_v34, %v2508_v34 }
 0x174   : > { %v4409_v29 = vmul.f32 %v2486_v30, %v2407_v15  ;;  %v2405_v19 = vadd.f32 %v2368_v36, %v2198_v24  ;;  %v3509_v53 = vpop.f32.mrf.mxu0  ;;  %v4505_v15 = vld [vmem:[#allocation22_spill] sm:$0xff] }
 0x175   : > { %v3048_v26 = vpack.c.bf16 %v2511_v32, %v2510_v41  ;;  %v2509_v50 = vmul.f32 %v4503_v37, %v2397_v44  ;;  %v3517_v60 = vpop.f32.mrf.mxu1  ;;  %v2402_v7 = vadd.f32 %v3509_v53, %v2195_v27  ;;  %v2628_v27 = vmul.f32 %v2510_v41, %v2510_v41 }
 0x176   : > { %v3068_v55 = vpack.c.bf16 %v4409_v29, %v4402_v17  ;;  %v4419_v54 = vmul.f32 %v4369_v6, %v2405_v19  ;;  %v2349_v51 = vpop.f32.mrf.mxu0  ;;  %v2410_v12 = vadd.f32 %v3517_v60, %v2203_v13  ;;  %v2629_v35 = vmul.f32 %v2511_v32, %v2511_v32 }
 0x177   : > { %3080 = vst [vmem:[%s4407_s11 + $0x8] sm:$0xff] %v3048_v26   ;;  %v3043_v38 = vpack.c.bf16 %v2509_v50, %v2508_v34  ;;  %v2604_v61 = vadd.f32 %v2509_v50, %v2508_v34  ;;  %v2627_v46 = vmul.f32 %v2509_v50, %v2509_v50  ;;  %v2381_v63 = vpop.f32.mrf.mxu1  ;;  %v2400_v6 = vadd.f32 %v2349_v51, %v2193_v2 }
 0x178   : > { %3084 = vst [vmem:[%s4407_s11 + $0x28] sm:$0xff] %v3068_v55   ;;  %v3063_v42 = vpack.c.bf16 %v4419_v54, %v4413_v52  ;;  %v3510_v56 = vpop.f32.mrf.mxu0  ;;  %v2514_v43 = vmul.f32 %v4329_v48, %v2402_v7  ;;  %v2522_v3 = vmul.f32 %v2501_v1, %v2410_v12  ;;  %v2408_v14 = vadd.f32 %v2381_v63, %v2201_v22 }
 0x179   : > { %3044 = vst [vmem:[%s4407_s11] sm:$0xff] %v3043_v38   ;;  %v2605_v59 = vadd.f32 %v2604_v61, %v2510_v41  ;;  %v2642_v30 = vadd.f32 %v2627_v46, %v2626_v16  ;;  %v3518_v0 = vpop.f32.mrf.mxu1  ;;  %v2512_v8 = vmul.f32 %v4504_v4, %v2400_v6  ;;  %v2403_v18 = vadd.f32 %v3510_v56, %v2196_v40 }
 0x17a   : > { %3083 = vst [vmem:[%s4407_s11 + $0x20] sm:$0xff] %v3063_v42   ;;  %v2411_v25 = vadd.f32 %v3518_v0, %v2204_v49  ;;  %v2352_v5 = vpop.f32.mrf.mxu0  ;;  %v2520_v44 = vmul.f32 %v2491_v47, %v2408_v14  ;;  %v2634_v50 = vmul.f32 %v4413_v52, %v4413_v52  ;;  %v2635_v47 = vmul.f32 %v4419_v54, %v4419_v54 }
 0x17b   : > { %v2643_v28 = vadd.f32 %v2642_v30, %v2628_v27  ;;  %v2606_v2 = vadd.f32 %v2605_v59, %v2511_v32  ;;  %v2401_v58 = vadd.f32 %v2352_v5, %v4394_v9  ;;  %v2384_v11 = vpop.f32.mrf.mxu1  ;;  %v2515_v24 = vmul.f32 %v4335_v57, %v2403_v18 }
 0x17c   : > { %v2523_v13 = vmul.f32 %v2506_v10, %v2411_v25  ;;  %v2409_v31 = vadd.f32 %v2384_v11, %v2202_v23  ;;  %v2630_v34 = vmul.f32 %v2512_v8, %v2512_v8  ;;  %v2632_v57 = vmul.f32 %v2514_v43, %v2514_v43 }
 0x17d   : > { %v2607_v48 = vadd.f32 %v2606_v2, %v2512_v8  ;;  %v2644_v40 = vadd.f32 %v2643_v28, %v2629_v35  ;;  %v2513_v39 = vmul.f32 %v4505_v15, %v2401_v58  ;;  %v3058_v21 = vpack.c.bf16 %v2515_v24, %v2514_v43 }
 0x17e   : > { %v3078_v45 = vpack.c.bf16 %v2523_v13, %v2522_v3  ;;  %v2521_v36 = vmul.f32 %v2496_v62, %v2409_v31  ;;  %v2633_v22 = vmul.f32 %v2515_v24, %v2515_v24  ;;  %v2636_v7 = vmul.f32 %v4402_v17, %v4402_v17 }
 0x17f   : > { %v2645_v41 = vadd.f32 %v2644_v40, %v2630_v34  ;;  %v3053_v20 = vpack.c.bf16 %v2513_v39, %v2512_v8  ;;  %v2608_v9 = vadd.f32 %v2607_v48, %v2513_v39  ;;  %v2631_v32 = vmul.f32 %v2513_v39, %v2513_v39  ;;  %3082 = vst [vmem:[%s4407_s11 + $0x18] sm:$0xff] %v3058_v21  }
 0x180   : > { %3086 = vst [vmem:[%s4407_s11 + $0x38] sm:$0xff] %v3078_v45   ;;  %v3073_v53 = vpack.c.bf16 %v2521_v36, %v2520_v44  ;;  %v2637_v61 = vmul.f32 %v4409_v29, %v4409_v29  ;;  %v2639_v42 = vmul.f32 %v2521_v36, %v2521_v36  ;;  %v2641_v35 = vmul.f32 %v2523_v13, %v2523_v13 }
 0x181   : > { %3081 = vst [vmem:[%s4407_s11 + $0x10] sm:$0xff] %v3053_v20   ;;  %v2609_v33 = vadd.f32 %v2608_v9, %v2514_v43  ;;  %v2646_v19 = vadd.f32 %v2645_v41, %v2631_v32 }
 0x182   : > { %3085 = vst [vmem:[%s4407_s11 + $0x30] sm:$0xff] %v3073_v53  }
 0x183   : > { %v2610_v26 = vadd.f32 %v2609_v33, %v2515_v24  ;;  %v2647_v37 = vadd.f32 %v2646_v19, %v2632_v57 }
 0x185   : > { %v2611_v60 = vadd.f32 %v2610_v26, %v4413_v52  ;;  %v2648_v16 = vadd.f32 %v2647_v37, %v2633_v22  ;;  %v2638_v52 = vmul.f32 %v2520_v44, %v2520_v44 }
 0x187   : > { %v2649_v55 = vadd.f32 %v2648_v16, %v2634_v50  ;;  %v2612_v62 = vadd.f32 %v2611_v60, %v4419_v54  ;;  %v2640_v54 = vmul.f32 %v2522_v3, %v2522_v3 }
 0x189   : > { %v2613_v51 = vadd.f32 %v2612_v62, %v4402_v17  ;;  %v2650_v38 = vadd.f32 %v2649_v55, %v2635_v47 }
 0x18b   : > { %v2614_v46 = vadd.f32 %v2613_v51, %v4409_v29  ;;  %v2651_v12 = vadd.f32 %v2650_v38, %v2636_v7 }
 0x18d   : > { %v2615_v63 = vadd.f32 %v2614_v46, %v2520_v44  ;;  %v2652_v49 = vadd.f32 %v2651_v12, %v2637_v61 }
 0x18f   : > { %v2616_v23 = vadd.f32 %v2615_v63, %v2521_v36  ;;  %v2653_v6 = vadd.f32 %v2652_v49, %v2638_v52 }
 0x191   : > { %v2617_v56 = vadd.f32 %v2616_v23, %v2522_v3  ;;  %v2654_v27 = vadd.f32 %v2653_v6, %v2639_v42 }
 0x193   : > { %v2618_v59 = vadd.f32 %v2617_v56, %v2523_v13  ;;  %v2655_v17 = vadd.f32 %v2654_v27, %v2640_v54 }
 0x195   : > { %v2619_v30 = vrot.slane %v2618_v59, 4  ;;  %v2656_v0 = vadd.f32 %v2655_v17, %v2641_v35 }
 0x197   : > { %v2620_v1 = vadd.f32 %v2619_v30, %v2618_v59  ;;  %v2657_v43 = vrot.slane %v2656_v0, 4 }
 0x199   : > { %v2621_v4 = vrot.slane %v2620_v1, 2  ;;  %v2658_v29 = vadd.f32 %v2657_v43, %v2656_v0 }
 0x19b   : > { %v2622_v8 = vadd.f32 %v2621_v4, %v2620_v1  ;;  %v2659_v18 = vrot.slane %v2658_v29, 2 }
 0x19d   : > { %v2623_v25 = vrot.slane %v2622_v8, 1  ;;  %v2660_v5 = vadd.f32 %v2659_v18, %v2658_v29 }
 0x19f   : > { %v2624_v28 = vadd.f32 %v2623_v25, %v2622_v8  ;;  %v2661_v3 = vrot.slane %v2660_v5, 1 }
 0x1a1   : > { %2625 = vst [vmem:[%s208_s18] sm:$0x1] %v2624_v28  ;;  %v2662_v10 = vadd.f32 %v2661_v3, %v2660_v5 }
 0x1a3   : > { %2663 = vst [vmem:[%s208_s18 + $0x1] sm:$0x1] %v2662_v10 }
 0x1a4 PF: > { %s15_s15 = sadd.s32 1, %s3671_s15  }
 0x1a5   : > { %p12_p4 = scmp.ge.s32.totalorder %s15_s15, 4  }
 0x1a7   :  { %14 = sbr.rel (!%p12_p4) target bundleno = 1 (0x1), region = 82 }

</bundles_post_ra>
